<compile_context>
chip_gen: v5e
topology: v5e:2x2
jax: 0.10.0
libtpu: 0.0.40
codegen_flags: <defaults>
</compile_context>

<pallas_src>
import functools
import itertools

import numpy as np
import jax
import jax.numpy as jnp
from jax import lax
from jax.experimental import pallas as pl
from jax.experimental.pallas import tpu as pltpu


_RCHUNK = 512   # grid-row chunk for the one-hot scatter/gather masks


# ----------------------------- small helpers -----------------------------

def scale_tensor(dat, inp_scale=(-0.5, 0.5), tgt_scale=(0.0, 1.0)):
    dat = (dat - inp_scale[0]) / (inp_scale[1] - inp_scale[0])
    dat = dat * (tgt_scale[1] - tgt_scale[0]) + tgt_scale[0]
    return jnp.clip(dat, tgt_scale[0] + 1e-06, tgt_scale[1] - 1e-06)


def _gelu_tanh(x):
    # GELU(approximate='tanh'), matches torch
    c = jnp.float32(0.7978845608028654)  # sqrt(2/pi)
    return 0.5 * x * (1.0 + jnp.tanh(c * (x + 0.044715 * x * x * x)))


@functools.lru_cache(maxsize=None)
def _hw_config():
    """(vmem_limit_bytes, point_tile_cap) chosen per TPU generation."""
    try:
        vmem = int(getattr(pltpu.get_tpu_info(), "vmem_capacity_bytes", 64 * 1024 * 1024))
    except Exception:
        vmem = 64 * 1024 * 1024
    if vmem >= 96 * 1024 * 1024:            # v5e / v6e: 128 MiB VMEM -> big tiles
        return 100 * 1024 * 1024, 2048
    return 44 * 1024 * 1024, 1024           # v7x (64 MiB) or unknown: stay conservative


def _compiler_params():
    return pltpu.CompilerParams(
        dimension_semantics=("parallel", "arbitrary"),
        vmem_limit_bytes=_hw_config()[0],
    )


# ----------------------------- fused Pallas kernels -----------------------------

def _entry_kernel(coord_ref, idxr_ref, wp_ref, bp_ref, w0_ref, b0_ref, w1_ref, b1_ref, ws_ref,
                  net_ref, means_ref, inv_ref, *, rchunk):
    """p_local prologue + fc_pos + ResnetBlockFC[0] + scatter-sum/count + mean finalize."""
    k = pl.program_id(1)

    # --- prologue: p_local from the (shared) scaled coordinates ---
    coord = coord_ref[0]                                    # [tile, 3] f32
    p_local = 2.0 * (coord - (jnp.floor(coord) + 0.5))

    # --- fc_pos (K=3, keep f32) ---
    x = jnp.dot(p_local, wp_ref[...], preferred_element_type=jnp.float32) + bp_ref[...]

    # --- ResnetBlockFC[0]: shortcut(x) + fc_1(gelu(fc_0(gelu(x)))), bf16 MXU / f32 accum ---
    h = jnp.dot(_gelu_tanh(x).astype(jnp.bfloat16), w0_ref[...],
                preferred_element_type=jnp.float32) + b0_ref[...]
    dx = jnp.dot(_gelu_tanh(h).astype(jnp.bfloat16), w1_ref[...],
                 preferred_element_type=jnp.float32) + b1_ref[...]
    xs = jnp.dot(x.astype(jnp.bfloat16), ws_ref[...], preferred_element_type=jnp.float32)
    net = xs + dx                                           # [tile, H] f32
    net_bf = net.astype(jnp.bfloat16)
    net_ref[0] = net_bf

    # --- scatter-mean accumulation (chunked over grid rows) ---
    @pl.when(k == 0)
    def _():
        means_ref[...] = jnp.zeros_like(means_ref)
        inv_ref[...] = jnp.zeros_like(inv_ref)              # counts accumulate here first

    idx_r = idxr_ref[0]                                     # [1, tile] int32
    R = means_ref.shape[1]
    tile = net_bf.shape[0]
    for r0 in range(0, R, rchunk):
        rc = min(rchunk, R - r0)
        eq = (lax.broadcasted_iota(jnp.int32, (rc, tile), 0) + r0) == idx_r      # [rc, tile]
        means_ref[0, r0:r0 + rc, :] += jnp.dot(eq.astype(jnp.bfloat16), net_bf,
                                               preferred_element_type=jnp.float32)
        inv_ref[0, r0:r0 + rc, :] += jnp.sum(eq.astype(jnp.float32), axis=1, keepdims=True)

    @pl.when(k == pl.num_programs(1) - 1)
    def _():
        inv = pl.reciprocal(jnp.maximum(inv_ref[0], 1.0), approx=True)            # [R, 1]
        inv_ref[0] = inv
        means_ref[0] = means_ref[0] * inv


def _block_kernel(idxr_ref, idxc_ref, net_ref, mean_in_ref, inv_ref,
                  w0n_ref, w0p_ref, b0_ref, w1_ref, b1_ref, wsn_ref, wsp_ref,
                  out_ref, acc_ref, *, rchunk):
    """gather(pooled) + ResnetBlockFC on cat([net, pooled]) via row-split weights
    + scatter-sum of the new features; finalize multiplies by the precomputed 1/count."""
    k = pl.program_id(1)

    net_bf = net_ref[0]                                     # [tile, H] bf16
    R = mean_in_ref.shape[1]
    tile, H = net_bf.shape

    # --- pool_sparse_local gather-back: chunked bf16 one-hot x means (MXU) ---
    idx_c = idxc_ref[0]                                     # [tile, 1] int32
    pooled = jnp.zeros((tile, H), jnp.float32)
    for r0 in range(0, R, rchunk):
        rc = min(rchunk, R - r0)
        eq = (lax.broadcasted_iota(jnp.int32, (tile, rc), 1) + r0) == idx_c       # [tile, rc]
        pooled = pooled + jnp.dot(eq.astype(jnp.bfloat16),
                                  mean_in_ref[0, r0:r0 + rc, :].astype(jnp.bfloat16),
                                  preferred_element_type=jnp.float32)
    pooled_bf = pooled.astype(jnp.bfloat16)

    # --- ResnetBlockFC with split weights: avoids materializing cat([net, pooled]) ---
    a_n = _gelu_tanh(net_bf.astype(jnp.float32)).astype(jnp.bfloat16)
    a_p = _gelu_tanh(pooled).astype(jnp.bfloat16)
    h = (jnp.dot(a_n, w0n_ref[...], preferred_element_type=jnp.float32)
         + jnp.dot(a_p, w0p_ref[...], preferred_element_type=jnp.float32)
         + b0_ref[...])
    dx = jnp.dot(_gelu_tanh(h).astype(jnp.bfloat16), w1_ref[...],
                 preferred_element_type=jnp.float32) + b1_ref[...]
    xs = (jnp.dot(net_bf, wsn_ref[...], preferred_element_type=jnp.float32)
          + jnp.dot(pooled_bf, wsp_ref[...], preferred_element_type=jnp.float32))
    out = xs + dx
    out_bf = out.astype(jnp.bfloat16)
    out_ref[0] = out_bf

    # --- scatter-sum of the new features for the next block's pooling ---
    @pl.when(k == 0)
    def _():
        acc_ref[...] = jnp.zeros_like(acc_ref)

    idx_r = idxr_ref[0]                                     # [1, tile]
    for r0 in range(0, R, rchunk):
        rc = min(rchunk, R - r0)
        eq = (lax.broadcasted_iota(jnp.int32, (rc, tile), 0) + r0) == idx_r
        acc_ref[0, r0:r0 + rc, :] += jnp.dot(eq.astype(jnp.bfloat16), out_bf,
                                             preferred_element_type=jnp.float32)

    @pl.when(k == pl.num_programs(1) - 1)
    def _():
        acc_ref[0] = acc_ref[0] * inv_ref[0]                # precomputed 1/count


def _final_kernel(idxr_ref, idxc_ref, net_ref, mean_in_ref, inv_ref,
                  w0n_ref, w0p_ref, b0_ref, w1_ref, b1_ref, wsn_ref, wsp_ref,
                  wc_ref, bc_ref, feats_ref, *, rchunk):
    """last ResnetBlockFC + fc_c + generate_sparse_grid_features (scatter-mean of c)."""
    k = pl.program_id(1)

    net_bf = net_ref[0]                                     # [tile, H] bf16
    R = mean_in_ref.shape[1]
    tile, H = net_bf.shape

    idx_c = idxc_ref[0]                                     # [tile, 1]
    pooled = jnp.zeros((tile, H), jnp.float32)
    for r0 in range(0, R, rchunk):
        rc = min(rchunk, R - r0)
        eq = (lax.broadcasted_iota(jnp.int32, (tile, rc), 1) + r0) == idx_c
        pooled = pooled + jnp.dot(eq.astype(jnp.bfloat16),
                                  mean_in_ref[0, r0:r0 + rc, :].astype(jnp.bfloat16),
                                  preferred_element_type=jnp.float32)
    pooled_bf = pooled.astype(jnp.bfloat16)

    a_n = _gelu_tanh(net_bf.astype(jnp.float32)).astype(jnp.bfloat16)
    a_p = _gelu_tanh(pooled).astype(jnp.bfloat16)
    h = (jnp.dot(a_n, w0n_ref[...], preferred_element_type=jnp.float32)
         + jnp.dot(a_p, w0p_ref[...], preferred_element_type=jnp.float32)
         + b0_ref[...])
    dx = jnp.dot(_gelu_tanh(h).astype(jnp.bfloat16), w1_ref[...],
                 preferred_element_type=jnp.float32) + b1_ref[...]
    xs = (jnp.dot(net_bf, wsn_ref[...], preferred_element_type=jnp.float32)
          + jnp.dot(pooled_bf, wsp_ref[...], preferred_element_type=jnp.float32))
    out = xs + dx

    # fc_c fused in -> per-point c never hits HBM
    c = jnp.dot(out.astype(jnp.bfloat16), wc_ref[...],
                preferred_element_type=jnp.float32) + bc_ref[...]
    c_bf = c.astype(jnp.bfloat16)

    @pl.when(k == 0)
    def _():
        feats_ref[...] = jnp.zeros_like(feats_ref)

    idx_r = idxr_ref[0]                                     # [1, tile]
    for r0 in range(0, R, rchunk):
        rc = min(rchunk, R - r0)
        eq = (lax.broadcasted_iota(jnp.int32, (rc, tile), 0) + r0) == idx_r
        feats_ref[0, r0:r0 + rc, :] += jnp.dot(eq.astype(jnp.bfloat16), c_bf,
                                               preferred_element_type=jnp.float32)

    @pl.when(k == pl.num_programs(1) - 1)
    def _():
        feats_ref[0] = feats_ref[0] * inv_ref[0]


# ----------------------------- pallas_call wrappers -----------------------------

def run_entry(coord, idx_row, kp, *, R, tile):
    B, Np, D = coord.shape
    wp, bp = kp["wp"], kp["bp"]
    w0, b0, w1, b1, ws = kp["blk0"]
    H2 = wp.shape[1]
    H = w0.shape[1]
    Kp = Np // tile

    grid_spec = pltpu.PrefetchScalarGridSpec(
        num_scalar_prefetch=0,
        grid=(B, Kp),
        in_specs=[
            pl.BlockSpec((1, tile, D), lambda b, k: (b, k, 0)),      # scaled coords
            pl.BlockSpec((1, 1, tile), lambda b, k: (b, 0, k)),      # index (row layout)
            pl.BlockSpec((D, H2), lambda b, k: (0, 0)),              # fc_pos.w   (f32)
            pl.BlockSpec((1, H2), lambda b, k: (0, 0)),              # fc_pos.b
            pl.BlockSpec((H2, H), lambda b, k: (0, 0)),              # block0 fc_0.w  (bf16)
            pl.BlockSpec((1, H), lambda b, k: (0, 0)),               # block0 fc_0.b
            pl.BlockSpec((H, H), lambda b, k: (0, 0)),               # block0 fc_1.w  (bf16)
            pl.BlockSpec((1, H), lambda b, k: (0, 0)),               # block0 fc_1.b
            pl.BlockSpec((H2, H), lambda b, k: (0, 0)),              # block0 shortcut (bf16)
        ],
        out_specs=[
            pl.BlockSpec((1, tile, H), lambda b, k: (b, k, 0)),      # per-point features
            pl.BlockSpec((1, R, H), lambda b, k: (b, 0, 0)),         # grid means (accumulator)
            pl.BlockSpec((1, R, 1), lambda b, k: (b, 0, 0)),         # 1 / counts
        ],
    )
    return pl.pallas_call(
        functools.partial(_entry_kernel, rchunk=_RCHUNK),
        out_shape=(jax.ShapeDtypeStruct((B, Np, H), jnp.bfloat16),
                   jax.ShapeDtypeStruct((B, R, H), jnp.float32),
                   jax.ShapeDtypeStruct((B, R, 1), jnp.float32)),
        grid_spec=grid_spec,
        compiler_params=_compiler_params(),
    )(coord, idx_row, wp, bp, w0, b0, w1, b1, ws)


def run_block(idx_row, idx_col, net, means, inv_cnt, blk, *, tile):
    B, Np, H = net.shape
    R = means.shape[1]
    Kp = Np // tile
    w0n, w0p, b0, w1, b1, wsn, wsp = blk

    grid_spec = pltpu.PrefetchScalarGridSpec(
        num_scalar_prefetch=0,
        grid=(B, Kp),
        in_specs=[
            pl.BlockSpec((1, 1, tile), lambda b, k: (b, 0, k)),      # index row layout
            pl.BlockSpec((1, tile, 1), lambda b, k: (b, k, 0)),      # index column layout
            pl.BlockSpec((1, tile, H), lambda b, k: (b, k, 0)),      # per-point feats (bf16)
            pl.BlockSpec((1, R, H), lambda b, k: (b, 0, 0)),         # grid means (resident)
            pl.BlockSpec((1, R, 1), lambda b, k: (b, 0, 0)),         # 1 / counts
            pl.BlockSpec((H, H), lambda b, k: (0, 0)),               # fc_0.w (net rows)
            pl.BlockSpec((H, H), lambda b, k: (0, 0)),               # fc_0.w (pooled rows)
            pl.BlockSpec((1, H), lambda b, k: (0, 0)),               # fc_0.b
            pl.BlockSpec((H, H), lambda b, k: (0, 0)),               # fc_1.w
            pl.BlockSpec((1, H), lambda b, k: (0, 0)),               # fc_1.b
            pl.BlockSpec((H, H), lambda b, k: (0, 0)),               # shortcut.w (net rows)
            pl.BlockSpec((H, H), lambda b, k: (0, 0)),               # shortcut.w (pooled rows)
        ],
        out_specs=[
            pl.BlockSpec((1, tile, H), lambda b, k: (b, k, 0)),
            pl.BlockSpec((1, R, H), lambda b, k: (b, 0, 0)),
        ],
    )
    return pl.pallas_call(
        functools.partial(_block_kernel, rchunk=_RCHUNK),
        out_shape=(jax.ShapeDtypeStruct((B, Np, H), jnp.bfloat16),
                   jax.ShapeDtypeStruct((B, R, H), jnp.float32)),
        grid_spec=grid_spec,
        compiler_params=_compiler_params(),
    )(idx_row, idx_col, net, means, inv_cnt, w0n, w0p, b0, w1, b1, wsn, wsp)


def run_final(idx_row, idx_col, net, means, inv_cnt, blk, wc, bc, *, tile):
    B, Np, H = net.shape
    R = means.shape[1]
    Cout = wc.shape[1]
    Kp = Np // tile
    w0n, w0p, b0, w1, b1, wsn, wsp = blk

    grid_spec = pltpu.PrefetchScalarGridSpec(
        num_scalar_prefetch=0,
        grid=(B, Kp),
        in_specs=[
            pl.BlockSpec((1, 1, tile), lambda b, k: (b, 0, k)),
            pl.BlockSpec((1, tile, 1), lambda b, k: (b, k, 0)),
            pl.BlockSpec((1, tile, H), lambda b, k: (b, k, 0)),
            pl.BlockSpec((1, R, H), lambda b, k: (b, 0, 0)),
            pl.BlockSpec((1, R, 1), lambda b, k: (b, 0, 0)),
            pl.BlockSpec((H, H), lambda b, k: (0, 0)),
            pl.BlockSpec((H, H), lambda b, k: (0, 0)),
            pl.BlockSpec((1, H), lambda b, k: (0, 0)),
            pl.BlockSpec((H, H), lambda b, k: (0, 0)),
            pl.BlockSpec((1, H), lambda b, k: (0, 0)),
            pl.BlockSpec((H, H), lambda b, k: (0, 0)),
            pl.BlockSpec((H, H), lambda b, k: (0, 0)),
            pl.BlockSpec((H, Cout), lambda b, k: (0, 0)),            # fc_c.w (bf16)
            pl.BlockSpec((1, Cout), lambda b, k: (0, 0)),            # fc_c.b
        ],
        out_specs=[pl.BlockSpec((1, R, Cout), lambda b, k: (b, 0, 0))],
    )
    (feats,) = pl.pallas_call(
        functools.partial(_final_kernel, rchunk=_RCHUNK),
        out_shape=(jax.ShapeDtypeStruct((B, R, Cout), jnp.float32),),
        grid_spec=grid_spec,
        compiler_params=_compiler_params(),
    )(idx_row, idx_col, net, means, inv_cnt, w0n, w0p, b0, w1, b1, wsn, wsp, wc, bc)
    return feats


# ----------------------------- params -----------------------------

def xavier_uniform(key, fan_in, fan_out):
    bound = float(np.sqrt(6.0 / (fan_in + fan_out)))
    return jax.random.uniform(key, (fan_in, fan_out), jnp.float32, -bound, bound)


def init_params(key, in_channels, hidden_dim, out_channels, n_blocks):
    keys = jax.random.split(key, 2 + 3 * n_blocks)
    params = {
        "fc_pos_w": xavier_uniform(keys[0], in_channels, 2 * hidden_dim),
        "fc_pos_b": jnp.zeros((1, 2 * hidden_dim), jnp.float32),
        "fc_c_w": xavier_uniform(keys[1], hidden_dim, out_channels),
        "fc_c_b": jnp.zeros((1, out_channels), jnp.float32),
        "blocks": [],
    }
    for i in range(n_blocks):
        k0 = keys[2 + 3 * i]
        k1 = keys[3 + 3 * i]
        ks = keys[4 + 3 * i]
        params["blocks"].append((
            xavier_uniform(k0, 2 * hidden_dim, hidden_dim),      # fc_0.weight (stored [in,out])
            jnp.zeros((1, hidden_dim), jnp.float32),             # fc_0.bias
            xavier_uniform(k1, hidden_dim, hidden_dim),          # fc_1.weight
            jnp.zeros((1, hidden_dim), jnp.float32),             # fc_1.bias
            xavier_uniform(ks, 2 * hidden_dim, hidden_dim),      # shortcut.weight (no bias)
        ))
    return params


def prepare_params(params):
    """Hoisted kernel-ready weights: bf16 cast + row-split of the concat-consuming blocks."""
    H = params["fc_c_w"].shape[0]
    w0, b0, w1, b1, ws = params["blocks"][0]
    kp = {
        "wp": params["fc_pos_w"],                                # f32 (K=3 matmul)
        "bp": params["fc_pos_b"],
        "blk0": (w0.astype(jnp.bfloat16), b0, w1.astype(jnp.bfloat16), b1,
                 ws.astype(jnp.bfloat16)),
        "blocks": [],
        "wc": params["fc_c_w"].astype(jnp.bfloat16),
        "bc": params["fc_c_b"],
    }
    for (w0, b0, w1, b1, ws) in params["blocks"][1:]:
        kp["blocks"].append((
            w0[:H].astype(jnp.bfloat16), w0[H:].astype(jnp.bfloat16), b0,
            w1.astype(jnp.bfloat16), b1,
            ws[:H].astype(jnp.bfloat16), ws[H:].astype(jnp.bfloat16),
        ))
    return kp


# ----------------------------- forward -----------------------------

def coordinate2sparseindex(coord_int, sparse_coords_np, res):
    # coord_int: [B, Np, 3] int32 (jax); sparse_coords_np: [Nx, 4] numpy
    # TODO(synk): per-batch masked searchsorted has data-dependent sizes -> plain JAX/numpy glue.
    #             Like the torch module, this is only exact when every point hits an occupied cell.
    B = coord_int.shape[0]
    flat_pt = (coord_int[..., 0] * res + coord_int[..., 1]) * res + coord_int[..., 2]  # [B, Np]
    sparse_coords_np = np.asarray(sparse_coords_np)
    batch_col = sparse_coords_np[:, 0]
    flat_sc = (sparse_coords_np[:, 1] * res + sparse_coords_np[:, 2]) * res + sparse_coords_np[:, 3]
    rows = []
    for i in range(B):
        coords_i = jnp.asarray(flat_sc[batch_col == i], dtype=jnp.int32)
        rows.append(jnp.searchsorted(coords_i, flat_pt[i]))
    return jnp.stack(rows).astype(jnp.int32)[:, None, :]    # [B, 1, Np]


def local_pool_pointnet_forward(params, p, sparse_coords_np, res=64, bbox_size=(-0.5, 0.5),
                                tile=None):
    B, Np, D = p.shape
    assert D == 3  # TODO(synk): D==6 (points + normals) input path not implemented
    assert len(params["blocks"]) >= 2
    kp = prepare_params(params)

    batch_col = np.asarray(sparse_coords_np)[:, 0]
    counts = [int((batch_col == i).sum()) for i in range(B)]
    R = max(c + 5 for c in counts)
    R = 8 * ((R + 7) // 8)      # pad grid rows to a sublane multiple (padding rows never emitted)

    # scaled coordinates are computed ONCE and shared by the index lookup (wrapper) and the
    # p_local prologue (kernel) so both derive from identical floats.
    coord = scale_tensor(p, inp_scale=bbox_size) * res                              # [B, Np, 3]
    index = coordinate2sparseindex(jnp.floor(coord).astype(jnp.int32),
                                   sparse_coords_np, res)                           # [B, 1, Np]

    # generation-aware point tile (multiple of 128); pad Np so nothing is dropped
    vmem_limit, tile_cap = _hw_config()
    tile_eff = tile_cap if tile is None else tile
    tile_eff = min(max(128, (tile_eff // 128) * 128), 128 * ((Np + 127) // 128))
    Np_pad = tile_eff * ((Np + tile_eff - 1) // tile_eff)
    pad = Np_pad - Np
    if pad:
        # padded points scatter only into padding row R-1, which no real point reads or emits
        coord = jnp.pad(coord, ((0, 0), (0, pad), (0, 0)))
        index = jnp.pad(index, ((0, 0), (0, 0), (0, pad)), constant_values=R - 1)
    idx_row = index                                 # [B, 1, Np_pad]
    idx_col = jnp.swapaxes(index, 1, 2)             # [B, Np_pad, 1]

    # stage 0: prologue + fc_pos + block0 + scatter-mean (also produces 1/count once)
    net, means, inv_cnt = run_entry(coord, idx_row, kp, R=R, tile=tile_eff)
    # stages 1..n-2: gather + block + scatter-mean
    for blk in kp["blocks"][:-1]:
        net, means = run_block(idx_row, idx_col, net, means, inv_cnt, blk, tile=tile_eff)
    # stage n-1: gather + last block + fc_c + final scatter-mean
    feats = run_final(idx_row, idx_col, net, means, inv_cnt, kp["blocks"][-1],
                      kp["wc"], kp["bc"], tile=tile_eff)                  # [B, R, Cout] f32

    # convert_to_sparse_feats: concat the first counts[i] grid rows of each batch element
    parts = [feats[i, :counts[i]] for i in range(B)]
    return jnp.concatenate(parts, axis=0)                                 # [Nx, Cout]


# ----------------------------- demo -----------------------------

if __name__ == "__main__":
    B, Np, D = 2, 256, 3
    # module defaults: hidden_dim = out_channels = 128 -> every feature dim is lane-dense
    hidden_dim, out_channels, n_blocks, res = 128, 128, 5, 8

    key = jax.random.PRNGKey(0)
    k_params, k_points = jax.random.split(key)

    # points confined to the 3x3x3 occupied corner of the res^3 grid
    lo, hi = -0.5, -0.5 + 3.0 / res - 1e-3
    p = jax.random.uniform(k_points, (B, Np, D), jnp.float32, lo, hi)

    # sparse_coords: all 27 occupied cells per batch, sorted by flat index, batch-major
    cells = np.array(list(itertools.product(range(3), repeat=3)), dtype=np.int32)
    sparse_coords = np.concatenate(
        [np.concatenate([np.full((cells.shape[0], 1), b, np.int32), cells], axis=1)
         for b in range(B)], axis=0)                                           # [54, 4]

    params = init_params(k_params, D, hidden_dim, out_channels, n_blocks)

    out = local_pool_pointnet_forward(params, p, sparse_coords, res=res)
    out = jax.block_until_ready(out)

    assert out.shape == (sparse_coords.shape[0], out_channels), out.shape
    assert np.all(np.isfinite(np.asarray(out)))
    print("KERNEL_OK")
</pallas_src>

<mosaic_0001>
module attributes {stable_mosaic.version = 11 : i64} {
  func.func @_entry_kernel(%arg0: i32, %arg1: i32, %arg2: memref<1x256x3xf32, #tpu.memory_space<vmem>>, %arg3: memref<1x1x256xi32, #tpu.memory_space<vmem>>, %arg4: memref<3x256xf32, #tpu.memory_space<vmem>>, %arg5: memref<1x256xf32, #tpu.memory_space<vmem>>, %arg6: memref<256x128xbf16, #tpu.memory_space<vmem>>, %arg7: memref<1x128xf32, #tpu.memory_space<vmem>>, %arg8: memref<128x128xbf16, #tpu.memory_space<vmem>>, %arg9: memref<1x128xf32, #tpu.memory_space<vmem>>, %arg10: memref<256x128xbf16, #tpu.memory_space<vmem>>, %arg11: memref<1x256x128xbf16, #tpu.memory_space<vmem>>, %arg12: memref<1x32x128xf32, #tpu.memory_space<vmem>>, %arg13: memref<1x32x1xf32, #tpu.memory_space<vmem>>) attributes {dimension_semantics = [#tpu.dimension_semantics<parallel>, #tpu.dimension_semantics<arbitrary>], iteration_bounds = array<i64: 2, 1>, scalar_prefetch = 0 : i64, scratch_operands = 0 : i64, tpu.core_type = #tpu.core_type<tc>, window_params = [{transform_indices = @transform_0, window_bounds = array<i64: 1, 256, 3>}, {transform_indices = @transform_1, window_bounds = array<i64: 1, 1, 256>}, {pipeline_mode = #tpu.pipeline_mode<synchronous>, transform_indices = @transform_2, window_bounds = array<i64: 3, 256>}, {pipeline_mode = #tpu.pipeline_mode<synchronous>, transform_indices = @transform_3, window_bounds = array<i64: 1, 256>}, {pipeline_mode = #tpu.pipeline_mode<synchronous>, transform_indices = @transform_4, window_bounds = array<i64: 256, 128>}, {pipeline_mode = #tpu.pipeline_mode<synchronous>, transform_indices = @transform_5, window_bounds = array<i64: 1, 128>}, {pipeline_mode = #tpu.pipeline_mode<synchronous>, transform_indices = @transform_6, window_bounds = array<i64: 128, 128>}, {pipeline_mode = #tpu.pipeline_mode<synchronous>, transform_indices = @transform_7, window_bounds = array<i64: 1, 128>}, {pipeline_mode = #tpu.pipeline_mode<synchronous>, transform_indices = @transform_8, window_bounds = array<i64: 256, 128>}, {transform_indices = @transform_9, window_bounds = array<i64: 1, 256, 128>}, {transform_indices = @transform_10, window_bounds = array<i64: 1, 32, 128>}, {transform_indices = @transform_11, window_bounds = array<i64: 1, 32, 1>}]} {
    %c0 = arith.constant 0 : index
    %c0_0 = arith.constant 0 : index
    %c0_1 = arith.constant 0 : index
    %0 = vector.load %arg2[%c0, %c0_0, %c0_1] : memref<1x256x3xf32, #tpu.memory_space<vmem>>, vector<1x256x3xf32>
    %1 = vector.shape_cast %0 : vector<1x256x3xf32> to vector<256x3xf32>
    %2 = math.floor %1 : vector<256x3xf32>
    %cst = arith.constant 5.000000e-01 : f32
    %3 = vector.broadcast %cst : f32 to vector<256x3xf32>
    %4 = arith.addf %2, %3 : vector<256x3xf32>
    %5 = arith.subf %1, %4 : vector<256x3xf32>
    %cst_2 = arith.constant 2.000000e+00 : f32
    %6 = vector.broadcast %cst_2 : f32 to vector<256x3xf32>
    %7 = arith.mulf %6, %5 : vector<256x3xf32>
    %c0_3 = arith.constant 0 : index
    %c0_4 = arith.constant 0 : index
    %8 = vector.load %arg4[%c0_3, %c0_4] : memref<3x256xf32, #tpu.memory_space<vmem>>, vector<3x256xf32>
    %cst_5 = arith.constant dense<0.000000e+00> : vector<256x256xf32>
    %9 = tpu.matmul %7, %8, %cst_5 {dimension_numbers = #tpu.dot_dimension_numbers<[1], [0], [0], [1], [0, 0, 1, 1], [], []>} : vector<256x3xf32>, vector<3x256xf32>, vector<256x256xf32> -> vector<256x256xf32>
    %c0_6 = arith.constant 0 : index
    %c0_7 = arith.constant 0 : index
    %10 = vector.load %arg5[%c0_6, %c0_7] : memref<1x256xf32, #tpu.memory_space<vmem>>, vector<1x256xf32>
    %11 = vector.broadcast %10 : vector<1x256xf32> to vector<256x256xf32>
    %12 = arith.addf %9, %11 : vector<256x256xf32>
    %cst_8 = arith.constant 5.000000e-01 : f32
    %13 = vector.broadcast %cst_8 : f32 to vector<256x256xf32>
    %14 = arith.mulf %13, %12 : vector<256x256xf32>
    %cst_9 = arith.constant 4.471500e-02 : f32
    %15 = vector.broadcast %cst_9 : f32 to vector<256x256xf32>
    %16 = arith.mulf %15, %12 : vector<256x256xf32>
    %17 = arith.mulf %16, %12 : vector<256x256xf32>
    %18 = arith.mulf %17, %12 : vector<256x256xf32>
    %19 = arith.addf %12, %18 : vector<256x256xf32>
    %cst_10 = arith.constant 0.797884583 : f32
    %20 = vector.broadcast %cst_10 : f32 to vector<256x256xf32>
    %21 = arith.mulf %20, %19 : vector<256x256xf32>
    %22 = math.tanh %21 : vector<256x256xf32>
    %cst_11 = arith.constant 1.000000e+00 : f32
    %23 = vector.broadcast %cst_11 : f32 to vector<256x256xf32>
    %24 = arith.addf %23, %22 : vector<256x256xf32>
    %25 = arith.mulf %14, %24 : vector<256x256xf32>
    %26 = arith.truncf %25 : vector<256x256xf32> to vector<256x256xbf16>
    %c0_12 = arith.constant 0 : index
    %c0_13 = arith.constant 0 : index
    %27 = vector.load %arg6[%c0_12, %c0_13] : memref<256x128xbf16, #tpu.memory_space<vmem>>, vector<256x128xbf16>
    %cst_14 = arith.constant dense<0.000000e+00> : vector<256x128xf32>
    %28 = tpu.matmul %26, %27, %cst_14 {dimension_numbers = #tpu.dot_dimension_numbers<[1], [0], [0], [1], [0, 0, 1, 1], [], []>} : vector<256x256xbf16>, vector<256x128xbf16>, vector<256x128xf32> -> vector<256x128xf32>
    %c0_15 = arith.constant 0 : index
    %c0_16 = arith.constant 0 : index
    %29 = vector.load %arg7[%c0_15, %c0_16] : memref<1x128xf32, #tpu.memory_space<vmem>>, vector<1x128xf32>
    %30 = vector.broadcast %29 : vector<1x128xf32> to vector<256x128xf32>
    %31 = arith.addf %28, %30 : vector<256x128xf32>
    %cst_17 = arith.constant 5.000000e-01 : f32
    %32 = vector.broadcast %cst_17 : f32 to vector<256x128xf32>
    %33 = arith.mulf %32, %31 : vector<256x128xf32>
    %cst_18 = arith.constant 4.471500e-02 : f32
    %34 = vector.broadcast %cst_18 : f32 to vector<256x128xf32>
    %35 = arith.mulf %34, %31 : vector<256x128xf32>
    %36 = arith.mulf %35, %31 : vector<256x128xf32>
    %37 = arith.mulf %36, %31 : vector<256x128xf32>
    %38 = arith.addf %31, %37 : vector<256x128xf32>
    %cst_19 = arith.constant 0.797884583 : f32
    %39 = vector.broadcast %cst_19 : f32 to vector<256x128xf32>
    %40 = arith.mulf %39, %38 : vector<256x128xf32>
    %41 = math.tanh %40 : vector<256x128xf32>
    %cst_20 = arith.constant 1.000000e+00 : f32
    %42 = vector.broadcast %cst_20 : f32 to vector<256x128xf32>
    %43 = arith.addf %42, %41 : vector<256x128xf32>
    %44 = arith.mulf %33, %43 : vector<256x128xf32>
    %45 = arith.truncf %44 : vector<256x128xf32> to vector<256x128xbf16>
    %c0_21 = arith.constant 0 : index
    %c0_22 = arith.constant 0 : index
    %46 = vector.load %arg8[%c0_21, %c0_22] : memref<128x128xbf16, #tpu.memory_space<vmem>>, vector<128x128xbf16>
    %cst_23 = arith.constant dense<0.000000e+00> : vector<256x128xf32>
    %47 = tpu.matmul %45, %46, %cst_23 {dimension_numbers = #tpu.dot_dimension_numbers<[1], [0], [0], [1], [0, 0, 1, 1], [], []>} : vector<256x128xbf16>, vector<128x128xbf16>, vector<256x128xf32> -> vector<256x128xf32>
    %c0_24 = arith.constant 0 : index
    %c0_25 = arith.constant 0 : index
    %48 = vector.load %arg9[%c0_24, %c0_25] : memref<1x128xf32, #tpu.memory_space<vmem>>, vector<1x128xf32>
    %49 = vector.broadcast %48 : vector<1x128xf32> to vector<256x128xf32>
    %50 = arith.addf %47, %49 : vector<256x128xf32>
    %51 = arith.truncf %12 : vector<256x256xf32> to vector<256x256xbf16>
    %c0_26 = arith.constant 0 : index
    %c0_27 = arith.constant 0 : index
    %52 = vector.load %arg10[%c0_26, %c0_27] : memref<256x128xbf16, #tpu.memory_space<vmem>>, vector<256x128xbf16>
    %cst_28 = arith.constant dense<0.000000e+00> : vector<256x128xf32>
    %53 = tpu.matmul %51, %52, %cst_28 {dimension_numbers = #tpu.dot_dimension_numbers<[1], [0], [0], [1], [0, 0, 1, 1], [], []>} : vector<256x256xbf16>, vector<256x128xbf16>, vector<256x128xf32> -> vector<256x128xf32>
    %54 = arith.addf %53, %50 : vector<256x128xf32>
    %55 = arith.truncf %54 : vector<256x128xf32> to vector<256x128xbf16>
    %c0_29 = arith.constant 0 : index
    %c0_30 = arith.constant 0 : index
    %c0_31 = arith.constant 0 : index
    %56 = vector.load %arg11[%c0_29, %c0_30, %c0_31] : memref<1x256x128xbf16, #tpu.memory_space<vmem>>, vector<1x256x128xbf16>
    %57 = vector.shape_cast %56 : vector<1x256x128xbf16> to vector<256x128xbf16>
    %58 = vector.shape_cast %55 : vector<256x128xbf16> to vector<1x256x128xbf16>
    tpu.vector_store %arg11[%c0_29, %c0_30, %c0_31], %58 {strides = array<i32>} : memref<1x256x128xbf16, #tpu.memory_space<vmem>>, vector<1x256x128xbf16>,
    %c0_i32 = arith.constant 0 : i32
    %59 = arith.cmpi eq, %arg1, %c0_i32 : i32
    %60 = arith.extui %59 : i1 to i32
    %c0_i32_32 = arith.constant 0 : i32
    %61 = arith.cmpi ne, %60, %c0_i32_32 : i32
    scf.if %61 {
      %cst_53 = arith.constant 0.000000e+00 : f32
      %92 = vector.broadcast %cst_53 : f32 to vector<1x32x128xf32>
      %c0_54 = arith.constant 0 : index
      %c0_55 = arith.constant 0 : index
      %c0_56 = arith.constant 0 : index
      %93 = vector.load %arg12[%c0_54, %c0_55, %c0_56] : memref<1x32x128xf32, #tpu.memory_space<vmem>>, vector<1x32x128xf32>
      tpu.vector_store %arg12[%c0_54, %c0_55, %c0_56], %92 {strides = array<i32>} : memref<1x32x128xf32, #tpu.memory_space<vmem>>, vector<1x32x128xf32>,
      %cst_57 = arith.constant 0.000000e+00 : f32
      %94 = vector.broadcast %cst_57 : f32 to vector<1x32x1xf32>
      %c0_58 = arith.constant 0 : index
      %c0_59 = arith.constant 0 : index
      %c0_60 = arith.constant 0 : index
      %95 = vector.load %arg13[%c0_58, %c0_59, %c0_60] : memref<1x32x1xf32, #tpu.memory_space<vmem>>, vector<1x32x1xf32>
      tpu.vector_store %arg13[%c0_58, %c0_59, %c0_60], %94 {strides = array<i32>} : memref<1x32x1xf32, #tpu.memory_space<vmem>>, vector<1x32x1xf32>,
    } else {
    }
    %c0_33 = arith.constant 0 : index
    %c0_34 = arith.constant 0 : index
    %c0_35 = arith.constant 0 : index
    %62 = vector.load %arg3[%c0_33, %c0_34, %c0_35] : memref<1x1x256xi32, #tpu.memory_space<vmem>>, vector<1x1x256xi32>
    %63 = vector.shape_cast %62 : vector<1x1x256xi32> to vector<1x256xi32>
    %64 = tpu.iota {dimensions = array<i32: 0>} : vector<32x256xi32>
    %c0_i32_36 = arith.constant 0 : i32
    %65 = vector.broadcast %c0_i32_36 : i32 to vector<32x256xi32>
    %66 = arith.addi %64, %65 : vector<32x256xi32>
    %67 = vector.broadcast %63 : vector<1x256xi32> to vector<32x256xi32>
    %68 = arith.cmpi eq, %66, %67 : vector<32x256xi32>
    %c0_37 = arith.constant 0 : index
    %c0_38 = arith.constant 0 : index
    %c0_39 = arith.constant 0 : index
    %69 = vector.load %arg12[%c0_37, %c0_38, %c0_39] : memref<1x32x128xf32, #tpu.memory_space<vmem>>, vector<1x32x128xf32>
    %70 = vector.shape_cast %69 : vector<1x32x128xf32> to vector<32x128xf32>
    %71 = arith.extui %68 : vector<32x256xi1> to vector<32x256xi32>
    %72 = arith.sitofp %71 : vector<32x256xi32> to vector<32x256xf32>
    %73 = arith.truncf %72 : vector<32x256xf32> to vector<32x256xbf16>
    %cst_40 = arith.constant dense<0.000000e+00> : vector<32x128xf32>
    %74 = tpu.matmul %73, %55, %cst_40 {dimension_numbers = #tpu.dot_dimension_numbers<[1], [0], [0], [1], [0, 0, 1, 1], [], []>} : vector<32x256xbf16>, vector<256x128xbf16>, vector<32x128xf32> -> vector<32x128xf32>
    %75 = arith.addf %70, %74 : vector<32x128xf32>
    %c0_41 = arith.constant 0 : index
    %c0_42 = arith.constant 0 : index
    %c0_43 = arith.constant 0 : index
    %76 = vector.load %arg12[%c0_41, %c0_42, %c0_43] : memref<1x32x128xf32, #tpu.memory_space<vmem>>, vector<1x32x128xf32>
    %77 = vector.shape_cast %76 : vector<1x32x128xf32> to vector<32x128xf32>
    %78 = vector.shape_cast %75 : vector<32x128xf32> to vector<1x32x128xf32>
    tpu.vector_store %arg12[%c0_41, %c0_42, %c0_43], %78 {strides = array<i32>} : memref<1x32x128xf32, #tpu.memory_space<vmem>>, vector<1x32x128xf32>,
    %c0_44 = arith.constant 0 : index
    %c0_45 = arith.constant 0 : index
    %c0_46 = arith.constant 0 : index
    %79 = vector.load %arg13[%c0_44, %c0_45, %c0_46] : memref<1x32x1xf32, #tpu.memory_space<vmem>>, vector<1x32x1xf32>
    %80 = vector.shape_cast %79 : vector<1x32x1xf32> to vector<32x1xf32>
    %81 = arith.extui %68 : vector<32x256xi1> to vector<32x256xi32>
    %82 = arith.sitofp %81 : vector<32x256xi32> to vector<32x256xf32>
    %cst_47 = arith.constant dense<0.000000e+00> : vector<32xf32>
    %83 = vector.multi_reduction <add>, %82, %cst_47 [1] : vector<32x256xf32> to vector<32xf32>
    %84 = vector.shape_cast %83 : vector<32xf32> to vector<32x1xf32>
    %85 = arith.addf %80, %84 : vector<32x1xf32>
    %c0_48 = arith.constant 0 : index
    %c0_49 = arith.constant 0 : index
    %c0_50 = arith.constant 0 : index
    %86 = vector.load %arg13[%c0_48, %c0_49, %c0_50] : memref<1x32x1xf32, #tpu.memory_space<vmem>>, vector<1x32x1xf32>
    %87 = vector.shape_cast %86 : vector<1x32x1xf32> to vector<32x1xf32>
    %88 = vector.shape_cast %85 : vector<32x1xf32> to vector<1x32x1xf32>
    tpu.vector_store %arg13[%c0_48, %c0_49, %c0_50], %88 {strides = array<i32>} : memref<1x32x1xf32, #tpu.memory_space<vmem>>, vector<1x32x1xf32>,
    %c0_i32_51 = arith.constant 0 : i32
    %89 = arith.cmpi eq, %arg1, %c0_i32_51 : i32
    %90 = arith.extui %89 : i1 to i32
    %c0_i32_52 = arith.constant 0 : i32
    %91 = arith.cmpi ne, %90, %c0_i32_52 : i32
    scf.if %91 {
      %c0_53 = arith.constant 0 : index
      %c0_54 = arith.constant 0 : index
      %c0_55 = arith.constant 0 : index
      %92 = vector.load %arg13[%c0_53, %c0_54, %c0_55] : memref<1x32x1xf32, #tpu.memory_space<vmem>>, vector<1x32x1xf32>
      %93 = vector.shape_cast %92 : vector<1x32x1xf32> to vector<32x1xf32>
      %cst_56 = arith.constant 1.000000e+00 : f32
      %94 = vector.broadcast %cst_56 : f32 to vector<32x1xf32>
      %95 = arith.maximumf %93, %94 : vector<32x1xf32>
      %96 = tpu.reciprocal %95 {approx = true} : vector<32x1xf32> -> vector<32x1xf32>
      %c0_57 = arith.constant 0 : index
      %c0_58 = arith.constant 0 : index
      %c0_59 = arith.constant 0 : index
      %97 = vector.load %arg13[%c0_57, %c0_58, %c0_59] : memref<1x32x1xf32, #tpu.memory_space<vmem>>, vector<1x32x1xf32>
      %98 = vector.shape_cast %97 : vector<1x32x1xf32> to vector<32x1xf32>
      %99 = vector.shape_cast %96 : vector<32x1xf32> to vector<1x32x1xf32>
      tpu.vector_store %arg13[%c0_57, %c0_58, %c0_59], %99 {strides = array<i32>} : memref<1x32x1xf32, #tpu.memory_space<vmem>>, vector<1x32x1xf32>,
      %c0_60 = arith.constant 0 : index
      %c0_61 = arith.constant 0 : index
      %c0_62 = arith.constant 0 : index
      %100 = vector.load %arg12[%c0_60, %c0_61, %c0_62] : memref<1x32x128xf32, #tpu.memory_space<vmem>>, vector<1x32x128xf32>
      %101 = vector.shape_cast %100 : vector<1x32x128xf32> to vector<32x128xf32>
      %102 = vector.broadcast %96 : vector<32x1xf32> to vector<32x128xf32>
      %103 = arith.mulf %101, %102 : vector<32x128xf32>
      %c0_63 = arith.constant 0 : index
      %c0_64 = arith.constant 0 : index
      %c0_65 = arith.constant 0 : index
      %104 = vector.load %arg12[%c0_63, %c0_64, %c0_65] : memref<1x32x128xf32, #tpu.memory_space<vmem>>, vector<1x32x128xf32>
      %105 = vector.shape_cast %104 : vector<1x32x128xf32> to vector<32x128xf32>
      %106 = vector.shape_cast %103 : vector<32x128xf32> to vector<1x32x128xf32>
      tpu.vector_store %arg12[%c0_63, %c0_64, %c0_65], %106 {strides = array<i32>} : memref<1x32x128xf32, #tpu.memory_space<vmem>>, vector<1x32x128xf32>,
    } else {
    }
    return
  }
  func.func @transform_0(%arg0: i32, %arg1: i32) -> (i32, i32, i32) {
    %c0_i32 = arith.constant 0 : i32
    %c0_i32_0 = arith.constant 0 : i32
    return %arg0, %arg1, %c0_i32 : i32, i32, i32
  }
  func.func @transform_1(%arg0: i32, %arg1: i32) -> (i32, i32, i32) {
    %c0_i32 = arith.constant 0 : i32
    %c0_i32_0 = arith.constant 0 : i32
    return %arg0, %c0_i32, %arg1 : i32, i32, i32
  }
  func.func @transform_2(%arg0: i32, %arg1: i32) -> (i32, i32) {
    %c0_i32 = arith.constant 0 : i32
    %c0_i32_0 = arith.constant 0 : i32
    %c0_i32_1 = arith.constant 0 : i32
    return %c0_i32, %c0_i32_0 : i32, i32
  }
  func.func @transform_3(%arg0: i32, %arg1: i32) -> (i32, i32) {
    %c0_i32 = arith.constant 0 : i32
    %c0_i32_0 = arith.constant 0 : i32
    %c0_i32_1 = arith.constant 0 : i32
    return %c0_i32, %c0_i32_0 : i32, i32
  }
  func.func @transform_4(%arg0: i32, %arg1: i32) -> (i32, i32) {
    %c0_i32 = arith.constant 0 : i32
    %c0_i32_0 = arith.constant 0 : i32
    %c0_i32_1 = arith.constant 0 : i32
    return %c0_i32, %c0_i32_0 : i32, i32
  }
  func.func @transform_5(%arg0: i32, %arg1: i32) -> (i32, i32) {
    %c0_i32 = arith.constant 0 : i32
    %c0_i32_0 = arith.constant 0 : i32
    %c0_i32_1 = arith.constant 0 : i32
    return %c0_i32, %c0_i32_0 : i32, i32
  }
  func.func @transform_6(%arg0: i32, %arg1: i32) -> (i32, i32) {
    %c0_i32 = arith.constant 0 : i32
    %c0_i32_0 = arith.constant 0 : i32
    %c0_i32_1 = arith.constant 0 : i32
    return %c0_i32, %c0_i32_0 : i32, i32
  }
  func.func @transform_7(%arg0: i32, %arg1: i32) -> (i32, i32) {
    %c0_i32 = arith.constant 0 : i32
    %c0_i32_0 = arith.constant 0 : i32
    %c0_i32_1 = arith.constant 0 : i32
    return %c0_i32, %c0_i32_0 : i32, i32
  }
  func.func @transform_8(%arg0: i32, %arg1: i32) -> (i32, i32) {
    %c0_i32 = arith.constant 0 : i32
    %c0_i32_0 = arith.constant 0 : i32
    %c0_i32_1 = arith.constant 0 : i32
    return %c0_i32, %c0_i32_0 : i32, i32
  }
  func.func @transform_9(%arg0: i32, %arg1: i32) -> (i32, i32, i32) {
    %c0_i32 = arith.constant 0 : i32
    %c0_i32_0 = arith.constant 0 : i32
    return %arg0, %arg1, %c0_i32 : i32, i32, i32
  }
  func.func @transform_10(%arg0: i32, %arg1: i32) -> (i32, i32, i32) {
    %c0_i32 = arith.constant 0 : i32
    %c0_i32_0 = arith.constant 0 : i32
    %c0_i32_1 = arith.constant 0 : i32
    return %arg0, %c0_i32, %c0_i32_0 : i32, i32, i32
  }
  func.func @transform_11(%arg0: i32, %arg1: i32) -> (i32, i32, i32) {
    %c0_i32 = arith.constant 0 : i32
    %c0_i32_0 = arith.constant 0 : i32
    %c0_i32_1 = arith.constant 0 : i32
    return %arg0, %c0_i32, %c0_i32_0 : i32, i32, i32
  }
}

</mosaic_0001>

<bundles_post_ra>
// kernel: tpu_custom_call.1
= control target key start
LH: loop header
LB: loop body
LE: loop exit
PB: predicated region body
PF: predicated region fallthrough
CT: control target
= control target key end

     0   :  { %s5935_s0 = inlined_call_operand.vmem [shape: f32[2,256,3], index: 0, kind: input, shape index: {}]   ;;  %s5936_s1 = inlined_call_operand.vmem [shape: s32[2,1,256], index: 1, kind: input, shape index: {}]   ;;  %s5937_s2 = inlined_call_operand.vmem [shape: f32[3,256], index: 2, kind: input, shape index: {}]   ;;  %s5938_s3 = inlined_call_operand.vmem [shape: f32[1,256], index: 3, kind: input, shape index: {}]   ;;  %s5939_s4 = inlined_call_operand.vmem [shape: bf16[256,128], index: 4, kind: input, shape index: {}]   ;;  %s5940_s5 = inlined_call_operand.vmem [shape: f32[1,128], index: 5, kind: input, shape index: {}]   ;;  %s5941_s6 = inlined_call_operand.vmem [shape: bf16[128,128], index: 6, kind: input, shape index: {}]   ;;  %s5942_s7 = inlined_call_operand.vmem [shape: f32[1,128], index: 7, kind: input, shape index: {}]   ;;  %s5943_s8 = inlined_call_operand.vmem [shape: bf16[256,128], index: 8, kind: input, shape index: {}]   ;;  %s5944_s9 = inlined_call_operand.hbm [shape: bf16[2,256,128], index: 9, kind: output, shape index: {0}]   ;;  %s5945_s10 = inlined_call_operand.hbm [shape: f32[2,32,128], index: 10, kind: output, shape index: {1}]   ;;  %s5946_s11 = inlined_call_operand.vmem [shape: f32[2,32,1], index: 11, kind: output, shape index: {2}]  }
   0x1   :  { %5947 = sst [smem:[#allocation22_spill]] %s5935_s0 }
   0x2   :  { %5948 = sst [smem:[#allocation23_spill]] %s5936_s1 }
   0x3   :  { %5949 = sst [smem:[#allocation24_spill]] %s5937_s2 }
   0x4   :  { %5950 = sst [smem:[#allocation25_spill]] %s5938_s3 }
   0x5   :  { %5951 = sst [smem:[#allocation26_spill]] %s5939_s4 }
   0x6   :  { %5952 = sst [smem:[#allocation27_spill]] %s5940_s5 }
   0x7   :  { %5953 = sst [smem:[#allocation28_spill]] %s5941_s6 }
   0x8   :  { %17 = vsyncpa [#allocation3], 0 }
   0x9   :  { %19 = vsyncpa [#allocation3 + $0x1], 0 }
   0xa   :  { %20 = vsyncpa [#allocation5], 0 }
   0xb   :  { %22 = vsyncpa [#allocation5 + $0x1], 0  ;;  %s4087_s17 = smov 0   ;;  %s4089_s18 = smov 0  }
   0xc   :  { %s4091_s19 = smov 0   ;;  %s4093_s20 = smov 0  }
   0xd   :  { %s4095_s21 = smov 0   ;;  %s4097_s22 = smov 0  }
   0xe LB: > { %s3223_s23 = sadd.s32 4294967295, %s4018_s22   ;;  %s3224_s24 = sadd.s32 4294967294, %s4018_s22   ;;  %s4018_s22 = sphi %s4097_s22, %s28_s22   ;;  %s4014_s21 = sphi %s4095_s21, %s6010_s21   ;;  %s4010_s20 = sphi %s4093_s20, %s6009_s20   ;;  %s4006_s19 = sphi %s4091_s19, %s6008_s19   ;;  %s4002_s18 = sphi %s4089_s18, %s6007_s18   ;;  %s3998_s17 = sphi %s4087_s17, %s6006_s17  }
   0xf   : > { %s40_s25 = sadd.s32 1, %s4014_s21  ;;  %s252_s26 = sadd.s32 1, %s4006_s19 }
  0x10   : > { %p42_p0 = scmp.ge.s32.totalorder %s40_s25, 2  ;;  %p262_p1 = scmp.ne.s32.totalorder %s4006_s19, %s4002_s18 }
  0x11   : > { %p263_p2 = scmp.eq.s32.totalorder %s3223_s23, 1  ;;  %p268_p3 = scmp.ne.s32.totalorder %s4002_s18, %s3998_s17 }
  0x12   : > { %s6012_s25 = smov (%p42_p0, %s40_s25), 0  ;;  %p269_p5 = scmp.eq.s32.totalorder %s3224_s24, 1 }
  0x13   : > { %p4127_p4 = por %p263_p2, %p262_p1  ;;  %s247_s28 = ssub.s32 %s4014_s21, %s6012_s25 }
  0x14   : > { %p3227_p6 = scmp.ge.s32.totalorder %s4018_s22, 1  ;;  %p250_p7 = scmp.eq.s32.totalorder %s247_s28, 0 }
  0x15   : > { %p4134_p8 = por %p269_p5, %p268_p3  ;;  %p385_p9 = scmp.lt.s32.totalorder %s4018_s22, 3 }
  0x16   : > { %s4140_s30 = scalar_select %p250_p7, %s4006_s19, %s252_s26  }
  0x17   : > { %p386_p10 = pnand %p3227_p6, %p385_p9 }
  0x19   : > { %389 = sbr.rel (%p386_p10) target bundleno = 1200 (0x4b0), region = 56 }
  0x1e   : > { %s5956_s2 = sld [smem:[#allocation24_spill]]  ;;  %p448_p11 = scmp.lt.s32.totalorder %s4010_s20, 1  ;;  %vm740_vm0 = vcmask 1042432   ;;  %vm643_vm1 = vcmask 23552   ;;  %vm2760_vm12 = vcmask 7168  }
  0x1f   : > { %s5957_s0 = sld [smem:[#allocation22_spill]] }
  0x20   : > { %s4147_s14 = scalar_select %p448_p11, %s4010_s20, 1 }
  0x21   : > { %s5958_s4 = sld [smem:[#allocation26_spill]] }
  0x22   : > { %s3485_s15 = sshll.u32 %s4147_s14, 8  ;;  %s5959_s3 = sld [smem:[#allocation25_spill]] }
  0x23   : > { %s5977_s6 = sld [smem:[#allocation28_spill]]  ;;  %s3232_s28 = sshll.u32 %s4147_s14, 1 }
  0x24   : > { %v632_v0 = vld [vmem:[%s5956_s2] sm:$0x77]  ;;  %s5984_s5 = sld [smem:[#allocation27_spill]]  ;;  %s3486_s23 = sshll.u32 %s4147_s14, 5 }
  0x25   : > { %640 = vst [vmem:[#allocation1] ss:$2 sm:$0xff] %v632_v0  ;;  %s4153_s24 = scalar_lea.vmem %s5957_s0, %s3485_s15  ;;  %s5477_s15 = sand.u32 1, %s4002_s18  }
  0x26   : > { %v472_v1 = vld [vmem:[%s4153_s24] sm:$0xff]  ;;  %v473_v2 = vld [vmem:[%s4153_s24 + $0x8] sm:$0xff]  ;;  %v474_v10 = vld [vmem:[%s4153_s24 + $0x10] sm:$0xff]  ;;  %s3228_s16 = sshll.u32 %s5477_s15, 7  ;;  %s6005_s1 = sld [smem:[#allocation23_spill]] }
  0x27   : > { %v504_v3 = vfloor.f32 %v472_v1  ;;  %v505_v4 = vfloor.f32 %v473_v2  ;;  %v506_v13 = vfloor.f32 %v474_v10  ;;  %v475_v16 = vld [vmem:[%s4153_s24 + $0x18] sm:$0xff]  ;;  %v476_v21 = vld [vmem:[%s4153_s24 + $0x20] sm:$0xff]  ;;  %v477_v26 = vld [vmem:[%s4153_s24 + $0x28] sm:$0xff]  ;;  %s5817_s12 = scalar_lea.vmem %s5946_s11, %s3486_s23  ;;  %s3527_s14 = sshll.u32 %s4010_s20, 7 }
  0x28   : > { %v507_v18 = vfloor.f32 %v475_v16  ;;  %v508_v23 = vfloor.f32 %v476_v21  ;;  %v509_v28 = vfloor.f32 %v477_v26  ;;  %v478_v31 = vld [vmem:[%s4153_s24 + $0x30] sm:$0xff]  ;;  %v479_v36 = vld [vmem:[%s4153_s24 + $0x38] sm:$0xff]  ;;  %v480_v41 = vld [vmem:[%s4153_s24 + $0x40] sm:$0xff]  ;;  %s3047_s23 = scalar_lea.hbm %s5944_s9, %s3527_s14  ;;  %s3024_s0 = scalar_lea.sflag [#allocation3], %s5477_s15 }
  0x29   : > { %v536_v7 = vadd.f32 0.5, %v504_v3  ;;  %v537_v9 = vadd.f32 0.5, %v505_v4  ;;  %v538_v15 = vadd.f32 0.5, %v506_v13  ;;  %v510_v33 = vfloor.f32 %v478_v31  ;;  %v481_v46 = vld [vmem:[%s4153_s24 + $0x48] sm:$0xff]  ;;  %v482_v51 = vld [vmem:[%s4153_s24 + $0x50] sm:$0xff]  ;;  %v483_v56 = vld [vmem:[%s4153_s24 + $0x58] sm:$0xff] }
  0x2a   : > { %v539_v20 = vadd.f32 0.5, %v507_v18  ;;  %v540_v25 = vadd.f32 0.5, %v508_v23  ;;  %v541_v30 = vadd.f32 0.5, %v509_v28  ;;  %v511_v38 = vfloor.f32 %v479_v36  ;;  %v484_v61 = vld [vmem:[%s4153_s24 + $0x60] sm:$0xff]  ;;  %v489_v28 = vld [vmem:[%s4153_s24 + $0x88] sm:$0xff] }
  0x2b   : > { %v568_v8 = vsub.f32 %v472_v1, %v536_v7  ;;  %v569_v12 = vsub.f32 %v473_v2, %v537_v9  ;;  %v570_v17 = vsub.f32 %v474_v10, %v538_v15  ;;  %v542_v35 = vadd.f32 0.5, %v510_v33  ;;  %v485_v2 = vld [vmem:[%s4153_s24 + $0x68] sm:$0xff]  ;;  %v486_v7 = vld [vmem:[%s4153_s24 + $0x70] sm:$0xff]  ;;  %v4220_v18 = vld [vmem:[%s5958_s4 + $0x20] sm:$0xff] }
  0x2c   : > { %v641_v5 = vld.sshfl [vmem:[#allocation1] sm:$0xff pattern:$0x75316420]  ;;  %v642_v6 = vld.sshfl [vmem:[#allocation1 + $0x8] sm:$0xff pattern:$0x75316420]  ;;  %v571_v22 = vsub.f32 %v475_v16, %v539_v20  ;;  %v572_v27 = vsub.f32 %v476_v21, %v540_v25  ;;  %v573_v32 = vsub.f32 %v477_v26, %v541_v30  ;;  %v512_v43 = vfloor.f32 %v480_v41 }
  0x2d   : > { %3235 = vmatpush.msk.msra.mxu0 %vm740_vm0, %v641_v5  ;;  %3268 = vmatpush.msk.msra.mxu1 %vm740_vm0, %v642_v6  ;;  %v600_v11 = vmul.f32 2.0, %v568_v8  ;;  %v601_v14 = vmul.f32 2.0, %v569_v12  ;;  %v602_v19 = vmul.f32 2.0, %v570_v17  ;;  %v574_v37 = vsub.f32 %v478_v31, %v542_v35  ;;  %v4197_v8 = vld [vmem:[%s5958_s4 + $0x38] sm:$0xff]  ;;  %v4212_v15 = vld [vmem:[%s5958_s4 + $0x28] sm:$0xff]  ;;  %v488_v21 = vld [vmem:[%s4153_s24 + $0x80] sm:$0xff] }
  0x2e   : > { %3624 = vmatpush.msk.msra.mxu3 %vm740_vm0, %v641_v5  ;;  %v603_v24 = vmul.f32 2.0, %v571_v22  ;;  %v604_v29 = vmul.f32 2.0, %v572_v27  ;;  %v605_v34 = vmul.f32 2.0, %v573_v32  ;;  %v543_v40 = vadd.f32 0.5, %v511_v38  ;;  %1711 = vmatpush.bf16.msra.mxu2 %v4197_v8  ;;  %v4227_v22 = vld [vmem:[%s5958_s4 + $0x18] sm:$0xff]  ;;  %v4235_v25 = vld [vmem:[%s5958_s4 + $0x10] sm:$0xff] }
  0x2f   : > { %3236 = vmatmul.msk.f32.vlgmr.msra.gmra.mxu0 %vm643_vm1, %v600_v11  ;;  %3269 = vmatmul.msk.f32.vlgmr.msra.gmra.mxu1 %vm643_vm1, %v600_v11  ;;  %v606_v39 = vmul.f32 2.0, %v574_v37  ;;  %v544_v45 = vadd.f32 0.5, %v512_v43  ;;  %v513_v48 = vfloor.f32 %v481_v46  ;;  %v514_v53 = vfloor.f32 %v482_v51  ;;  %v4205_v11 = vld [vmem:[%s5958_s4 + $0x30] sm:$0xff]  ;;  %v633_v30 = vld [vmem:[%s5959_s3] sm:$0x3] }
  0x30   : > { %3625 = vmatpush.msk.msrb.mxu3 %vm740_vm0, %v642_v6  ;;  %v575_v42 = vsub.f32 %v479_v36, %v543_v40  ;;  %v515_v58 = vfloor.f32 %v483_v56  ;;  %v516_v63 = vfloor.f32 %v484_v61  ;;  %v517_v4 = vfloor.f32 %v485_v2  ;;  %v4253_v33 = vld [vmem:[%s5958_s4] sm:$0xff] }
  0x31   : > { %v576_v47 = vsub.f32 %v480_v41, %v544_v45  ;;  %v545_v50 = vadd.f32 0.5, %v513_v48  ;;  %v546_v55 = vadd.f32 0.5, %v514_v53  ;;  %v518_v10 = vfloor.f32 %v486_v7 }
  0x32   : > { %v607_v44 = vmul.f32 2.0, %v575_v42  ;;  %v547_v60 = vadd.f32 0.5, %v515_v58  ;;  %v548_v1 = vadd.f32 0.5, %v516_v63  ;;  %v549_v6 = vadd.f32 0.5, %v517_v4  ;;  %1712 = vmatpush.bf16.msra.mxu2 %v4205_v11 }
  0x33   : > { %v608_v49 = vmul.f32 2.0, %v576_v47  ;;  %v577_v52 = vsub.f32 %v481_v46, %v545_v50  ;;  %v578_v57 = vsub.f32 %v482_v51, %v546_v55  ;;  %v550_v13 = vadd.f32 0.5, %v518_v10  ;;  %v491_v47 = vld [vmem:[%s4153_s24 + $0x98] sm:$0xff] }
  0x34   : > { %v579_v62 = vsub.f32 %v483_v56, %v547_v60  ;;  %v580_v3 = vsub.f32 %v484_v61, %v548_v1  ;;  %v581_v9 = vsub.f32 %v485_v2, %v549_v6  ;;  %v521_v32 = vfloor.f32 %v489_v28 }
  0x35   : > { %v609_v54 = vmul.f32 2.0, %v577_v52  ;;  %v610_v59 = vmul.f32 2.0, %v578_v57  ;;  %v582_v16 = vsub.f32 %v486_v7, %v550_v13  ;;  %v523_v53 = vfloor.f32 %v491_v47  ;;  %v499_v57 = vld [vmem:[%s4153_s24 + $0xd8] sm:$0xff] }
  0x36   : > { %v611_v0 = vmul.f32 2.0, %v579_v62  ;;  %v612_v5 = vmul.f32 2.0, %v580_v3  ;;  %v613_v12 = vmul.f32 2.0, %v581_v9  ;;  %1713 = vmatpush.bf16.msra.mxu2 %v4212_v15  ;;  %v553_v36 = vadd.f32 0.5, %v521_v32  ;;  %v492_v3 = vld [vmem:[%s4153_s24 + $0xa0] sm:$0xff] }
  0x37   : > { %3237 = vmatmul.msk.f32.gmra.mxu0 %vm643_vm1, %v601_v14  ;;  %3270 = vmatmul.msk.f32.gmra.mxu1 %vm643_vm1, %v601_v14  ;;  %v487_v14 = vld [vmem:[%s4153_s24 + $0x78] sm:$0xff]  ;;  %v531_v60 = vfloor.f32 %v499_v57  ;;  %v555_v61 = vadd.f32 0.5, %v523_v53  ;;  %v524_v10 = vfloor.f32 %v492_v3 }
  0x38   : > { %v519_v17 = vfloor.f32 %v487_v14  ;;  %v585_v41 = vsub.f32 %v489_v28, %v553_v36 }
  0x39   : > { %v587_v7 = vsub.f32 %v491_v47, %v555_v61 }
  0x3a   : > { %v551_v20 = vadd.f32 0.5, %v519_v17  ;;  %1714 = vmatpush.bf16.msra.mxu2 %v4220_v18  ;;  %v617_v45 = vmul.f32 2.0, %v585_v41 }
  0x3c   : > { %v583_v23 = vsub.f32 %v487_v14, %v551_v20  ;;  %v500_v14 = vld [vmem:[%s4153_s24 + $0xe0] sm:$0xff]  ;;  %v619_v20 = vmul.f32 2.0, %v587_v7 }
  0x3d   : > { %v532_v17 = vfloor.f32 %v500_v14 }
  0x3e   : > { %1715 = vmatpush.bf16.msra.mxu2 %v4227_v22  ;;  %v615_v26 = vmul.f32 2.0, %v583_v23 }
  0x3f   : > { %3238 = vmatmul.msk.f32.gmra.mxu0 %vm643_vm1, %v602_v19  ;;  %3271 = vmatmul.msk.f32.gmra.mxu1 %vm643_vm1, %v602_v19  ;;  %v614_v19 = vmul.f32 2.0, %v582_v16  ;;  %v564_v28 = vadd.f32 0.5, %v532_v17 }
  0x42   : > { %1716 = vmatpush.bf16.msra.mxu2 %v4235_v25 }
  0x47   : > { %3239 = vmatmul.msk.f32.gmra.mxu0 %vm643_vm1, %v603_v24  ;;  %3272 = vmatmul.msk.f32.gmra.mxu1 %vm643_vm1, %v603_v24  ;;  %v520_v24 = vfloor.f32 %v488_v21 }
  0x49   : > { %v552_v27 = vadd.f32 0.5, %v520_v24 }
  0x4b   : > { %v584_v31 = vsub.f32 %v488_v21, %v552_v27  ;;  %v556_v21 = vadd.f32 0.5, %v524_v10  ;;  %v493_v27 = vld [vmem:[%s4153_s24 + $0xa8] sm:$0xff] }
  0x4c   : > { %v3516_v10 = vld [vmem:[%s5943_s8 + $0x28] sm:$0xff] }
  0x4d   : > { %v616_v35 = vmul.f32 2.0, %v584_v31 }
  0x4f   : > { %3240 = vmatmul.msk.f32.gmra.mxu0 %vm643_vm1, %v604_v29  ;;  %3273 = vmatmul.msk.f32.gmra.mxu1 %vm643_vm1, %v604_v29  ;;  %v4242_v29 = vld [vmem:[%s5958_s4 + $0x8] sm:$0xff] }
  0x50   : > { %1717 = vmatpush.bf16.msra.mxu2 %v4242_v29 }
  0x54   : > { %1718 = vmatpush.bf16.msra.mxu2 %v4253_v33 }
  0x57   : > { %3241 = vmatmul.msk.f32.gmra.mxu0 %vm643_vm1, %v605_v34  ;;  %3274 = vmatmul.msk.f32.gmra.mxu1 %vm643_vm1, %v605_v34  ;;  %v4255_v34 = vperm.slane %v633_v30, 0 }
  0x5f   : > { %3242 = vmatmul.msk.f32.gmra.mxu0 %vm643_vm1, %v606_v39  ;;  %3275 = vmatmul.msk.f32.gmra.mxu1 %vm643_vm1, %v606_v39  ;;  %v490_v39 = vld [vmem:[%s4153_s24 + $0x90] sm:$0xff] }
  0x60   : > { %v522_v42 = vfloor.f32 %v490_v39 }
  0x62   : > { %v554_v46 = vadd.f32 0.5, %v522_v42 }
  0x67   : > { %3243 = vmatmul.msk.f32.gmra.mxu0 %vm643_vm1, %v607_v44  ;;  %3276 = vmatmul.msk.f32.gmra.mxu1 %vm643_vm1, %v607_v44 }
  0x6f   : > { %3244 = vmatmul.msk.f32.gmra.mxu0 %vm643_vm1, %v608_v49  ;;  %3277 = vmatmul.msk.f32.gmra.mxu1 %vm643_vm1, %v608_v49 }
  0x77   : > { %3245 = vmatmul.msk.f32.gmra.mxu0 %vm643_vm1, %v609_v54  ;;  %3278 = vmatmul.msk.f32.gmra.mxu1 %vm643_vm1, %v609_v54  ;;  %v586_v54 = vsub.f32 %v490_v39, %v554_v46  ;;  %v525_v39 = vfloor.f32 %v493_v27 }
  0x79   : > { %v618_v62 = vmul.f32 2.0, %v586_v54 }
  0x7f   : > { %3246 = vmatmul.msk.f32.gmra.mxu0 %vm643_vm1, %v610_v59  ;;  %3279 = vmatmul.msk.f32.gmra.mxu1 %vm643_vm1, %v610_v59 }
  0x87   : > { %3247 = vmatmul.msk.f32.gmra.mxu0 %vm643_vm1, %v611_v0  ;;  %3280 = vmatmul.msk.f32.gmra.mxu1 %vm643_vm1, %v611_v0  ;;  %v563_v0 = vadd.f32 0.5, %v531_v60 }
  0x89   : > { %v595_v6 = vsub.f32 %v499_v57, %v563_v0 }
  0x8b   : > { %v4294_v13 = vmul.f32 2.0, %v595_v6 }
  0x8d   : > { %3263 = vmatmul.msk.f32.vlgmr.msra.gmra.mxu3 %vm643_vm1, %v4294_v13 }
  0x8e   : > { %3626 = vmatpush.bf16.msra.mxu3 %v4197_v8 }
  0x8f   : > { %3248 = vmatmul.msk.f32.gmra.mxu0 %vm643_vm1, %v612_v5  ;;  %3281 = vmatmul.msk.f32.gmra.mxu1 %vm643_vm1, %v612_v5 }
  0x92   : > { %3627 = vmatpush.bf16.msra.mxu3 %v4205_v11  ;;  %v3518_v11 = vld [vmem:[%s5943_s8 + $0x38] sm:$0xff] }
  0x93   : > { %2510 = vmatpush.bf16.msrb.mxu1 %v3518_v11 }
  0x96   : > { %3628 = vmatpush.bf16.msra.mxu3 %v4212_v15 }
  0x97   : > { %3249 = vmatmul.msk.f32.gmra.mxu0 %vm643_vm1, %v613_v12  ;;  %3282 = vmatmul.msk.f32.gmra.mxu1 %vm643_vm1, %v613_v12 }
  0x9a   : > { %3629 = vmatpush.bf16.msra.mxu3 %v4220_v18  ;;  %v495_v18 = vld [vmem:[%s4153_s24 + $0xb8] sm:$0xff] }
  0x9e   : > { %3630 = vmatpush.bf16.msra.mxu3 %v4227_v22  ;;  %v527_v22 = vfloor.f32 %v495_v18 }
  0x9f   : > { %3250 = vmatmul.msk.f32.gmra.mxu0 %vm643_vm1, %v614_v19  ;;  %3283 = vmatmul.msk.f32.gmra.mxu1 %vm643_vm1, %v614_v19 }
  0xa2   : > { %3631 = vmatpush.bf16.msra.mxu3 %v4235_v25 }
  0xa6   : > { %3632 = vmatpush.bf16.msra.mxu3 %v4242_v29 }
  0xa7   : > { %3251 = vmatmul.msk.f32.gmra.mxu0 %vm643_vm1, %v615_v26  ;;  %3284 = vmatmul.msk.f32.gmra.mxu1 %vm643_vm1, %v615_v26 }
  0xaa   : > { %3633 = vmatpush.bf16.msra.mxu3 %v4253_v33 }
  0xac   : > { %v762_v37 = vpop.f32.mrf.mxu0  ;;  %v4257_v38 = vpop.f32.mrf.mxu1 }
  0xad   : > { %v4262_v40 = vadd.f32 %v762_v37, %v4255_v34  ;;  %v588_v37 = vsub.f32 %v492_v3, %v556_v21 }
  0xaf   : > { %3252 = vmatmul.msk.f32.gmra.mxu0 %vm643_vm1, %v616_v35  ;;  %3285 = vmatmul.msk.f32.gmra.mxu1 %vm643_vm1, %v616_v35  ;;  %v1035_v43 = vmul.f32 0.044715, %v4262_v40  ;;  %v596_v35 = vsub.f32 %v500_v14, %v564_v28  ;;  %v971_v36 = vmul.f32 0.5, %v4262_v40  ;;  %v620_v54 = vmul.f32 2.0, %v588_v37 }
  0xb1   : > { %v1099_v44 = vmul.f32 %v1035_v43, %v4262_v40 }
  0xb3   : > { %v1163_v48 = vmul.f32 %v1099_v44, %v4262_v40  ;;  %v4315_v44 = vmul.f32 2.0, %v596_v35 }
  0xb4   : > { %v765_v49 = vpop.f32.mrf.mxu0  ;;  %v4270_v50 = vpop.f32.mrf.mxu1 }
  0xb5   : > { %v4273_v51 = vadd.f32 %v765_v49, %v4255_v34  ;;  %v1227_v52 = vadd.f32 %v1163_v48, %v4262_v40  ;;  %3264 = vmatmul.msk.f32.gmra.mxu3 %vm643_vm1, %v4315_v44 }
  0xb7   : > { %3253 = vmatmul.msk.f32.gmra.mxu0 %vm643_vm1, %v617_v45  ;;  %3286 = vmatmul.msk.f32.gmra.mxu1 %vm643_vm1, %v617_v45  ;;  %v1037_v55 = vmul.f32 0.044715, %v4273_v51  ;;  %v2350_v56 = vpack.c.bf16 %v4273_v51, %v4262_v40  ;;  %v1291_v59 = vmul.f32 0.7978846, %v1227_v52  ;;  %v973_v42 = vmul.f32 0.5, %v4273_v51  ;;  %v501_v45 = vld [vmem:[%s4153_s24 + $0xe8] sm:$0xff] }
  0xb8   : > { %v533_v49 = vfloor.f32 %v501_v45 }
  0xb9   : > { %v1101_v58 = vmul.f32 %v1037_v55, %v4273_v51  ;;  %3706 = vtanh.f32 %v1291_v59  ;;  %v557_v55 = vadd.f32 0.5, %v525_v39 }
  0xba   : > { %v565_v59 = vadd.f32 0.5, %v533_v49 }
  0xbb   : > { %v1165_v63 = vmul.f32 %v1101_v58, %v4273_v51  ;;  %v3517_v58 = vld [vmem:[%s5943_s8 + $0x30] sm:$0xff]  ;;  %v589_v15 = vsub.f32 %v493_v27, %v557_v55 }
  0xbc   : > { %v768_v1 = vpop.f32.mrf.mxu0  ;;  %v4284_v2 = vpop.f32.mrf.mxu1  ;;  %2511 = vmatpush.bf16.msrb.mxu1 %v3517_v58  ;;  %v597_v3 = vsub.f32 %v501_v45, %v565_v59  ;;  %v3514_v45 = vld [vmem:[%s5943_s8 + $0x18] sm:$0xff]  ;;  %v559_v58 = vadd.f32 0.5, %v527_v22 }
  0xbd   : > { %v4288_v4 = vadd.f32 %v768_v1, %v4255_v34  ;;  %v1229_v5 = vadd.f32 %v1165_v63, %v4273_v51  ;;  %v494_v63 = vld [vmem:[%s4153_s24 + $0xb0] sm:$0xff] }
  0xbe   : > { %v526_v6 = vfloor.f32 %v494_v63 }
  0xbf   : > { %3254 = vmatmul.msk.f32.gmra.mxu0 %vm643_vm1, %v618_v62  ;;  %3287 = vmatmul.msk.f32.gmra.mxu1 %vm643_vm1, %v618_v62  ;;  %v1293_v9 = vmul.f32 0.7978846, %v1229_v5  ;;  %v1039_v12 = vmul.f32 0.044715, %v4288_v4  ;;  %v3707_v19 = vpop.eup %3706  ;;  %v975_v37 = vmul.f32 0.5, %v4288_v4 }
  0xc0   : > { %v1419_v32 = vadd.f32 1.0, %v3707_v19  ;;  %2512 = vmatpush.bf16.msrb.mxu1 %v3516_v10  ;;  %v621_v19 = vmul.f32 2.0, %v589_v15 }
  0xc1   : > { %3708 = vtanh.f32 %v1293_v9  ;;  %v1103_v16 = vmul.f32 %v1039_v12, %v4288_v4  ;;  %v4341_v9 = vmul.f32 2.0, %v597_v3  ;;  %v502_v12 = vld [vmem:[%s4153_s24 + $0xf0] sm:$0xff] }
  0xc2   : > { %v1483_v52 = vmul.f32 %v1419_v32, %v971_v36 }
  0xc3   : > { %v1167_v23 = vmul.f32 %v1103_v16, %v4288_v4  ;;  %v534_v16 = vfloor.f32 %v502_v12  ;;  %3265 = vmatmul.msk.f32.gmra.mxu3 %vm643_vm1, %v4341_v9 }
  0xc4   : > { %v771_v24 = vpop.f32.mrf.mxu0  ;;  %v4302_v26 = vpop.f32.mrf.mxu1 }
  0xc5   : > { %v4306_v30 = vadd.f32 %v771_v24, %v4255_v34  ;;  %v1231_v31 = vadd.f32 %v1167_v23, %v4288_v4  ;;  %v3515_v23 = vld [vmem:[%s5943_s8 + $0x20] sm:$0xff]  ;;  %v566_v24 = vadd.f32 0.5, %v534_v16  ;;  %v3512_v16 = vld [vmem:[%s5943_s8 + $0x8] sm:$0xff] }
  0xc6   : > { %2513 = vmatpush.bf16.msrb.mxu1 %v3515_v23 }
  0xc7   : > { %v3709_v8 = vpop.eup %3708  ;;  %3255 = vmatmul.msk.f32.gmra.mxu0 %vm643_vm1, %v619_v20  ;;  %3288 = vmatmul.msk.f32.gmra.mxu1 %vm643_vm1, %v619_v20  ;;  %v1041_v41 = vmul.f32 0.044715, %v4306_v30  ;;  %v2352_v46 = vpack.c.bf16 %v4306_v30, %v4288_v4  ;;  %v1295_v48 = vmul.f32 0.7978846, %v1231_v31  ;;  %v558_v20 = vadd.f32 0.5, %v526_v6 }
  0xc8   : > { %v1421_v43 = vadd.f32 1.0, %v3709_v8  ;;  %v598_v8 = vsub.f32 %v502_v12, %v566_v24  ;;  %v3511_v24 = vld [vmem:[%s5943_s8] sm:$0xff] }
  0xc9   : > { %v1105_v47 = vmul.f32 %v1041_v41, %v4306_v30  ;;  %3710 = vtanh.f32 %v1295_v48  ;;  %v590_v39 = vsub.f32 %v494_v63, %v558_v20 }
  0xca   : > { %v1485_v53 = vmul.f32 %v1421_v43, %v973_v42  ;;  %v977_v42 = vmul.f32 0.5, %v4306_v30  ;;  %v4368_v11 = vmul.f32 2.0, %v598_v8  ;;  %2514 = vmatpush.bf16.msrb.mxu1 %v3514_v45 }
  0xcb   : > { %v1169_v57 = vmul.f32 %v1105_v47, %v4306_v30  ;;  %v503_v47 = vld [vmem:[%s4153_s24 + $0xf8] sm:$0xff] }
  0xcc   : > { %v774_v60 = vpop.f32.mrf.mxu0  ;;  %v4331_v61 = vpop.f32.mrf.mxu1  ;;  %v1547_v62 = vpack.c.bf16 %v1485_v53, %v1483_v52  ;;  %v535_v53 = vfloor.f32 %v503_v47  ;;  %3266 = vmatmul.msk.f32.gmra.mxu3 %vm643_vm1, %v4368_v11 }
  0xcd   : > { %v4335_v0 = vadd.f32 %v774_v60, %v4255_v34  ;;  %v1233_v1 = vadd.f32 %v1169_v57, %v4306_v30  ;;  %v622_v57 = vmul.f32 2.0, %v590_v39  ;;  %v3513_v60 = vld [vmem:[%s5943_s8 + $0x10] sm:$0xff] }
  0xce   : > { %1719 = vmatmul.bf16.vlgmr.msra.gmra.mxu2 %v1547_v62  ;;  %v567_v62 = vadd.f32 0.5, %v535_v53  ;;  %2515 = vmatpush.bf16.msrb.mxu1 %v3513_v60  ;;  %v498_v60 = vld [vmem:[%s4153_s24 + $0xd0] sm:$0xff] }
  0xcf   : > { %3256 = vmatmul.msk.f32.gmra.mxu0 %vm643_vm1, %v620_v54  ;;  %3289 = vmatmul.msk.f32.gmra.mxu1 %vm643_vm1, %v620_v54  ;;  %v1297_v5 = vmul.f32 0.7978846, %v1233_v1  ;;  %v1043_v7 = vmul.f32 0.044715, %v4335_v0  ;;  %v3711_v17 = vpop.eup %3710  ;;  %v496_v1 = vld [vmem:[%s4153_s24 + $0xc0] sm:$0xff] }
  0xd0   : > { %v1423_v35 = vadd.f32 1.0, %v3711_v17  ;;  %v528_v12 = vfloor.f32 %v496_v1 }
  0xd1   : > { %3712 = vtanh.f32 %v1297_v5  ;;  %v1107_v14 = vmul.f32 %v1043_v7, %v4335_v0  ;;  %v599_v5 = vsub.f32 %v503_v47, %v567_v62  ;;  %v591_v7 = vsub.f32 %v495_v18, %v559_v58  ;;  %v497_v18 = vld [vmem:[%s4153_s24 + $0xc8] sm:$0xff]  ;;  %s5488_s24 = scalar_lea.vmem [#allocation2], %s3228_s16  ;;  %s464_s16 = scalar_lea.vmem %s6005_s1, %s3232_s28 }
  0xd2   : > { %v1487_v54 = vmul.f32 %v1423_v35, %v975_v37  ;;  %2516 = vmatpush.bf16.msrb.mxu1 %v3512_v16  ;;  %v529_v37 = vfloor.f32 %v497_v18  ;;  %s3048_s26 = sshll.u32 %s5488_s24, 4  ;;  %s3050_s28 = sshll.u32 %s3047_s23, 4  ;;  %s3049_s26 = int_to_ptr.vmem [resolvable:$true] %s3048_s26  ;;  %s3051_s28 = int_to_ptr.hbm [resolvable:$true] %s3050_s28 }
  0xd3   : > { %v1171_v21 = vmul.f32 %v1107_v14, %v4335_v0  ;;  %v4395_v14 = vmul.f32 2.0, %v599_v5  ;;  %v623_v20 = vmul.f32 2.0, %v591_v7  ;;  %s3922_s1 = sshra.s32 %s3051_s28, 4  ;;  %s3923_s1 = int_to_ptr.hbm [resolvable:$true] %s3922_s1 }
  0xd4   : > { %v777_v27 = vpop.f32.mrf.mxu0  ;;  %v4360_v31 = vpop.f32.mrf.mxu1  ;;  %s3924_s2 = scalar_lea.hbm %s3923_s1, 128  ;;  %p3929_p1 = scmp.lt.s32.totalorder %s3923_s1, %s5944_s9 }
  0xd5   : > { %v4358_v28 = vadd.f32 %v777_v27, %v4255_v34  ;;  %v1235_v32 = vadd.f32 %v1171_v21, %v4335_v0  ;;  %3267 = vmatmul.msk.f32.gmra.mxu3 %vm643_vm1, %v4395_v14  ;;  %v560_v21 = vadd.f32 0.5, %v528_v12  ;;  %p3925_p12 = scmp.ne.s32.totalorder %s3923_s1, %s3924_s2 }
  0xd6   : > { %2517 = vmatpush.bf16.msrb.mxu1 %v3511_v24 }
  0xd7   : > { %v3713_v36 = vpop.eup %3712  ;;  %3257 = vmatmul.msk.f32.gmra.mxu0 %vm643_vm1, %v621_v19  ;;  %3290 = vmatmul.msk.f32.gmra.mxu1 %vm643_vm1, %v621_v19  ;;  %v1045_v41 = vmul.f32 0.044715, %v4358_v28  ;;  %v2354_v48 = vpack.c.bf16 %v4358_v28, %v4335_v0  ;;  %v1299_v52 = vmul.f32 0.7978846, %v1235_v32  ;;  %p3926_p13 = pnand %p3925_p12, %p4127_p4 }
  0xd8   : > { %v1425_v43 = vadd.f32 1.0, %v3713_v36  ;;  %v592_v36 = vsub.f32 %v496_v1, %v560_v21  ;;  %v530_v1 = vfloor.f32 %v498_v60 }
  0xd9   : > { %v1109_v49 = vmul.f32 %v1045_v41, %v4358_v28  ;;  %3714 = vtanh.f32 %v1299_v52  ;;  %v979_v41 = vmul.f32 0.5, %v4335_v0  ;;  %p3927_p0 = pneg %p3926_p13 }
  0xda   : > { %v1489_v55 = vmul.f32 %v1425_v43, %v977_v42  ;;  %v981_v42 = vmul.f32 0.5, %v4358_v28 }
  0xdb   : > { %v1173_v59 = vmul.f32 %v1109_v49, %v4358_v28 }
  0xdc   : > { %v780_v25 = vpop.f32.mrf.mxu0  ;;  %v1549_v63 = vpack.c.bf16 %v1489_v55, %v1487_v54  ;;  %v4390_v6 = vpop.f32.mrf.mxu1  ;;  %v624_v54 = vmul.f32 2.0, %v592_v36  ;;  %v561_v55 = vadd.f32 0.5, %v529_v37 }
  0xdd   : > { %v4387_v3 = vadd.f32 %v780_v25, %v4255_v34  ;;  %v1237_v15 = vadd.f32 %v1173_v59, %v4358_v28  ;;  %3296 = vmatmul.msk.f32.vlgmr.msrb.gmra.mxu3 %vm643_vm1, %v4294_v13 }
  0xde   : > { %1724 = vmatmul.bf16.gmra.mxu2 %v1549_v63  ;;  %v593_v63 = vsub.f32 %v497_v18, %v561_v55 }
  0xdf   : > { %3258 = vmatmul.msk.f32.gmra.mxu0 %vm643_vm1, %v622_v57  ;;  %3291 = vmatmul.msk.f32.gmra.mxu1 %vm643_vm1, %v622_v57  ;;  %v1301_v10 = vmul.f32 0.7978846, %v1237_v15  ;;  %v1047_v29 = vmul.f32 0.044715, %v4387_v3  ;;  %v3715_v19 = vpop.eup %3714  ;;  %v983_v18 = vmul.f32 0.5, %v4387_v3 }
  0xe0   : > { %v1427_v35 = vadd.f32 1.0, %v3715_v19  ;;  %v625_v12 = vmul.f32 2.0, %v593_v63 }
  0xe1   : > { %3716 = vtanh.f32 %v1301_v10  ;;  %v1111_v17 = vmul.f32 %v1047_v29, %v4387_v3  ;;  %v562_v29 = vadd.f32 0.5, %v530_v1 }
  0xe2   : > { %v1491_v52 = vmul.f32 %v1427_v35, %v979_v41 }
  0xe3   : > { %v1175_v23 = vmul.f32 %v1111_v17, %v4387_v3 }
  0xe4   : > { %v783_v27 = vpop.f32.mrf.mxu0  ;;  %v4420_v45 = vpop.f32.mrf.mxu1 }
  0xe5   : > { %v4410_v33 = vadd.f32 %v783_v27, %v4255_v34  ;;  %v1239_v32 = vadd.f32 %v1175_v23, %v4387_v3  ;;  %3297 = vmatmul.msk.f32.gmra.mxu3 %vm643_vm1, %v4315_v44  ;;  %v594_v44 = vsub.f32 %v498_v60, %v562_v29 }
  0xe7   : > { %v3717_v8 = vpop.eup %3716  ;;  %3259 = vmatmul.msk.f32.gmra.mxu0 %vm643_vm1, %v623_v20  ;;  %3292 = vmatmul.msk.f32.gmra.mxu1 %vm643_vm1, %v623_v20  ;;  %v1049_v39 = vmul.f32 0.044715, %v4410_v33  ;;  %v2356_v22 = vpack.c.bf16 %v4410_v33, %v4387_v3  ;;  %v1303_v49 = vmul.f32 0.7978846, %v1239_v32  ;;  %v985_v32 = vmul.f32 0.5, %v4410_v33 }
  0xe8   : > { %v1429_v43 = vadd.f32 1.0, %v3717_v8  ;;  %v626_v41 = vmul.f32 2.0, %v594_v44 }
  0xe9   : > { %v1113_v47 = vmul.f32 %v1049_v39, %v4410_v33  ;;  %3718 = vtanh.f32 %v1303_v49 }
  0xea   : > { %v1493_v53 = vmul.f32 %v1429_v43, %v981_v42 }
  0xeb   : > { %v1177_v57 = vmul.f32 %v1113_v47, %v4410_v33 }
  0xec   : > { %v786_v58 = vpop.f32.mrf.mxu0  ;;  %v1551_v59 = vpack.c.bf16 %v1493_v53, %v1491_v52  ;;  %v4437_v10 = vpop.f32.mrf.mxu1 }
  0xed   : > { %v4428_v62 = vadd.f32 %v786_v58, %v4255_v34  ;;  %v1241_v25 = vadd.f32 %v1177_v57, %v4410_v33  ;;  %3298 = vmatmul.msk.f32.gmra.mxu3 %vm643_vm1, %v4341_v9 }
  0xee   : > { %1729 = vmatmul.bf16.gmra.mxu2 %v1551_v59 }
  0xef   : > { %3260 = vmatmul.msk.f32.gmra.mxu0 %vm643_vm1, %v624_v54  ;;  %3293 = vmatmul.msk.f32.gmra.mxu1 %vm643_vm1, %v624_v54  ;;  %v1305_v13 = vmul.f32 0.7978846, %v1241_v25  ;;  %v1051_v15 = vmul.f32 0.044715, %v4428_v62  ;;  %v3719_v7 = vpop.eup %3718 }
  0xf0   : > { %v1431_v21 = vadd.f32 1.0, %v3719_v7 }
  0xf1   : > { %3720 = vtanh.f32 %v1305_v13  ;;  %v1115_v5 = vmul.f32 %v1051_v15, %v4428_v62 }
  0xf2   : > { %v1495_v37 = vmul.f32 %v1431_v21, %v983_v18 }
  0xf3   : > { %v1179_v16 = vmul.f32 %v1115_v5, %v4428_v62  ;;  %v987_v5 = vmul.f32 0.5, %v4428_v62 }
  0xf4   : > { %v789_v17 = vpop.f32.mrf.mxu0  ;;  %v4455_v49 = vpop.f32.mrf.mxu1 }
  0xf5   : > { %v4441_v19 = vadd.f32 %v789_v17, %v4255_v34  ;;  %v1243_v20 = vadd.f32 %v1179_v16, %v4428_v62  ;;  %3299 = vmatmul.msk.f32.gmra.mxu3 %vm643_vm1, %v4368_v11 }
  0xf7   : > { %v3721_v23 = vpop.eup %3720  ;;  %3261 = vmatmul.msk.f32.gmra.mxu0 %vm643_vm1, %v625_v12  ;;  %3294 = vmatmul.msk.f32.gmra.mxu1 %vm643_vm1, %v625_v12  ;;  %v1053_v24 = vmul.f32 0.044715, %v4441_v19  ;;  %v2358_v27 = vpack.c.bf16 %v4441_v19, %v4428_v62  ;;  %v1307_v36 = vmul.f32 0.7978846, %v1243_v20  ;;  %v989_v7 = vmul.f32 0.5, %v4441_v19 }
  0xf8   : > { %v1433_v35 = vadd.f32 1.0, %v3721_v23 }
  0xf9   : > { %v1117_v8 = vmul.f32 %v1053_v24, %v4441_v19  ;;  %3722 = vtanh.f32 %v1307_v36 }
  0xfa   : > { %v1497_v39 = vmul.f32 %v1433_v35, %v985_v32 }
  0xfb   : > { %v1181_v42 = vmul.f32 %v1117_v8, %v4441_v19 }
  0xfc   : > { %v792_v43 = vpop.f32.mrf.mxu0  ;;  %v1553_v47 = vpack.c.bf16 %v1497_v39, %v1495_v37  ;;  %v4472_v1 = vpop.f32.mrf.mxu1 }
  0xfd   : > { %v4458_v52 = vadd.f32 %v792_v43, %v4255_v34  ;;  %v1245_v53 = vadd.f32 %v1181_v42, %v4441_v19  ;;  %3300 = vmatmul.msk.f32.gmra.mxu3 %vm643_vm1, %v4395_v14 }
  0xfe   : > { %1734 = vmatmul.bf16.gmra.mxu2 %v1553_v47 }
  0xff   : > { %3262 = vmatmul.msk.f32.gmra.mxu0 %vm643_vm1, %v626_v41  ;;  %3295 = vmatmul.msk.f32.gmra.mxu1 %vm643_vm1, %v626_v41  ;;  %v1309_v54 = vmul.f32 0.7978846, %v1245_v53  ;;  %v1055_v9 = vmul.f32 0.044715, %v4458_v52  ;;  %v3723_v57 = vpop.eup %3722  ;;  %v991_v47 = vmul.f32 0.5, %v4458_v52 }
 0x100   : > { %v1435_v63 = vadd.f32 1.0, %v3723_v57 }
 0x101   : > { %3724 = vtanh.f32 %v1309_v54  ;;  %v1119_v55 = vmul.f32 %v1055_v9, %v4458_v52 }
 0x102   : > { %v1499_v17 = vmul.f32 %v1435_v63, %v987_v5 }
 0x103   : > { %v1183_v58 = vmul.f32 %v1119_v55, %v4458_v52 }
 0x104   : > { %v795_v59 = vpop.f32.mrf.mxu0  ;;  %v4491_v18 = vpop.f32.mrf.mxu1 }
 0x105   : > { %v4469_v60 = vadd.f32 %v795_v59, %v4255_v34  ;;  %v1247_v25 = vadd.f32 %v1183_v58, %v4458_v52 }
 0x107   : > { %v3725_v13 = vpop.eup %3724  ;;  %2518 = vmatmul.bf16.vlgmr.msrb.gmra.mxu1 %v2350_v56  ;;  %v1057_v15 = vmul.f32 0.044715, %v4469_v60  ;;  %v2360_v11 = vpack.c.bf16 %v4469_v60, %v4458_v52  ;;  %v1311_v16 = vmul.f32 0.7978846, %v1247_v25  ;;  %v993_v53 = vmul.f32 0.5, %v4469_v60 }
 0x108   : > { %v1437_v12 = vadd.f32 1.0, %v3725_v13 }
 0x109   : > { %v1121_v29 = vmul.f32 %v1057_v15, %v4469_v60  ;;  %3726 = vtanh.f32 %v1311_v16 }
 0x10a   : > { %v1501_v20 = vmul.f32 %v1437_v12, %v989_v7 }
 0x10b   : > { %v1185_v40 = vmul.f32 %v1121_v29, %v4469_v60 }
 0x10c   : > { %v798_v51 = vpop.f32.mrf.mxu0  ;;  %v1555_v56 = vpack.c.bf16 %v1501_v20, %v1499_v17  ;;  %v4508_v59 = vpop.f32.mrf.mxu1 }
 0x10d   : > { %v4487_v21 = vadd.f32 %v798_v51, %v4255_v34  ;;  %v1249_v23 = vadd.f32 %v1185_v40, %v4469_v60 }
 0x10e   : > { %1739 = vmatmul.bf16.gmra.mxu2 %v1555_v56 }
 0x10f   : > { %v1313_v44 = vmul.f32 0.7978846, %v1249_v23  ;;  %v1059_v24 = vmul.f32 0.044715, %v4487_v21  ;;  %v3727_v14 = vpop.eup %3726 }
 0x110   : > { %v1439_v39 = vadd.f32 1.0, %v3727_v14 }
 0x111   : > { %3728 = vtanh.f32 %v1313_v44  ;;  %v1123_v32 = vmul.f32 %v1059_v24, %v4487_v21  ;;  %v995_v44 = vmul.f32 0.5, %v4487_v21 }
 0x112   : > { %v1503_v57 = vmul.f32 %v1439_v39, %v991_v47 }
 0x113   : > { %v1187_v35 = vmul.f32 %v1123_v32, %v4487_v21 }
 0x114   : > { %v801_v8 = vpop.f32.mrf.mxu0  ;;  %v4518_v16 = vpop.f32.mrf.mxu1 }
 0x115   : > { %v4496_v36 = vadd.f32 %v801_v8, %v4255_v34  ;;  %v1251_v37 = vadd.f32 %v1187_v35, %v4487_v21 }
 0x117   : > { %v3729_v41 = vpop.eup %3728  ;;  %2523 = vmatmul.bf16.gmra.mxu1 %v2352_v46  ;;  %v1061_v42 = vmul.f32 0.044715, %v4496_v36  ;;  %v2362_v43 = vpack.c.bf16 %v4496_v36, %v4487_v21  ;;  %v1315_v55 = vmul.f32 0.7978846, %v1251_v37  ;;  %v997_v24 = vmul.f32 0.5, %v4496_v36 }
 0x118   : > { %v1441_v54 = vadd.f32 1.0, %v3729_v41 }
 0x119   : > { %v1125_v9 = vmul.f32 %v1061_v42, %v4496_v36  ;;  %3730 = vtanh.f32 %v1315_v55 }
 0x11a   : > { %v1505_v58 = vmul.f32 %v1441_v54, %v993_v53 }
 0x11b   : > { %v1189_v4 = vmul.f32 %v1125_v9, %v4496_v36 }
 0x11c   : > { %v804_v30 = vpop.f32.mrf.mxu0  ;;  %v1557_v46 = vpack.c.bf16 %v1505_v58, %v1503_v57  ;;  %v4538_v42 = vpop.f32.mrf.mxu1 }
 0x11d   : > { %v4512_v25 = vadd.f32 %v804_v30, %v4255_v34  ;;  %v1253_v63 = vadd.f32 %v1189_v4, %v4496_v36 }
 0x11e   : > { %1744 = vmatmul.bf16.gmra.mxu2 %v1557_v46 }
 0x11f   : > { %v1317_v13 = vmul.f32 0.7978846, %v1253_v63  ;;  %v1063_v15 = vmul.f32 0.044715, %v4512_v25  ;;  %v3731_v7 = vpop.eup %3730 }
 0x120   : > { %v1443_v40 = vadd.f32 1.0, %v3731_v7 }
 0x121   : > { %3732 = vtanh.f32 %v1317_v13  ;;  %v1127_v5 = vmul.f32 %v1063_v15, %v4512_v25  ;;  %v999_v15 = vmul.f32 0.5, %v4512_v25 }
 0x122   : > { %v1507_v8 = vmul.f32 %v1443_v40, %v995_v44 }
 0x123   : > { %v1191_v12 = vmul.f32 %v1127_v5, %v4512_v25 }
 0x124   : > { %v807_v29 = vpop.f32.mrf.mxu0 }
 0x125   : > { %v4521_v17 = vadd.f32 %v807_v29, %v4255_v34  ;;  %v1255_v20 = vadd.f32 %v1191_v12, %v4512_v25  ;;  %v4555_v12 = vpop.f32.mrf.mxu1 }
 0x127   : > { %v3733_v51 = vpop.eup %3732  ;;  %2528 = vmatmul.bf16.gmra.mxu1 %v2354_v48  ;;  %v1065_v56 = vmul.f32 0.044715, %v4521_v17  ;;  %v2364_v23 = vpack.c.bf16 %v4521_v17, %v4512_v25  ;;  %v1319_v35 = vmul.f32 0.7978846, %v1255_v20  ;;  %v1001_v5 = vmul.f32 0.5, %v4521_v17 }
 0x128   : > { %v1445_v32 = vadd.f32 1.0, %v3733_v51 }
 0x129   : > { %v1129_v14 = vmul.f32 %v1065_v56, %v4521_v17  ;;  %3734 = vtanh.f32 %v1319_v35 }
 0x12a   : > { %v1509_v37 = vmul.f32 %v1445_v32, %v997_v24 }
 0x12b   : > { %v1193_v39 = vmul.f32 %v1129_v14, %v4521_v17 }
 0x12c   : > { %v810_v41 = vpop.f32.mrf.mxu0  ;;  %v1559_v0 = vpack.c.bf16 %v1509_v37, %v1507_v8 }
 0x12d   : > { %v4535_v28 = vadd.f32 %v810_v41, %v4255_v34  ;;  %v1257_v48 = vadd.f32 %v1193_v39, %v4521_v17  ;;  %v4565_v8 = vpop.f32.mrf.mxu1 }
 0x12e   : > { %1749 = vmatmul.bf16.gmra.mxu2 %v1559_v0 }
 0x12f   : > { %v1321_v47 = vmul.f32 0.7978846, %v1257_v48  ;;  %v1067_v53 = vmul.f32 0.044715, %v4535_v28  ;;  %v3735_v9 = vpop.eup %3734 }
 0x130   : > { %v1447_v30 = vadd.f32 1.0, %v3735_v9  ;;  %v1003_v9 = vmul.f32 0.5, %v4535_v28 }
 0x131   : > { %3736 = vtanh.f32 %v1321_v47  ;;  %v1131_v54 = vmul.f32 %v1067_v53, %v4535_v28 }
 0x132   : > { %v1511_v40 = vmul.f32 %v1447_v30, %v999_v15 }
 0x133   : > { %v1195_v55 = vmul.f32 %v1131_v54, %v4535_v28 }
 0x134   : > { %v813_v57 = vpop.f32.mrf.mxu0 }
 0x135   : > { %v4544_v58 = vadd.f32 %v813_v57, %v4255_v34  ;;  %v1259_v4 = vadd.f32 %v1195_v55, %v4535_v28 }
 0x137   : > { %v3737_v46 = vpop.eup %3736  ;;  %2533 = vmatmul.bf16.gmra.mxu1 %v2356_v22  ;;  %v1069_v63 = vmul.f32 0.044715, %v4544_v58  ;;  %v2366_v13 = vpack.c.bf16 %v4544_v58, %v4535_v28  ;;  %v1323_v20 = vmul.f32 0.7978846, %v1259_v4  ;;  %v1005_v55 = vmul.f32 0.5, %v4544_v58  ;;  %v3501_v28 = vld [vmem:[%s5958_s4 + $0x70] sm:$0xff] }
 0x138   : > { %v1449_v7 = vadd.f32 1.0, %v3737_v46 }
 0x139   : > { %v1133_v29 = vmul.f32 %v1069_v63, %v4544_v58  ;;  %3738 = vtanh.f32 %v1323_v20 }
 0x13a   : > { %v1513_v51 = vmul.f32 %v1449_v7, %v1001_v5  ;;  %v4582_v5 = vpop.f32.mrf.mxu3 }
 0x13b   : > { %v1197_v3 = vmul.f32 %v1133_v29, %v4544_v58 }
 0x13c   : > { %v816_v33 = vpop.f32.mrf.mxu0  ;;  %v1561_v22 = vpack.c.bf16 %v1513_v51, %v1511_v40 }
 0x13d   : > { %v4560_v56 = vadd.f32 %v816_v33, %v4255_v34  ;;  %v1261_v44 = vadd.f32 %v1197_v3, %v4544_v58 }
 0x13e   : > { %1754 = vmatmul.bf16.gmra.mxu2 %v1561_v22 }
 0x13f   : > { %v1325_v24 = vmul.f32 0.7978846, %v1261_v44  ;;  %v1071_v32 = vmul.f32 0.044715, %v4560_v56  ;;  %v3739_v35 = vpop.eup %3738 }
 0x140   : > { %v1451_v48 = vadd.f32 1.0, %v3739_v35 }
 0x141   : > { %3740 = vtanh.f32 %v1325_v24  ;;  %v1135_v14 = vmul.f32 %v1071_v32, %v4560_v56 }
 0x142   : > { %v1515_v46 = vmul.f32 %v1451_v48, %v1003_v9  ;;  %v846_v32 = vpop.f32.mrf.mxu3 }
 0x143   : > { %v1199_v37 = vmul.f32 %v1135_v14, %v4560_v56 }
 0x144   : > { %v819_v39 = vpop.f32.mrf.mxu0 }
 0x145   : > { %v4569_v41 = vadd.f32 %v819_v39, %v4255_v34  ;;  %v1263_v0 = vadd.f32 %v1199_v37, %v4560_v56 }
 0x147   : > { %v3741_v47 = vpop.eup %3740  ;;  %2538 = vmatmul.bf16.gmra.mxu1 %v2358_v27  ;;  %v1073_v53 = vmul.f32 0.044715, %v4569_v41  ;;  %v2368_v54 = vpack.c.bf16 %v4569_v41, %v4560_v56  ;;  %v1327_v30 = vmul.f32 0.7978846, %v1263_v0  ;;  %v4584_v27 = vpop.f32.mrf.mxu1 }
 0x148   : > { %v1453_v57 = vadd.f32 1.0, %v3741_v47  ;;  %v1007_v47 = vmul.f32 0.5, %v4560_v56 }
 0x149   : > { %v1137_v4 = vmul.f32 %v1073_v53, %v4569_v41  ;;  %3742 = vtanh.f32 %v1327_v30  ;;  %v1009_v53 = vmul.f32 0.5, %v4569_v41 }
 0x14a   : > { %v1517_v63 = vmul.f32 %v1453_v57, %v1005_v55 }
 0x14b   : > { %v1201_v15 = vmul.f32 %v1137_v4, %v4569_v41 }
 0x14c   : > { %v822_v62 = vpop.f32.mrf.mxu0  ;;  %v1563_v19 = vpack.c.bf16 %v1517_v63, %v1515_v46 }
 0x14d   : > { %v4587_v7 = vadd.f32 %v822_v62, %v4255_v34  ;;  %v1265_v29 = vadd.f32 %v1201_v15, %v4569_v41  ;;  %v3526_v62 = vld [vmem:[%s5943_s8 + $0x78] sm:$0xff] }
 0x14e   : > { %1759 = vmatmul.bf16.gmra.mxu2 %v1563_v19 }
 0x14f   : > { %v1329_v20 = vmul.f32 0.7978846, %v1265_v29  ;;  %v1075_v40 = vmul.f32 0.044715, %v4587_v7  ;;  %v3743_v33 = vpop.eup %3742  ;;  %v4599_v39 = vpop.f32.mrf.mxu1  ;;  %2599 = vmatpush.bf16.msrb.mxu2 %v3526_v62 }
 0x150   : > { %v1455_v35 = vadd.f32 1.0, %v3743_v33  ;;  %v849_v29 = vpop.f32.mrf.mxu3 }
 0x151   : > { %v4591_v51 = vpop.f32.mrf.mxu2  ;;  %3744 = vtanh.f32 %v1329_v20  ;;  %v1139_v3 = vmul.f32 %v1075_v40, %v4587_v7 }
 0x152   : > { %v1519_v30 = vmul.f32 %v1455_v35, %v1007_v47 }
 0x153   : > { %v1203_v22 = vmul.f32 %v1139_v3, %v4587_v7 }
 0x154   : > { %v825_v44 = vpop.f32.mrf.mxu0 }
 0x155   : > { %v4596_v24 = vadd.f32 %v825_v44, %v4255_v34  ;;  %v1267_v14 = vadd.f32 %v1203_v22, %v4587_v7  ;;  %v3525_v22 = vld [vmem:[%s5943_s8 + $0x70] sm:$0xff] }
 0x156   : > { %2600 = vmatpush.bf16.msrb.mxu2 %v3525_v22 }
 0x157   : > { %v3745_v37 = vpop.eup %3744  ;;  %2543 = vmatmul.bf16.gmra.mxu1 %v2360_v11  ;;  %v1077_v0 = vmul.f32 0.044715, %v4596_v24  ;;  %v1331_v4 = vmul.f32 0.7978846, %v1267_v14  ;;  %v4621_v40 = vpop.f32.mrf.mxu1 }
 0x158   : > { %v1457_v9 = vadd.f32 1.0, %v3745_v37  ;;  %v852_v21 = vpop.f32.mrf.mxu3 }
 0x159   : > { %v4609_v55 = vpop.f32.mrf.mxu2  ;;  %v1141_v57 = vmul.f32 %v1077_v0, %v4596_v24  ;;  %3746 = vtanh.f32 %v1331_v4 }
 0x15a   : > { %v1521_v46 = vmul.f32 %v1457_v9, %v1009_v53  ;;  %v3524_v53 = vld [vmem:[%s5943_s8 + $0x68] sm:$0xff] }
 0x15b   : > { %v1205_v52 = vmul.f32 %v1141_v57, %v4596_v24  ;;  %2601 = vmatpush.bf16.msrb.mxu2 %v3524_v53 }
 0x15c   : > { %v828_v60 = vpop.f32.mrf.mxu0  ;;  %v1565_v11 = vpack.c.bf16 %v1521_v46, %v1519_v30  ;;  %v1011_v30 = vmul.f32 0.5, %v4587_v7  ;;  %v1013_v46 = vmul.f32 0.5, %v4596_v24 }
 0x15d   : > { %v4614_v63 = vadd.f32 %v828_v60, %v4255_v34  ;;  %v1269_v15 = vadd.f32 %v1205_v52, %v4596_v24 }
 0x15e   : > { %1764 = vmatmul.bf16.gmra.mxu2 %v1565_v11  ;;  %v4648_v11 = vadd.f32 %v846_v32, %v4255_v34 }
 0x15f   : > { %v1333_v19 = vmul.f32 0.7978846, %v1269_v15  ;;  %v1079_v20 = vmul.f32 0.044715, %v4614_v63  ;;  %v3747_v44 = vpop.eup %3746  ;;  %v4651_v15 = vadd.f32 %v849_v29, %v4255_v34 }
 0x160   : > { %v1459_v47 = vadd.f32 1.0, %v3747_v44 }
 0x161   : > { %v4623_v3 = vpop.f32.mrf.mxu2  ;;  %3748 = vtanh.f32 %v1333_v19  ;;  %v1143_v33 = vmul.f32 %v1079_v20, %v4614_v63  ;;  %v3523_v20 = vld [vmem:[%s5943_s8 + $0x60] sm:$0xff] }
 0x162   : > { %v1523_v62 = vmul.f32 %v1459_v47, %v1011_v30  ;;  %2602 = vmatpush.bf16.msrb.mxu2 %v3523_v20  ;;  %v3522_v47 = vld [vmem:[%s5943_s8 + $0x58] sm:$0xff] }
 0x163   : > { %v1207_v14 = vmul.f32 %v1143_v33, %v4614_v63  ;;  %v4657_v33 = vpop.f32.mrf.mxu1 }
 0x164   : > { %v831_v35 = vpop.f32.mrf.mxu0 }
 0x165   : > { %v4631_v37 = vadd.f32 %v831_v35, %v4255_v34  ;;  %v1271_v0 = vadd.f32 %v1207_v14, %v4614_v63  ;;  %v4664_v14 = vadd.f32 %v4582_v5, %v4255_v34 }
 0x166   : > { %2603 = vmatpush.bf16.msrb.mxu2 %v3522_v47 }
 0x167   : > { %v3749_v9 = vpop.eup %3748  ;;  %2548 = vmatmul.bf16.gmra.mxu1 %v2362_v43  ;;  %v1081_v57 = vmul.f32 0.044715, %v4631_v37  ;;  %v1335_v43 = vmul.f32 0.7978846, %v1271_v0 }
 0x168   : > { %v1461_v52 = vadd.f32 1.0, %v3749_v9 }
 0x169   : > { %v4645_v60 = vpop.f32.mrf.mxu2  ;;  %v1145_v36 = vmul.f32 %v1081_v57, %v4631_v37  ;;  %3750 = vtanh.f32 %v1335_v43  ;;  %v1089_v57 = vmul.f32 0.044715, %v4664_v14 }
 0x16a   : > { %5960 = vst [vmem:[#allocation8_spill] sm:$0xff] %v4645_v60  ;;  %v1525_v19 = vmul.f32 %v1461_v52, %v1013_v46  ;;  %v3521_v46 = vld [vmem:[%s5943_s8 + $0x50] sm:$0xff] }
 0x16b   : > { %v1209_v22 = vmul.f32 %v1145_v36, %v4631_v37  ;;  %v855_v36 = vpop.f32.mrf.mxu3  ;;  %2604 = vmatpush.bf16.msrb.mxu2 %v3521_v46  ;;  %v1017_v46 = vmul.f32 0.5, %v4631_v37 }
 0x16c   : > { %v834_v44 = vpop.f32.mrf.mxu0  ;;  %v1567_v29 = vpack.c.bf16 %v1525_v19, %v1523_v62  ;;  %v4682_v19 = vpop.f32.mrf.mxu1  ;;  %v4693_v47 = vadd.f32 %v855_v36, %v4255_v34 }
 0x16d   : > { %v4667_v35 = vadd.f32 %v834_v44, %v4255_v34  ;;  %v1273_v0 = vadd.f32 %v1209_v22, %v4631_v37  ;;  %v1153_v44 = vmul.f32 %v1089_v57, %v4664_v14  ;;  %v3519_v57 = vld [vmem:[%s5943_s8 + $0x40] sm:$0xff] }
 0x16e   : > { %1769 = vmatmul.bf16.gmra.mxu2 %v1567_v29  ;;  %v4690_v29 = vadd.f32 %v852_v21, %v4255_v34  ;;  %v1015_v21 = vmul.f32 0.5, %v4614_v63 }
 0x16f   : > { %v1337_v53 = vmul.f32 0.7978846, %v1273_v0  ;;  %v1083_v9 = vmul.f32 0.044715, %v4667_v35  ;;  %v3751_v52 = vpop.eup %3750  ;;  %v1217_v17 = vmul.f32 %v1153_v44, %v4664_v14  ;;  %v1091_v44 = vmul.f32 0.044715, %v4648_v11 }
 0x170   : > { %v1463_v0 = vadd.f32 1.0, %v3751_v52 }
 0x171   : > { %v4675_v30 = vpop.f32.mrf.mxu2  ;;  %3752 = vtanh.f32 %v1337_v53  ;;  %v1147_v5 = vmul.f32 %v1083_v9, %v4667_v35  ;;  %v3520_v53 = vld [vmem:[%s5943_s8 + $0x48] sm:$0xff] }
 0x172   : > { %5961 = vst [vmem:[#allocation9_spill] sm:$0xff] %v4675_v30  ;;  %2605 = vmatpush.bf16.msrb.mxu2 %v3520_v53 }
 0x173   : > { %v1211_v43 = vmul.f32 %v1147_v5, %v4667_v35 }
 0x174   : > { %v837_v62 = vpop.f32.mrf.mxu0 }
 0x175   : > { %v4685_v20 = vadd.f32 %v837_v62, %v4255_v34  ;;  %v1275_v22 = vadd.f32 %v1211_v43, %v4667_v35 }
 0x176   : > { %2606 = vmatpush.bf16.msrb.mxu2 %v3519_v57 }
 0x177   : > { %v3753_v9 = vpop.eup %3752  ;;  %2553 = vmatmul.bf16.gmra.mxu1 %v2364_v23  ;;  %v1085_v5 = vmul.f32 0.044715, %v4685_v20  ;;  %v1339_v25 = vmul.f32 0.7978846, %v1275_v22  ;;  %v1527_v23 = vmul.f32 %v1463_v0, %v1015_v21  ;;  %v1281_v22 = vadd.f32 %v1217_v17, %v4664_v14  ;;  %v4722_v0 = vpop.f32.mrf.mxu1 }
 0x178   : > { %v1465_v52 = vadd.f32 1.0, %v3753_v9 }
 0x179   : > { %v4708_v43 = vpop.f32.mrf.mxu2  ;;  %v1149_v62 = vmul.f32 %v1085_v5, %v4685_v20  ;;  %3754 = vtanh.f32 %v1339_v25  ;;  %v1345_v57 = vmul.f32 0.7978846, %v1281_v22 }
 0x17a   : > { %5962 = vst [vmem:[#allocation10_spill] sm:$0xff] %v4708_v43  ;;  %v1529_v32 = vmul.f32 %v1465_v52, %v1017_v46  ;;  %v1093_v46 = vmul.f32 0.044715, %v4651_v15  ;;  %v1155_v52 = vmul.f32 %v1091_v44, %v4648_v11 }
 0x17b   : > { %v1213_v4 = vmul.f32 %v1149_v62, %v4685_v20 }
 0x17c   : > { %v840_v9 = vpop.f32.mrf.mxu0  ;;  %v1569_v53 = vpack.c.bf16 %v1529_v32, %v1527_v23  ;;  %v1157_v17 = vmul.f32 %v1093_v46, %v4651_v15  ;;  %v1021_v46 = vmul.f32 0.5, %v4685_v20 }
 0x17d   : > { %v4717_v36 = vadd.f32 %v840_v9, %v4255_v34  ;;  %v1277_v48 = vadd.f32 %v1213_v4, %v4685_v20  ;;  %v1219_v9 = vmul.f32 %v1155_v52, %v4648_v11 }
 0x17e   : > { %1774 = vmatmul.bf16.gmra.mxu2 %v1569_v53  ;;  %v3502_v53 = vld [vmem:[%s5958_s4 + $0x78] sm:$0xff]  ;;  %v1221_v44 = vmul.f32 %v1157_v17, %v4651_v15 }
 0x17f   : > { %v1087_v5 = vmul.f32 0.044715, %v4717_v36  ;;  %v1341_v21 = vmul.f32 0.7978846, %v1277_v48  ;;  %v3755_v62 = vpop.eup %3754  ;;  %1800 = vmatpush.bf16.msrb.mxu3 %v3502_v53  ;;  %v1283_v32 = vadd.f32 %v1219_v9, %v4648_v11  ;;  %v1025_v53 = vmul.f32 0.5, %v4664_v14 }
 0x180   : > { %v1467_v23 = vadd.f32 1.0, %v3755_v62 }
 0x181   : > { %v4728_v34 = vpop.f32.mrf.mxu2  ;;  %3756 = vtanh.f32 %v1341_v21  ;;  %v1151_v4 = vmul.f32 %v1087_v5, %v4717_v36  ;;  %v1019_v5 = vmul.f32 0.5, %v4667_v35 }
 0x182   : > { %5963 = vst [vmem:[#allocation11_spill] sm:$0xff] %v4728_v34  ;;  %3758 = vtanh.f32 %v1345_v57  ;;  %v4745_v57 = vpop.f32.mrf.mxu1 }
 0x183   : > { %v1215_v25 = vmul.f32 %v1151_v4, %v4717_v36  ;;  %v1531_v62 = vmul.f32 %v1467_v23, %v1019_v5  ;;  %1801 = vmatpush.bf16.msrb.mxu3 %v3501_v28  ;;  %v3500_v23 = vld [vmem:[%s5958_s4 + $0x68] sm:$0xff] }
 0x185   : > { %v1279_v48 = vadd.f32 %v1215_v25, %v4717_v36 }
 0x187   : > { %v3757_v21 = vpop.eup %3756  ;;  %2558 = vmatmul.bf16.gmra.mxu1 %v2366_v13  ;;  %v1343_v22 = vmul.f32 0.7978846, %v1279_v48  ;;  %v1285_v13 = vadd.f32 %v1221_v44, %v4651_v15  ;;  %v1095_v48 = vmul.f32 0.044715, %v4690_v29  ;;  %1802 = vmatpush.bf16.msrb.mxu3 %v3500_v23 }
 0x188   : > { %v1469_v4 = vadd.f32 1.0, %v3757_v21  ;;  %v3759_v58 = vpop.eup %3758 }
 0x189   : > { %3760 = vtanh.f32 %v1343_v22  ;;  %v4747_v52 = vpop.f32.mrf.mxu2  ;;  %v1473_v21 = vadd.f32 1.0, %v3759_v58  ;;  %v1347_v22 = vmul.f32 0.7978846, %v1283_v32  ;;  %v1349_v5 = vmul.f32 0.7978846, %v1285_v13  ;;  %v3499_v13 = vld [vmem:[%s5958_s4 + $0x60] sm:$0xff] }
 0x18a   : > { %5964 = vst [vmem:[#allocation12_spill] sm:$0xff] %v4747_v52  ;;  %v1533_v25 = vmul.f32 %v1469_v4, %v1021_v46  ;;  %v1097_v46 = vmul.f32 0.044715, %v4693_v47  ;;  %v1023_v4 = vmul.f32 0.5, %v4717_v36  ;;  %v4778_v23 = vpop.f32.mrf.mxu1 }
 0x18b   : > { %v1537_v58 = vmul.f32 %v1473_v21, %v1025_v53  ;;  %3762 = vtanh.f32 %v1347_v22  ;;  %1803 = vmatpush.bf16.msrb.mxu3 %v3499_v13  ;;  %v1029_v13 = vmul.f32 0.5, %v4651_v15 }
 0x18c   : > { %v1571_v17 = vpack.c.bf16 %v1533_v25, %v1531_v62  ;;  %v1159_v62 = vmul.f32 %v1095_v48, %v4690_v29  ;;  %v3906_v25 = vld [vmem:[%s5959_s3] sm:$0x3]  ;;  %3764 = vtanh.f32 %v1349_v5 }
 0x18d   : > { %v4765_v28 = vperm.slane %v3906_v25, 1 }
 0x18e   : > { %1779 = vmatmul.bf16.gmra.mxu2 %v1571_v17  ;;  %v1223_v21 = vmul.f32 %v1159_v62, %v4690_v29 }
 0x18f   : > { %v3761_v9 = vpop.eup %3760  ;;  %v4772_v17 = vadd.f32 %v4331_v61, %v4765_v28  ;;  %v4776_v48 = vadd.f32 %v4360_v31, %v4765_v28  ;;  %v4786_v22 = vadd.f32 %v4257_v38, %v4765_v28  ;;  %v3498_v61 = vld [vmem:[%s5958_s4 + $0x58] sm:$0xff]  ;;  %v4799_v38 = vadd.f32 %v4270_v50, %v4765_v28  ;;  %v3497_v50 = vld [vmem:[%s5958_s4 + $0x50] sm:$0xff] }
 0x190   : > { %v1471_v44 = vadd.f32 1.0, %v3761_v9  ;;  %v1161_v9 = vmul.f32 %v1097_v46, %v4693_v47  ;;  %v1287_v62 = vadd.f32 %v1223_v21, %v4690_v29  ;;  %1804 = vmatpush.bf16.msrb.mxu3 %v3498_v61 }
 0x191   : > { %v1044_v5 = vmul.f32 0.044715, %v4772_v17  ;;  %v1046_v46 = vmul.f32 0.044715, %v4776_v48  ;;  %v1036_v41 = vmul.f32 0.044715, %v4786_v22 }
 0x192   : > { %v1535_v32 = vmul.f32 %v1471_v44, %v1023_v4  ;;  %v4781_v4 = vpop.f32.mrf.mxu2  ;;  %v1225_v31 = vmul.f32 %v1161_v9, %v4693_v47  ;;  %v3763_v44 = vpop.eup %3762  ;;  %v1038_v30 = vmul.f32 0.044715, %v4799_v38 }
 0x193   : > { %5965 = vst [vmem:[#allocation13_spill] sm:$0xff] %v4781_v4  ;;  %v3765_v25 = vpop.eup %3764  ;;  %v1110_v56 = vmul.f32 %v1046_v46, %v4776_v48  ;;  %v1475_v61 = vadd.f32 1.0, %v3763_v44  ;;  %v1351_v46 = vmul.f32 0.7978846, %v1287_v62  ;;  %v4817_v52 = vpop.f32.mrf.mxu1  ;;  %v3496_v44 = vld [vmem:[%s5958_s4 + $0x48] sm:$0xff]  ;;  %v4834_v4 = vadd.f32 %v4390_v6, %v4765_v28 }
 0x194   : > { %v1573_v53 = vpack.c.bf16 %v1537_v58, %v1535_v32  ;;  %v1108_v32 = vmul.f32 %v1044_v5, %v4772_v17  ;;  %v1027_v58 = vmul.f32 0.5, %v4648_v11  ;;  %v1289_v9 = vadd.f32 %v1225_v31, %v4693_v47  ;;  %1805 = vmatpush.bf16.msrb.mxu3 %v3497_v50 }
 0x195   : > { %v1174_v21 = vmul.f32 %v1110_v56, %v4776_v48  ;;  %v1477_v5 = vadd.f32 1.0, %v3765_v25  ;;  %3766 = vtanh.f32 %v1351_v46  ;;  %v4848_v6 = vadd.f32 %v4302_v26, %v4765_v28 }
 0x196   : > { %1784 = vmatmul.bf16.vlgmr.msra.gmra.mxu3 %v1573_v53  ;;  %v1172_v53 = vmul.f32 %v1108_v32, %v4772_v17  ;;  %v1353_v62 = vmul.f32 0.7978846, %v1289_v9  ;;  %v1539_v56 = vmul.f32 %v1475_v61, %v1027_v58  ;;  %v5968_v61 = vpack.c.bf16 %v4596_v24, %v4587_v7 }
 0x197   : > { %2563 = vmatmul.bf16.gmra.mxu1 %v2368_v54  ;;  %v2351_v54 = vpack.c.bf16 %v4799_v38, %v4786_v22  ;;  %v1238_v43 = vadd.f32 %v1174_v21, %v4776_v48  ;;  %v1541_v50 = vmul.f32 %v1477_v5, %v1029_v13  ;;  %v3495_v21 = vld [vmem:[%s5958_s4 + $0x40] sm:$0xff]  ;;  %v1048_v5 = vmul.f32 0.044715, %v4834_v4  ;;  %s3928_s4 = scalar_lea.hbm %s5944_s9, 256 }
 0x198   : > { %v1236_v34 = vadd.f32 %v1172_v53, %v4772_v17  ;;  %1806 = vmatpush.bf16.msrb.mxu3 %v3496_v44  ;;  %v1100_v53 = vmul.f32 %v1036_v41, %v4786_v22  ;;  %v982_v26 = vmul.f32 0.5, %v4776_v48  ;;  %p3930_p2 = scmp.lt.s32.totalorder %s3928_s4, %s3924_s2 }
 0x199   : > { %v1302_v32 = vmul.f32 0.7978846, %v1238_v43  ;;  %v4838_v43 = vadd.f32 %v4420_v45, %v4765_v28  ;;  %v1112_v7 = vmul.f32 %v1048_v5, %v4834_v4 }
 0x19a   : > { %v4822_v31 = vpop.f32.mrf.mxu2  ;;  %v1300_v25 = vmul.f32 0.7978846, %v1236_v34  ;;  %v1575_v34 = vpack.c.bf16 %v1541_v50, %v1539_v56  ;;  %v1164_v41 = vmul.f32 %v1100_v53, %v4786_v22  ;;  %v1031_v50 = vmul.f32 0.5, %v4690_v29  ;;  %p3931_p3 = por %p3930_p2, %p3929_p1 }
 0x19b   : > { %5966 = vst [vmem:[#allocation14_spill] sm:$0xff] %v4822_v31  ;;  %v3767_v58 = vpop.eup %3766  ;;  %v4850_v45 = vpop.f32.mrf.mxu1  ;;  %v1050_v46 = vmul.f32 0.044715, %v4838_v43 }
 0x19c   : > { %3768 = vtanh.f32 %v1300_v25  ;;  %1807 = vmatpush.bf16.msrb.mxu3 %v3495_v21  ;;  %5967 = vst [vmem:[#allocation15_spill] sm:$0xff] %v4850_v45  ;;  %v980_v25 = vmul.f32 0.5, %v4772_v17  ;;  %p3932_p5 = pnand %p3931_p3, %p3927_p0 }
 0x19d   : > { %3770 = vtanh.f32 %v1302_v32  ;;  %v1114_v24 = vmul.f32 %v1050_v46, %v4838_v43 }
 0x19e   : > { %2607 = vmatmul.bf16.vlgmr.msrb.gmra.mxu2 %v2351_v54  ;;  %v1102_v54 = vmul.f32 %v1038_v30, %v4799_v38  ;;  %3772 = vtanh.f32 %v1353_v62  ;;  %v4844_v30 = vadd.f32 %v4284_v2, %v4765_v28  ;;  %v1228_v2 = vadd.f32 %v1164_v41, %v4786_v22 }
 0x1a0   : > { %v1166_v13 = vmul.f32 %v1102_v54, %v4799_v38  ;;  %v2353_v21 = vpack.c.bf16 %v4848_v6, %v4844_v30  ;;  %v1033_v54 = vmul.f32 0.5, %v4693_v47  ;;  %v1292_v5 = vmul.f32 0.7978846, %v1228_v2 }
 0x1a1   : > { %v1040_v45 = vmul.f32 0.044715, %v4844_v30 }
 0x1a2   : > { %v3769_v9 = vpop.eup %3768  ;;  %v4857_v62 = vpop.f32.mrf.mxu2  ;;  %3774 = vtanh.f32 %v1292_v5 }
 0x1a3   : > { %v3771_v44 = vpop.eup %3770  ;;  %5969 = vst [vmem:[#allocation16_spill] sm:$0xff] %v4857_v62  ;;  %v1428_v32 = vadd.f32 1.0, %v3769_v9  ;;  %v1176_v9 = vmul.f32 %v1112_v7, %v4834_v4  ;;  %v1104_v7 = vmul.f32 %v1040_v45, %v4844_v30 }
 0x1a4   : > { %v3773_v56 = vpop.eup %3772  ;;  %v1430_v53 = vadd.f32 1.0, %v3771_v44  ;;  %v1178_v44 = vmul.f32 %v1114_v24, %v4838_v43  ;;  %v4884_v24 = vpop.f32.mrf.mxu1 }
 0x1a5   : > { %v4869_v41 = vmul.f32 %v1428_v32, %v980_v25  ;;  %v1481_v31 = vadd.f32 1.0, %v3773_v56  ;;  %v1168_v45 = vmul.f32 %v1104_v7, %v4844_v30 }
 0x1a6   : > { %1789 = vmatmul.bf16.gmra.mxu3 %v1575_v34  ;;  %v1230_v34 = vadd.f32 %v1166_v13, %v4799_v38  ;;  %v4871_v62 = vmul.f32 %v1430_v53, %v982_v26  ;;  %v1240_v13 = vadd.f32 %v1176_v9, %v4834_v4  ;;  %v1042_v26 = vmul.f32 0.044715, %v4848_v6 }
 0x1a7   : > { %2568 = vmatmul.bf16.gmra.mxu1 %v5968_v61  ;;  %v1479_v61 = vadd.f32 1.0, %v3767_v58  ;;  %v1242_v58 = vadd.f32 %v1178_v44, %v4838_v43  ;;  %v1545_v2 = vmul.f32 %v1481_v31, %v1033_v54  ;;  %v4890_v9 = vadd.f32 %v4437_v10, %v4765_v28 }
 0x1a8   : > { %v1294_v25 = vmul.f32 0.7978846, %v1230_v34  ;;  %v1304_v32 = vmul.f32 0.7978846, %v1240_v13  ;;  %v1106_v31 = vmul.f32 %v1042_v26, %v4848_v6  ;;  %v3775_v54 = vpop.eup %3774  ;;  %v1232_v13 = vadd.f32 %v1168_v45, %v4844_v30 }
 0x1a9   : > { %v1306_v53 = vmul.f32 0.7978846, %v1242_v58  ;;  %v1543_v56 = vmul.f32 %v1479_v61, %v1031_v50  ;;  %v5970_v61 = vpack.c.bf16 %v4631_v37, %v4614_v63  ;;  %v1052_v44 = vmul.f32 0.044715, %v4890_v9 }
 0x1aa   : > { %3776 = vtanh.f32 %v1304_v32  ;;  %v4886_v46 = vpop.f32.mrf.mxu2  ;;  %v1170_v10 = vmul.f32 %v1106_v31, %v4848_v6  ;;  %v984_v58 = vmul.f32 0.5, %v4834_v4  ;;  %v972_v37 = vmul.f32 0.5, %v4786_v22 }
 0x1ab   : > { %3778 = vtanh.f32 %v1306_v53  ;;  %v1577_v50 = vpack.c.bf16 %v1545_v2, %v1543_v56  ;;  %v1116_v56 = vmul.f32 %v1052_v44, %v4890_v9  ;;  %v974_v2 = vmul.f32 0.5, %v4799_v38 }
 0x1ac   : > { %3780 = vtanh.f32 %v1294_v25  ;;  %v986_v25 = vmul.f32 0.5, %v4838_v43  ;;  %v4913_v31 = vpop.f32.mrf.mxu1  ;;  %v1420_v44 = vadd.f32 1.0, %v3775_v54  ;;  %v1296_v60 = vmul.f32 0.7978846, %v1232_v13 }
 0x1ad   : > { %v4933_v13 = vadd.f32 %v4472_v1, %v4765_v28 }
 0x1ae   : > { %2612 = vmatmul.bf16.gmra.mxu2 %v2353_v21  ;;  %v4894_v21 = vadd.f32 %v4455_v49, %v4765_v28  ;;  %v1484_v54 = vmul.f32 %v1420_v44, %v972_v37  ;;  %3782 = vtanh.f32 %v1296_v60  ;;  %v5972_v60 = vpack.c.bf16 %v4685_v20, %v4667_v35 }
 0x1af   : > { %v1056_v1 = vmul.f32 0.044715, %v4933_v13  ;;  %v976_v35 = vmul.f32 0.5, %v4844_v30 }
 0x1b0   : > { %v3777_v34 = vpop.eup %3776  ;;  %v1054_v49 = vmul.f32 0.044715, %v4894_v21  ;;  %v2359_v22 = vpack.c.bf16 %v4894_v21, %v4890_v9  ;;  %v990_v44 = vmul.f32 0.5, %v4894_v21 }
 0x1b1   : > { %v3779_v5 = vpop.eup %3778  ;;  %v1432_v26 = vadd.f32 1.0, %v3777_v34  ;;  %v1180_v34 = vmul.f32 %v1116_v56, %v4890_v9 }
 0x1b2   : > { %v3781_v32 = vpop.eup %3780  ;;  %v1434_v53 = vadd.f32 1.0, %v3779_v5  ;;  %v1118_v63 = vmul.f32 %v1054_v49, %v4894_v21  ;;  %v4920_v5 = vpop.f32.mrf.mxu2 }
 0x1b3   : > { %v4911_v7 = vmul.f32 %v1432_v26, %v984_v58  ;;  %v1422_v49 = vadd.f32 1.0, %v3781_v32  ;;  %v1244_v58 = vadd.f32 %v1180_v34, %v4890_v9 }
 0x1b4   : > { %v4916_v45 = vmul.f32 %v1434_v53, %v986_v25  ;;  %v5971_v25 = vpack.c.bf16 %v4776_v48, %v4772_v17  ;;  %v4939_v17 = vpop.f32.mrf.mxu1  ;;  %v3783_v48 = vpop.eup %3782 }
 0x1b5   : > { %v1308_v53 = vmul.f32 0.7978846, %v1244_v58  ;;  %v1486_v32 = vmul.f32 %v1422_v49, %v974_v2 }
 0x1b6   : > { %1794 = vmatmul.bf16.gmra.mxu3 %v1577_v50  ;;  %v1234_v50 = vadd.f32 %v1170_v10, %v4848_v6  ;;  %v1554_v38 = vpack.c.bf16 %v4916_v45, %v4911_v7 }
 0x1b7   : > { %2573 = vmatmul.bf16.gmra.mxu1 %v5970_v61  ;;  %v1182_v61 = vmul.f32 %v1118_v63, %v4894_v21  ;;  %3784 = vtanh.f32 %v1308_v53  ;;  %v4937_v63 = vadd.f32 %v4491_v18, %v4765_v28  ;;  %v1548_v34 = vpack.c.bf16 %v1486_v32, %v1484_v54 }
 0x1b8   : > { %v1298_v26 = vmul.f32 0.7978846, %v1234_v50  ;;  %v988_v18 = vmul.f32 0.5, %v4890_v9  ;;  %v978_v32 = vmul.f32 0.5, %v4848_v6  ;;  %v5975_v9 = vpack.c.bf16 %v4871_v62, %v4869_v41 }
 0x1b9   : > { %v1246_v10 = vadd.f32 %v1182_v61, %v4894_v21  ;;  %v1058_v2 = vmul.f32 0.044715, %v4937_v63 }
 0x1ba   : > { %v4941_v50 = vpop.f32.mrf.mxu2 }
 0x1bb   : > { %v1310_v56 = vmul.f32 0.7978846, %v1246_v10 }
 0x1bd   : > { %3786 = vtanh.f32 %v1310_v56  ;;  %v3785_v37 = vpop.eup %3784 }
 0x1be   : > { %2617 = vmatmul.bf16.gmra.mxu2 %v5971_v25  ;;  %3788 = vtanh.f32 %v1298_v26  ;;  %v1436_v49 = vadd.f32 1.0, %v3785_v37  ;;  %v1120_v25 = vmul.f32 %v1056_v1, %v4933_v13  ;;  %v1122_v26 = vmul.f32 %v1058_v2, %v4937_v63 }
 0x1c0   : > { %v4952_v53 = vmul.f32 %v1436_v49, %v988_v18  ;;  %v1184_v56 = vmul.f32 %v1120_v25, %v4933_v13  ;;  %v1186_v54 = vmul.f32 %v1122_v26, %v4937_v63  ;;  %v4969_v18 = vpop.f32.mrf.mxu1  ;;  %v4979_v25 = vadd.f32 %v4518_v16, %v4765_v28 }
 0x1c1   : > { %v5974_v26 = vpack.c.bf16 %v4664_v14, %v4717_v36 }
 0x1c2   : > { %v1248_v2 = vadd.f32 %v1184_v56, %v4933_v13  ;;  %v1250_v30 = vadd.f32 %v1186_v54, %v4937_v63  ;;  %v1062_v56 = vmul.f32 0.044715, %v4979_v25 }
 0x1c3   : > { %v3787_v61 = vpop.eup %3786 }
 0x1c4   : > { %v3789_v58 = vpop.eup %3788  ;;  %v1438_v10 = vadd.f32 1.0, %v3787_v61  ;;  %v5973_v61 = vpack.c.bf16 %v4838_v43, %v4834_v4  ;;  %v1314_v6 = vmul.f32 0.7978846, %v1250_v30  ;;  %v1126_v30 = vmul.f32 %v1062_v56, %v4979_v25 }
 0x1c5   : > { %v1426_v37 = vadd.f32 1.0, %v3789_v58  ;;  %v5011_v56 = vadd.f32 %v4538_v42, %v4765_v28 }
 0x1c6   : > { %1808 = vmatmul.bf16.vlgmr.msrb.gmra.mxu3 %v1548_v34  ;;  %v4955_v20 = vmul.f32 %v1438_v10, %v990_v44  ;;  %v1424_v34 = vadd.f32 1.0, %v3783_v48  ;;  %v1312_v44 = vmul.f32 0.7978846, %v1248_v2  ;;  %v4971_v48 = vpop.f32.mrf.mxu2  ;;  %v4975_v10 = vadd.f32 %v4508_v59, %v4765_v28 }
 0x1c7   : > { %2578 = vmatmul.bf16.gmra.mxu1 %v5972_v60  ;;  %v2361_v60 = vpack.c.bf16 %v4937_v63, %v4933_v13  ;;  %v1490_v58 = vmul.f32 %v1426_v37, %v978_v32  ;;  %v992_v32 = vmul.f32 0.5, %v4933_v13  ;;  %v994_v59 = vmul.f32 0.5, %v4937_v63 }
 0x1c8   : > { %v1556_v1 = vpack.c.bf16 %v4955_v20, %v4952_v53  ;;  %v1488_v49 = vmul.f32 %v1424_v34, %v976_v35  ;;  %3790 = vtanh.f32 %v1312_v44  ;;  %v1060_v35 = vmul.f32 0.044715, %v4975_v10  ;;  %v4988_v37 = vpop.f32.mrf.mxu1 }
 0x1c9   : > { %3792 = vtanh.f32 %v1314_v6  ;;  %v1190_v6 = vmul.f32 %v1126_v30, %v4979_v25  ;;  %v1064_v42 = vmul.f32 0.044715, %v5011_v56 }
 0x1ca   : > { %v1550_v4 = vpack.c.bf16 %v1490_v58, %v1488_v49  ;;  %v1124_v2 = vmul.f32 %v1060_v35, %v4975_v10  ;;  %v2363_v49 = vpack.c.bf16 %v4979_v25, %v4975_v10 }
 0x1cb   : > { %v1128_v62 = vmul.f32 %v1064_v42, %v5011_v56 }
 0x1cc   : > { %v1188_v44 = vmul.f32 %v1124_v2, %v4975_v10  ;;  %v998_v2 = vmul.f32 0.5, %v4979_v25 }
 0x1ce   : > { %2622 = vmatmul.bf16.gmra.mxu2 %v5973_v61  ;;  %v3791_v43 = vpop.eup %3790  ;;  %v4992_v61 = vpop.f32.mrf.mxu2 }
 0x1cf   : > { %v3793_v54 = vpop.eup %3792  ;;  %v1440_v34 = vadd.f32 1.0, %v3791_v43  ;;  %v1254_v43 = vadd.f32 %v1190_v6, %v4979_v25 }
 0x1d0   : > { %v1442_v16 = vadd.f32 1.0, %v3793_v54  ;;  %v5015_v54 = vadd.f32 %v4555_v12, %v4765_v28  ;;  %v996_v12 = vmul.f32 0.5, %v4975_v10 }
 0x1d1   : > { %v4994_v14 = vmul.f32 %v1440_v34, %v992_v32  ;;  %v1318_v35 = vmul.f32 0.7978846, %v1254_v43  ;;  %v5017_v32 = vpop.f32.mrf.mxu1 }
 0x1d2   : > { %v4996_v36 = vmul.f32 %v1442_v16, %v994_v59  ;;  %v1066_v34 = vmul.f32 0.044715, %v5015_v54 }
 0x1d4   : > { %v1558_v58 = vpack.c.bf16 %v4996_v36, %v4994_v14  ;;  %v1130_v41 = vmul.f32 %v1066_v34, %v5015_v54 }
 0x1d6   : > { %1813 = vmatmul.bf16.gmra.mxu3 %v1550_v4  ;;  %v1252_v4 = vadd.f32 %v1188_v44, %v4975_v10  ;;  %v5019_v59 = vpop.f32.mrf.mxu2  ;;  %v5031_v44 = vpop.f32.mrf.mxu3  ;;  %v1194_v43 = vmul.f32 %v1130_v41, %v5015_v54 }
 0x1d7   : > { %2583 = vmatmul.bf16.gmra.mxu1 %v5974_v26 }
 0x1d8   : > { %v1316_v26 = vmul.f32 0.7978846, %v1252_v4 }
 0x1da   : > { %3794 = vtanh.f32 %v1316_v26  ;;  %v2365_v26 = vpack.c.bf16 %v5015_v54, %v5011_v56 }
 0x1db   : > { %3796 = vtanh.f32 %v1318_v35  ;;  %v5043_v35 = vpop.f32.mrf.mxu1 }
 0x1de   : > { %2627 = vmatmul.bf16.gmra.mxu2 %v2359_v22  ;;  %v5976_v22 = vpack.c.bf16 %v4651_v15, %v4648_v11  ;;  %v1192_v15 = vmul.f32 %v1128_v62, %v5011_v56  ;;  %v5049_v42 = vpop.f32.mrf.mxu2 }
 0x1e0   : > { %v3795_v21 = vpop.eup %3794 }
 0x1e1   : > { %v3797_v16 = vpop.eup %3796  ;;  %v1444_v30 = vadd.f32 1.0, %v3795_v21  ;;  %v1256_v21 = vadd.f32 %v1192_v15, %v5011_v56  ;;  %v1000_v15 = vmul.f32 0.5, %v5011_v56 }
 0x1e2   : > { %v1446_v6 = vadd.f32 1.0, %v3797_v16 }
 0x1e3   : > { %v5035_v4 = vmul.f32 %v1444_v30, %v996_v12  ;;  %v1320_v34 = vmul.f32 0.7978846, %v1256_v21  ;;  %v3510_v12 = vld [vmem:[%s5977_s6 + $0x38] sm:$0xff]  ;;  %v5063_v30 = vadd.f32 %v4584_v27, %v4765_v28  ;;  %v5070_v63 = vpop.f32.mrf.mxu1 }
 0x1e4   : > { %v5037_v11 = vmul.f32 %v1446_v6, %v998_v2  ;;  %v5059_v2 = vadd.f32 %v4565_v8, %v4765_v28  ;;  %v5065_v6 = vpop.f32.mrf.mxu3  ;;  %2261 = vmatpush.bf16.msrb.mxu0 %v3510_v12  ;;  %5978 = vst [vmem:[#allocation17_spill] sm:$0xff] %v5070_v63 }
 0x1e5   : > { %3798 = vtanh.f32 %v1320_v34  ;;  %v1070_v62 = vmul.f32 0.044715, %v5063_v30 }
 0x1e6   : > { %1818 = vmatmul.bf16.gmra.mxu3 %v5975_v9  ;;  %v1560_v9 = vpack.c.bf16 %v5037_v11, %v5035_v4  ;;  %v1068_v8 = vmul.f32 0.044715, %v5059_v2  ;;  %v5077_v41 = vpop.f32.mrf.mxu2 }
 0x1e7   : > { %2588 = vmatmul.bf16.gmra.mxu1 %v5976_v22  ;;  %v1258_v22 = vadd.f32 %v1194_v43, %v5015_v54  ;;  %v1002_v43 = vmul.f32 0.5, %v5015_v54  ;;  %v1134_v21 = vmul.f32 %v1070_v62, %v5063_v30 }
 0x1e9   : > { %v1322_v16 = vmul.f32 0.7978846, %v1258_v22  ;;  %v1198_v34 = vmul.f32 %v1134_v21, %v5063_v30  ;;  %v1004_v21 = vmul.f32 0.5, %v5059_v2 }
 0x1eb   : > { %3800 = vtanh.f32 %v1322_v16  ;;  %v3799_v13 = vpop.eup %3798  ;;  %v2367_v16 = vpack.c.bf16 %v5063_v30, %v5059_v2 }
 0x1ec   : > { %v1448_v7 = vadd.f32 1.0, %v3799_v13  ;;  %v5091_v12 = vpop.f32.mrf.mxu3 }
 0x1ee   : > { %2632 = vmatmul.bf16.gmra.mxu2 %v2361_v60  ;;  %v5979_v60 = vpack.c.bf16 %v4693_v47, %v4690_v29  ;;  %v5083_v22 = vmul.f32 %v1448_v7, %v1000_v15  ;;  %v5100_v15 = vpop.f32.mrf.mxu2  ;;  %v5108_v7 = vadd.f32 %v4621_v40, %v4765_v28 }
 0x1f1   : > { %v3801_v27 = vpop.eup %3800 }
 0x1f2   : > { %v1450_v45 = vadd.f32 1.0, %v3801_v27 }
 0x1f4   : > { %v5085_v29 = vmul.f32 %v1450_v45, %v1002_v43  ;;  %v5104_v43 = vadd.f32 %v4599_v39, %v4765_v28  ;;  %v5113_v25 = vpop.f32.mrf.mxu3  ;;  %v1074_v45 = vmul.f32 0.044715, %v5108_v7  ;;  %v1006_v39 = vmul.f32 0.5, %v5063_v30 }
 0x1f6   : > { %1823 = vmatmul.bf16.gmra.mxu3 %v1554_v38  ;;  %v1132_v38 = vmul.f32 %v1068_v8, %v5059_v2  ;;  %v1562_v13 = vpack.c.bf16 %v5085_v29, %v5083_v22  ;;  %v1262_v8 = vadd.f32 %v1198_v34, %v5063_v30 }
 0x1f7   : > { %2593 = vmatmul.bf16.gmra.mxu1 %v5979_v60 }
 0x1f8   : > { %v1196_v47 = vmul.f32 %v1132_v38, %v5059_v2  ;;  %v1326_v27 = vmul.f32 0.7978846, %v1262_v8 }
 0x1fa   : > { %v1260_v60 = vadd.f32 %v1196_v47, %v5059_v2 }
 0x1fc   : > { %v1324_v62 = vmul.f32 0.7978846, %v1260_v60  ;;  %v1138_v60 = vmul.f32 %v1074_v45, %v5108_v7 }
 0x1fe   : > { %2637 = vmatmul.bf16.gmra.mxu2 %v2363_v49  ;;  %3802 = vtanh.f32 %v1324_v62  ;;  %v1072_v49 = vmul.f32 0.044715, %v5104_v43  ;;  %v1202_v8 = vmul.f32 %v1138_v60, %v5108_v7  ;;  %v5127_v62 = vpop.f32.mrf.mxu2 }
 0x1ff   : > { %3804 = vtanh.f32 %v1326_v27  ;;  %v2369_v27 = vpack.c.bf16 %v5108_v7, %v5104_v43 }
 0x200   : > { %v1136_v40 = vmul.f32 %v1072_v49, %v5104_v43  ;;  %v1266_v45 = vadd.f32 %v1202_v8, %v5108_v7  ;;  %v1008_v8 = vmul.f32 0.5, %v5104_v43 }
 0x204   : > { %v3803_v10 = vpop.eup %3802 }
 0x205   : > { %v3805_v38 = vpop.eup %3804  ;;  %v1452_v47 = vadd.f32 1.0, %v3803_v10 }
 0x206   : > { %1828 = vmatmul.bf16.gmra.mxu3 %v1556_v1  ;;  %v1454_v34 = vadd.f32 1.0, %v3805_v38  ;;  %v1200_v1 = vmul.f32 %v1136_v40, %v5104_v43  ;;  %v3509_v38 = vld [vmem:[%s5977_s6 + $0x30] sm:$0xff]  ;;  %v5149_v40 = vadd.f32 %v4682_v19, %v4765_v28  ;;  %v5151_v56 = vpop.f32.mrf.mxu2 }
 0x207   : > { %v5121_v53 = vmul.f32 %v1452_v47, %v1004_v21  ;;  %2262 = vmatpush.bf16.msrb.mxu0 %v3509_v38  ;;  %v5141_v47 = vpop.f32.mrf.mxu3 }
 0x208   : > { %v5123_v20 = vmul.f32 %v1454_v34, %v1006_v39  ;;  %v1264_v49 = vadd.f32 %v1200_v1, %v5104_v43  ;;  %v1330_v39 = vmul.f32 0.7978846, %v1266_v45  ;;  %v5145_v34 = vadd.f32 %v4657_v33, %v4765_v28 }
 0x209   : > { %v1078_v60 = vmul.f32 0.044715, %v5149_v40  ;;  %v1010_v33 = vmul.f32 0.5, %v5108_v7 }
 0x20a   : > { %v1328_v21 = vmul.f32 0.7978846, %v1264_v49  ;;  %v2371_v10 = vpack.c.bf16 %v5149_v40, %v5145_v34 }
 0x20c   : > { %3806 = vtanh.f32 %v1328_v21  ;;  %v1142_v21 = vmul.f32 %v1078_v60, %v5149_v40 }
 0x20d   : > { %3808 = vtanh.f32 %v1330_v39 }
 0x20e   : > { %2642 = vmatmul.bf16.gmra.mxu2 %v2365_v26  ;;  %v1076_v26 = vmul.f32 0.044715, %v5145_v34  ;;  %v1206_v39 = vmul.f32 %v1142_v21, %v5149_v40 }
 0x210   : > { %v1140_v38 = vmul.f32 %v1076_v26, %v5145_v34  ;;  %v1270_v26 = vadd.f32 %v1206_v39, %v5149_v40  ;;  %v1014_v39 = vmul.f32 0.5, %v5149_v40  ;;  %v3503_v40 = vld [vmem:[%s5977_s6] sm:$0xff] }
 0x212   : > { %v3807_v54 = vpop.eup %3806 }
 0x213   : > { %v3809_v1 = vpop.eup %3808  ;;  %v1456_v49 = vadd.f32 1.0, %v3807_v54 }
 0x214   : > { %v1458_v19 = vadd.f32 1.0, %v3809_v1 }
 0x215   : > { %v5164_v14 = vmul.f32 %v1456_v49, %v1008_v8  ;;  %v1334_v8 = vmul.f32 0.7978846, %v1270_v26 }
 0x216   : > { %1833 = vmatmul.bf16.gmra.mxu3 %v1558_v58  ;;  %v5166_v36 = vmul.f32 %v1458_v19, %v1010_v33  ;;  %v1204_v58 = vmul.f32 %v1140_v38, %v5145_v34  ;;  %v5179_v33 = vpop.f32.mrf.mxu2  ;;  %v5185_v19 = vadd.f32 %v4722_v0, %v4765_v28  ;;  %v5189_v38 = vadd.f32 %v4745_v57, %v4765_v28 }
 0x218   : > { %v1268_v1 = vadd.f32 %v1204_v58, %v5145_v34  ;;  %v1080_v30 = vmul.f32 0.044715, %v5185_v19  ;;  %v1012_v58 = vmul.f32 0.5, %v5145_v34  ;;  %v5279_v34 = vld [vmem:[%s5984_s5] ss:$0 sm:$0xff] }
 0x219   : > { %v5160_v45 = vpop.f32.mrf.mxu3 }
 0x21a   : > { %v1332_v60 = vmul.f32 0.7978846, %v1268_v1  ;;  %v1144_v57 = vmul.f32 %v1080_v30, %v5185_v19 }
 0x21c   : > { %3810 = vtanh.f32 %v1332_v60 }
 0x21d   : > { %3812 = vtanh.f32 %v1334_v8  ;;  %v1208_v8 = vmul.f32 %v1144_v57, %v5185_v19  ;;  %v5227_v57 = vadd.f32 %v4817_v52, %v4765_v28 }
 0x21e   : > { %2647 = vmatmul.bf16.gmra.mxu2 %v2367_v16  ;;  %v1082_v16 = vmul.f32 0.044715, %v5189_v38  ;;  %v5202_v4 = vpop.f32.mrf.mxu2 }
 0x21f   : > { %v1272_v30 = vadd.f32 %v1208_v8, %v5185_v19  ;;  %v1086_v52 = vmul.f32 0.044715, %v5227_v57  ;;  %v1016_v8 = vmul.f32 0.5, %v5185_v19 }
 0x220   : > { %v1146_v60 = vmul.f32 %v1082_v16, %v5189_v38 }
 0x221   : > { %v5181_v49 = vpop.f32.mrf.mxu3 }
 0x222   : > { %v3811_v2 = vpop.eup %3810  ;;  %v1210_v54 = vmul.f32 %v1146_v60, %v5189_v38 }
 0x223   : > { %v3813_v21 = vpop.eup %3812  ;;  %v1460_v0 = vadd.f32 1.0, %v3811_v2 }
 0x224   : > { %v1462_v26 = vadd.f32 1.0, %v3813_v21  ;;  %v1274_v16 = vadd.f32 %v1210_v54, %v5189_v38  ;;  %v3508_v54 = vld [vmem:[%s5977_s6 + $0x28] sm:$0xff] }
 0x225   : > { %v5204_v11 = vmul.f32 %v1460_v0, %v1012_v58  ;;  %v1336_v58 = vmul.f32 0.7978846, %v1272_v30  ;;  %2263 = vmatpush.bf16.msrb.mxu0 %v3508_v54  ;;  %v1018_v30 = vmul.f32 0.5, %v5189_v38  ;;  %v3506_v54 = vld [vmem:[%s5977_s6 + $0x18] sm:$0xff] }
 0x226   : > { %1838 = vmatmul.bf16.gmra.mxu3 %v1560_v9  ;;  %v5206_v9 = vmul.f32 %v1462_v26, %v1014_v39  ;;  %v1338_v39 = vmul.f32 0.7978846, %v1274_v16  ;;  %v5223_v26 = vadd.f32 %v4778_v23, %v4765_v28  ;;  %v5232_v43 = vpop.f32.mrf.mxu2  ;;  %v3507_v23 = vld [vmem:[%s5977_s6 + $0x20] sm:$0xff] }
 0x227   : > { %3814 = vtanh.f32 %v1336_v58 }
 0x228   : > { %3816 = vtanh.f32 %v1338_v39 }
 0x229   : > { %v5198_v1 = vpop.f32.mrf.mxu3  ;;  %2264 = vmatpush.bf16.msrb.mxu0 %v3507_v23  ;;  %v2375_v23 = vpack.c.bf16 %v5227_v57, %v5223_v26 }
 0x22a   : > { %5980 = vst [vmem:[#allocation18_spill] sm:$0xff] %v5198_v1 }
 0x22d   : > { %v3815_v7 = vpop.eup %3814  ;;  %2265 = vmatpush.bf16.msrb.mxu0 %v3506_v54 }
 0x22e   : > { %2652 = vmatmul.bf16.gmra.mxu2 %v2369_v27  ;;  %v1084_v27 = vmul.f32 0.044715, %v5223_v26  ;;  %v3817_v60 = vpop.eup %3816  ;;  %v1464_v16 = vadd.f32 1.0, %v3815_v7 }
 0x22f   : > { %v1466_v22 = vadd.f32 1.0, %v3817_v60 }
 0x230   : > { %v1148_v29 = vmul.f32 %v1084_v27, %v5223_v26  ;;  %v5248_v39 = vmul.f32 %v1464_v16, %v1016_v8  ;;  %v5263_v8 = vpop.f32.mrf.mxu2 }
 0x231   : > { %v5219_v0 = vpop.f32.mrf.mxu3  ;;  %v5253_v21 = vmul.f32 %v1466_v22, %v1018_v30  ;;  %v3505_v30 = vld [vmem:[%s5977_s6 + $0x10] sm:$0xff] }
 0x232   : > { %5981 = vst [vmem:[#allocation19_spill] sm:$0xff] %v5219_v0  ;;  %v1212_v2 = vmul.f32 %v1148_v29, %v5223_v26  ;;  %2266 = vmatpush.bf16.msrb.mxu0 %v3505_v30  ;;  %v1022_v30 = vmul.f32 0.5, %v5227_v57 }
 0x236   : > { %1843 = vmatmul.bf16.gmra.mxu3 %v1562_v13  ;;  %v1150_v13 = vmul.f32 %v1086_v52, %v5227_v57  ;;  %v1276_v52 = vadd.f32 %v1212_v2, %v5223_v26  ;;  %v3504_v2 = vld [vmem:[%s5977_s6 + $0x8] sm:$0xff] }
 0x237   : > { %2267 = vmatpush.bf16.msrb.mxu0 %v3504_v2 }
 0x238   : > { %v1214_v7 = vmul.f32 %v1150_v13, %v5227_v57  ;;  %v1340_v16 = vmul.f32 0.7978846, %v1276_v52  ;;  %v5289_v52 = vpop.f32.mrf.mxu2 }
 0x239   : > { %v5244_v58 = vpop.f32.mrf.mxu3 }
 0x23a   : > { %5982 = vst [vmem:[#allocation20_spill] sm:$0xff] %v5244_v58  ;;  %v1278_v60 = vadd.f32 %v1214_v7, %v5227_v57  ;;  %3818 = vtanh.f32 %v1340_v16  ;;  %v1721_v7 = vadd.f32 %v5279_v34, %v4591_v51  ;;  %v5986_v58 = vpack.c.bf16 %v5189_v38, %v5185_v19 }
 0x23b   : > { %2268 = vmatpush.bf16.msrb.mxu0 %v3503_v40  ;;  %v1726_v19 = vadd.f32 %v5279_v34, %v4623_v3 }
 0x23c   : > { %v1342_v22 = vmul.f32 0.7978846, %v1278_v60  ;;  %v1020_v60 = vmul.f32 0.5, %v5223_v26  ;;  %v1723_v26 = vadd.f32 %v5279_v34, %v4609_v55 }
 0x23e   : > { %2657 = vmatmul.bf16.gmra.mxu2 %v2371_v10  ;;  %3820 = vtanh.f32 %v1342_v22  ;;  %v5985_v10 = vpack.c.bf16 %v5123_v20, %v5121_v53 }
 0x240   : > { %v3819_v13 = vpop.eup %3818 }
 0x241   : > { %v5271_v29 = vpop.f32.mrf.mxu3  ;;  %v1468_v16 = vadd.f32 1.0, %v3819_v13  ;;  %v5304_v13 = vpop.f32.mrf.mxu2 }
 0x242   : > { %5983 = vst [vmem:[#allocation21_spill] sm:$0xff] %v5271_v29 }
 0x243   : > { %v5293_v2 = vmul.f32 %v1468_v16, %v1020_v60 }
 0x244   : > { %v3821_v54 = vpop.eup %3820 }
 0x245   : > { %v1470_v53 = vadd.f32 1.0, %v3821_v54 }
 0x246   : > { %1848 = vmatmul.bf16.gmra.mxu3 %v5985_v10 }
 0x247   : > { %v5295_v10 = vmul.f32 %v1470_v53, %v1022_v30 }
 0x249   : > { %v1809_v22 = vpop.f32.mrf.mxu3  ;;  %v5311_v53 = vpop.f32.mrf.mxu2 }
 0x24a   : > { %v1810_v20 = vadd.f32 %v1809_v22, %v1721_v7  ;;  %v5987_v22 = vpack.c.bf16 %v5166_v36, %v5164_v14 }
 0x24c   : > { %v1921_v27 = vmul.f32 0.044715, %v1810_v20 }
 0x24e   : > { %v1953_v51 = vmul.f32 %v1921_v27, %v1810_v20  ;;  %2662 = vmatmul.bf16.gmra.mxu2 %v5986_v58 }
 0x250   : > { %v1985_v57 = vmul.f32 %v1953_v51, %v1810_v20 }
 0x251   : > { %v1811_v40 = vpop.f32.mrf.mxu3  ;;  %v5315_v0 = vpop.f32.mrf.mxu2 }
 0x252   : > { %v2017_v54 = vadd.f32 %v1985_v57, %v1810_v20  ;;  %v1812_v7 = vadd.f32 %v1811_v40, %v1723_v26 }
 0x254   : > { %v1922_v60 = vmul.f32 0.044715, %v1812_v7  ;;  %v2049_v30 = vmul.f32 0.7978846, %v2017_v54  ;;  %v5988_v54 = vld [vmem:[#allocation8_spill] sm:$0xff] }
 0x255   : > { %v1728_v14 = vadd.f32 %v5279_v34, %v5988_v54 }
 0x256   : > { %v1954_v16 = vmul.f32 %v1922_v60, %v1812_v7  ;;  %1853 = vmatmul.bf16.gmra.mxu3 %v5987_v22  ;;  %3822 = vtanh.f32 %v2049_v30  ;;  %v1890_v30 = vmul.f32 0.5, %v1812_v7 }
 0x258   : > { %v1986_v38 = vmul.f32 %v1954_v16, %v1812_v7 }
 0x259   : > { %v1814_v58 = vpop.f32.mrf.mxu3 }
 0x25a   : > { %v1815_v27 = vadd.f32 %v1814_v58, %v1726_v19  ;;  %v2018_v55 = vadd.f32 %v1986_v38, %v1812_v7  ;;  %v1889_v38 = vmul.f32 0.5, %v1810_v20  ;;  %v5328_v7 = vadd.f32 %v5031_v44, %v4765_v28 }
 0x25c   : > { %v1923_v51 = vmul.f32 0.044715, %v1815_v27  ;;  %v2050_v57 = vmul.f32 0.7978846, %v2018_v55  ;;  %v3823_v40 = vpop.eup %3822  ;;  %v1090_v44 = vmul.f32 0.044715, %v5328_v7 }
 0x25d   : > { %v2113_v16 = vadd.f32 1.0, %v3823_v40  ;;  %v5991_v40 = vld [vmem:[#allocation15_spill] sm:$0xff] }
 0x25e   : > { %v1955_v26 = vmul.f32 %v1923_v51, %v1815_v27  ;;  %2667 = vmatmul.bf16.gmra.mxu2 %v2375_v23  ;;  %3824 = vtanh.f32 %v2050_v57  ;;  %v5989_v23 = vpack.c.bf16 %v5206_v9, %v5204_v11 }
 0x25f   : > { %v2145_v57 = vmul.f32 %v2113_v16, %v1889_v38 }
 0x260   : > { %v1987_v36 = vmul.f32 %v1955_v26, %v1815_v27  ;;  %v5990_v26 = vld [vmem:[#allocation9_spill] sm:$0xff] }
 0x261   : > { %v1816_v60 = vpop.f32.mrf.mxu3 }
 0x262   : > { %v1817_v22 = vadd.f32 %v1816_v60, %v1728_v14  ;;  %v2019_v3 = vadd.f32 %v1987_v36, %v1815_v27  ;;  %v1731_v14 = vadd.f32 %v5279_v34, %v5990_v26  ;;  %v5324_v60 = vadd.f32 %v5991_v40, %v4765_v28 }
 0x264   : > { %v3825_v29 = vpop.eup %3824  ;;  %v1924_v19 = vmul.f32 0.044715, %v1817_v22  ;;  %v2051_v51 = vmul.f32 0.7978846, %v2019_v3  ;;  %v2377_v3 = vpack.c.bf16 %v5328_v7, %v5324_v60 }
 0x265   : > { %v2114_v58 = vadd.f32 1.0, %v3825_v29 }
 0x266   : > { %v1956_v55 = vmul.f32 %v1924_v19, %v1817_v22  ;;  %1858 = vmatmul.bf16.gmra.mxu3 %v5989_v23  ;;  %3826 = vtanh.f32 %v2051_v51  ;;  %v5340_v51 = vpop.f32.mrf.mxu2 }
 0x267   : > { %v2146_v54 = vmul.f32 %v2114_v58, %v1890_v30  ;;  %v1088_v30 = vmul.f32 0.044715, %v5324_v60 }
 0x268   : > { %v1988_v36 = vmul.f32 %v1956_v55, %v1817_v22  ;;  %v5992_v55 = vld [vmem:[#allocation10_spill] sm:$0xff] }
 0x269   : > { %v1819_v20 = vpop.f32.mrf.mxu3  ;;  %v2177_v29 = vpack.c.bf16 %v2146_v54, %v2145_v57  ;;  %v1733_v23 = vadd.f32 %v5279_v34, %v5992_v55  ;;  %v5993_v55 = vpack.c.bf16 %v5253_v21, %v5248_v39 }
 0x26a   : > { %v5330_v19 = vadd.f32 %v1819_v20, %v1731_v14  ;;  %v2020_v11 = vadd.f32 %v1988_v36, %v1817_v22  ;;  %v1152_v36 = vmul.f32 %v1088_v30, %v5324_v60  ;;  %v1154_v20 = vmul.f32 %v1090_v44, %v5328_v7 }
 0x26b   : > { %2269 = vmatmul.bf16.vlgmr.msrb.gmra.mxu0 %v2177_v29 }
 0x26c   : > { %v1925_v9 = vmul.f32 0.044715, %v5330_v19  ;;  %v2052_v16 = vmul.f32 0.7978846, %v2020_v11  ;;  %v3827_v58 = vpop.eup %3826  ;;  %v1218_v30 = vmul.f32 %v1154_v20, %v5328_v7 }
 0x26d   : > { %v2115_v40 = vadd.f32 1.0, %v3827_v58  ;;  %v5994_v58 = vld [vmem:[#allocation11_spill] sm:$0xff] }
 0x26e   : > { %v1957_v38 = vmul.f32 %v1925_v9, %v5330_v19  ;;  %2672 = vmatmul.bf16.gmra.mxu2 %v2377_v3  ;;  %3828 = vtanh.f32 %v2052_v16  ;;  %v1891_v9 = vmul.f32 0.5, %v1815_v27  ;;  %v1892_v3 = vmul.f32 0.5, %v1817_v22 }
 0x26f   : > { %v1736_v44 = vadd.f32 %v5279_v34, %v5994_v58  ;;  %v5355_v27 = vadd.f32 %v5065_v6, %v4765_v28  ;;  %v5359_v22 = vadd.f32 %v5091_v12, %v4765_v28 }
 0x270   : > { %v1989_v57 = vmul.f32 %v1957_v38, %v5330_v19 }
 0x271   : > { %v1821_v54 = vpop.f32.mrf.mxu3 }
 0x272   : > { %v1822_v26 = vadd.f32 %v1821_v54, %v1733_v23  ;;  %v2021_v14 = vadd.f32 %v1989_v57, %v5330_v19  ;;  %v1216_v23 = vmul.f32 %v1152_v36, %v5324_v60  ;;  %v2147_v54 = vmul.f32 %v2115_v40, %v1891_v9 }
 0x274   : > { %v3829_v29 = vpop.eup %3828  ;;  %v1926_v11 = vmul.f32 0.044715, %v1822_v26  ;;  %v2053_v38 = vmul.f32 0.7978846, %v2021_v14  ;;  %v5361_v14 = vpop.f32.mrf.mxu2  ;;  %v1280_v20 = vadd.f32 %v1216_v23, %v5324_v60 }
 0x275   : > { %v2116_v16 = vadd.f32 1.0, %v3829_v29  ;;  %v2379_v29 = vpack.c.bf16 %v5359_v22, %v5355_v27 }
 0x276   : > { %v1958_v1 = vmul.f32 %v1926_v11, %v1822_v26  ;;  %1863 = vmatmul.bf16.gmra.mxu3 %v5993_v55  ;;  %3830 = vtanh.f32 %v2053_v38  ;;  %v1092_v11 = vmul.f32 0.044715, %v5355_v27  ;;  %v5995_v38 = vld [vmem:[#allocation12_spill] sm:$0xff] }
 0x277   : > { %v2148_v57 = vmul.f32 %v2116_v16, %v1892_v3  ;;  %v1344_v3 = vmul.f32 0.7978846, %v1280_v20  ;;  %v1094_v16 = vmul.f32 0.044715, %v5359_v22  ;;  %v1738_v23 = vadd.f32 %v5279_v34, %v5995_v38 }
 0x278   : > { %v1990_v63 = vmul.f32 %v1958_v1, %v1822_v26  ;;  %v1282_v1 = vadd.f32 %v1218_v30, %v5328_v7  ;;  %v1156_v30 = vmul.f32 %v1092_v11, %v5355_v27 }
 0x279   : > { %v1824_v21 = vpop.f32.mrf.mxu3  ;;  %v2178_v39 = vpack.c.bf16 %v2148_v57, %v2147_v54 }
 0x27a   : > { %v5363_v36 = vadd.f32 %v1824_v21, %v1736_v44  ;;  %v2022_v40 = vadd.f32 %v1990_v63, %v1822_v26  ;;  %v1346_v63 = vmul.f32 0.7978846, %v1282_v1  ;;  %v1220_v11 = vmul.f32 %v1156_v30, %v5355_v27 }
 0x27b   : > { %2274 = vmatmul.bf16.gmra.mxu0 %v2178_v39  ;;  %v1158_v39 = vmul.f32 %v1094_v16, %v5359_v22  ;;  %v5396_v30 = vadd.f32 %v5113_v25, %v4765_v28 }
 0x27c   : > { %v1927_v6 = vmul.f32 0.044715, %v5363_v36  ;;  %v2054_v12 = vmul.f32 0.7978846, %v2022_v40  ;;  %v3831_v55 = vpop.eup %3830  ;;  %v5381_v20 = vpop.f32.mrf.mxu2 }
 0x27d   : > { %v2117_v21 = vadd.f32 1.0, %v3831_v55  ;;  %v1222_v38 = vmul.f32 %v1158_v39, %v5359_v22  ;;  %v1024_v39 = vmul.f32 0.5, %v5324_v60  ;;  %v1096_v60 = vmul.f32 0.044715, %v5396_v30 }
 0x27e   : > { %v1959_v9 = vmul.f32 %v1927_v6, %v5363_v36  ;;  %2677 = vmatmul.bf16.gmra.mxu2 %v2379_v29  ;;  %3832 = vtanh.f32 %v2054_v12  ;;  %v1893_v6 = vmul.f32 0.5, %v5330_v19  ;;  %v1894_v29 = vmul.f32 0.5, %v1822_v26 }
 0x27f   : > { %3834 = vtanh.f32 %v1344_v3  ;;  %v5996_v3 = vpack.c.bf16 %v5295_v10, %v5293_v2  ;;  %v1284_v2 = vadd.f32 %v1220_v11, %v5355_v27  ;;  %v5401_v10 = vadd.f32 %v5141_v47, %v4765_v28 }
 0x280   : > { %v1991_v54 = vmul.f32 %v1959_v9, %v5363_v36  ;;  %3836 = vtanh.f32 %v1346_v63  ;;  %v2149_v55 = vmul.f32 %v2117_v21, %v1893_v6  ;;  %v1026_v6 = vmul.f32 0.5, %v5328_v7 }
 0x281   : > { %v1826_v57 = vpop.f32.mrf.mxu3  ;;  %v2381_v11 = vpack.c.bf16 %v5401_v10, %v5396_v30 }
 0x282   : > { %v5377_v58 = vadd.f32 %v1826_v57, %v1738_v23  ;;  %v2023_v44 = vadd.f32 %v1991_v54, %v5363_v36  ;;  %v5997_v54 = vld [vmem:[#allocation13_spill] sm:$0xff] }
 0x283   : > { %v1741_v57 = vadd.f32 %v5279_v34, %v5997_v54 }
 0x284   : > { %v3833_v40 = vpop.eup %3832  ;;  %v1928_v1 = vmul.f32 0.044715, %v5377_v58  ;;  %v2055_v63 = vmul.f32 0.7978846, %v2023_v44 }
 0x285   : > { %v2118_v12 = vadd.f32 1.0, %v3833_v40  ;;  %v3835_v23 = vpop.eup %3834 }
 0x286   : > { %v1960_v9 = vmul.f32 %v1928_v1, %v5377_v58  ;;  %1868 = vmatmul.bf16.gmra.mxu3 %v5996_v3  ;;  %v3837_v26 = vpop.eup %3836  ;;  %3838 = vtanh.f32 %v2055_v63  ;;  %v1472_v25 = vadd.f32 1.0, %v3835_v23  ;;  %v1348_v63 = vmul.f32 0.7978846, %v1284_v2 }
 0x287   : > { %v2150_v16 = vmul.f32 %v2118_v12, %v1894_v29  ;;  %v1286_v29 = vadd.f32 %v1222_v38, %v5359_v22  ;;  %v1474_v28 = vadd.f32 1.0, %v3837_v26  ;;  %v5998_v38 = vld [vmem:[#allocation14_spill] sm:$0xff]  ;;  %v1160_v2 = vmul.f32 %v1096_v60, %v5396_v30 }
 0x288   : > { %v1992_v19 = vmul.f32 %v1960_v9, %v5377_v58  ;;  %v5412_v9 = vpop.f32.mrf.mxu2  ;;  %v1743_v23 = vadd.f32 %v5279_v34, %v5998_v38  ;;  %v1536_v54 = vmul.f32 %v1472_v25, %v1024_v39  ;;  %v1895_v38 = vmul.f32 0.5, %v5363_v36 }
 0x289   : > { %v1829_v40 = vpop.f32.mrf.mxu3  ;;  %v2179_v1 = vpack.c.bf16 %v2150_v16, %v2149_v55  ;;  %v1350_v7 = vmul.f32 0.7978846, %v1286_v29  ;;  %v1098_v55 = vmul.f32 0.044715, %v5401_v10  ;;  %v1896_v39 = vmul.f32 0.5, %v5377_v58 }
 0x28a   : > { %v5403_v44 = vadd.f32 %v1829_v40, %v1741_v57  ;;  %v2024_v21 = vadd.f32 %v1992_v19, %v5377_v58  ;;  %v1538_v57 = vmul.f32 %v1474_v28, %v1026_v6 }
 0x28b   : > { %2279 = vmatmul.bf16.gmra.mxu0 %v2179_v1  ;;  %v1162_v29 = vmul.f32 %v1098_v55, %v5401_v10 }
 0x28c   : > { %v1929_v12 = vmul.f32 0.044715, %v5403_v44  ;;  %v2056_v47 = vmul.f32 0.7978846, %v2024_v21  ;;  %v3839_v16 = vpop.eup %3838 }
 0x28d   : > { %v2119_v21 = vadd.f32 1.0, %v3839_v16  ;;  %v1226_v60 = vmul.f32 %v1162_v29, %v5401_v10  ;;  %v5999_v16 = vld [vmem:[#allocation16_spill] sm:$0xff] }
 0x28e   : > { %v1961_v3 = vmul.f32 %v1929_v12, %v5403_v44  ;;  %2682 = vmatmul.bf16.gmra.mxu2 %v2381_v11  ;;  %3840 = vtanh.f32 %v2056_v47  ;;  %v1574_v47 = vpack.c.bf16 %v1538_v57, %v1536_v54  ;;  %v1746_v55 = vadd.f32 %v5279_v34, %v5999_v16 }
 0x28f   : > { %3842 = vtanh.f32 %v1348_v63  ;;  %v2151_v63 = vmul.f32 %v2119_v21, %v1895_v38  ;;  %v1030_v21 = vmul.f32 0.5, %v5359_v22  ;;  %v1290_v29 = vadd.f32 %v1226_v60, %v5401_v10 }
 0x290   : > { %v1993_v19 = vmul.f32 %v1961_v3, %v5403_v44  ;;  %3844 = vtanh.f32 %v1350_v7  ;;  %v1224_v3 = vmul.f32 %v1160_v2, %v5396_v30  ;;  %v1028_v2 = vmul.f32 0.5, %v5355_v27 }
 0x291   : > { %v1831_v26 = vpop.f32.mrf.mxu3 }
 0x292   : > { %v1832_v40 = vadd.f32 %v1831_v26, %v1743_v23  ;;  %v2025_v1 = vadd.f32 %v1993_v19, %v5403_v44 }
 0x294   : > { %v3841_v12 = vpop.eup %3840  ;;  %v1930_v11 = vmul.f32 0.044715, %v1832_v40  ;;  %v2057_v28 = vmul.f32 0.7978846, %v2025_v1  ;;  %v1288_v1 = vadd.f32 %v1224_v3, %v5396_v30  ;;  %v1748_v3 = vadd.f32 %v5279_v34, %v4886_v46 }
 0x295   : > { %v2120_v6 = vadd.f32 1.0, %v3841_v12  ;;  %v3843_v7 = vpop.eup %3842 }
 0x296   : > { %v1962_v25 = vmul.f32 %v1930_v11, %v1832_v40  ;;  %1873 = vmatmul.bf16.gmra.mxu3 %v1574_v47  ;;  %v3845_v54 = vpop.eup %3844  ;;  %3846 = vtanh.f32 %v2057_v28  ;;  %v1476_v11 = vadd.f32 1.0, %v3843_v7 }
 0x297   : > { %v2152_v23 = vmul.f32 %v2120_v6, %v1896_v39  ;;  %v1478_v47 = vadd.f32 1.0, %v3845_v54  ;;  %v1352_v6 = vmul.f32 0.7978846, %v1288_v1 }
 0x298   : > { %v1994_v19 = vmul.f32 %v1962_v25, %v1832_v40  ;;  %v1354_v25 = vmul.f32 0.7978846, %v1290_v29 }
 0x299   : > { %v1834_v57 = vpop.f32.mrf.mxu3  ;;  %v2180_v36 = vpack.c.bf16 %v2152_v23, %v2151_v63  ;;  %v1540_v63 = vmul.f32 %v1476_v11, %v1028_v2  ;;  %v1542_v27 = vmul.f32 %v1478_v47, %v1030_v21 }
 0x29a   : > { %v5429_v26 = vadd.f32 %v1834_v57, %v1746_v55  ;;  %v2026_v58 = vadd.f32 %v1994_v19, %v1832_v40  ;;  %v1897_v57 = vmul.f32 0.5, %v5403_v44  ;;  %v1032_v44 = vmul.f32 0.5, %v5396_v30 }
 0x29b   : > { %2284 = vmatmul.bf16.gmra.mxu0 %v2180_v36  ;;  %v1576_v54 = vpack.c.bf16 %v1542_v27, %v1540_v63  ;;  %v1898_v36 = vmul.f32 0.5, %v1832_v40  ;;  %v1034_v40 = vmul.f32 0.5, %v5401_v10 }
 0x29c   : > { %v1931_v12 = vmul.f32 0.044715, %v5429_v26  ;;  %v2058_v38 = vmul.f32 0.7978846, %v2026_v58  ;;  %v3847_v28 = vpop.eup %3846 }
 0x29d   : > { %v2121_v16 = vadd.f32 1.0, %v3847_v28 }
 0x29e   : > { %v1963_v39 = vmul.f32 %v1931_v12, %v5429_v26  ;;  %3848 = vtanh.f32 %v2058_v38  ;;  %v1751_v12 = vadd.f32 %v5279_v34, %v4920_v5  ;;  %v1753_v5 = vadd.f32 %v5279_v34, %v4941_v50 }
 0x29f   : > { %3850 = vtanh.f32 %v1352_v6  ;;  %v2153_v2 = vmul.f32 %v2121_v16, %v1897_v57  ;;  %v1756_v50 = vadd.f32 %v5279_v34, %v4971_v48 }
 0x2a0   : > { %v1995_v22 = vmul.f32 %v1963_v39, %v5429_v26  ;;  %3852 = vtanh.f32 %v1354_v25 }
 0x2a1   : > { %v1836_v23 = vpop.f32.mrf.mxu3 }
 0x2a2   : > { %v1837_v60 = vadd.f32 %v1836_v23, %v1748_v3  ;;  %v2027_v7 = vadd.f32 %v1995_v22, %v5429_v26 }
 0x2a4   : > { %v3849_v55 = vpop.eup %3848  ;;  %v1932_v19 = vmul.f32 0.044715, %v1837_v60  ;;  %v2059_v46 = vmul.f32 0.7978846, %v2027_v7 }
 0x2a5   : > { %v2122_v58 = vadd.f32 1.0, %v3849_v55  ;;  %v3851_v29 = vpop.eup %3850 }
 0x2a6   : > { %v1964_v1 = vmul.f32 %v1932_v19, %v1837_v60  ;;  %1878 = vmatmul.bf16.gmra.mxu3 %v1576_v54  ;;  %v3853_v47 = vpop.eup %3852  ;;  %3854 = vtanh.f32 %v2059_v46  ;;  %v1480_v3 = vadd.f32 1.0, %v3851_v29  ;;  %v1900_v46 = vmul.f32 0.5, %v1837_v60 }
 0x2a7   : > { %v2154_v21 = vmul.f32 %v2122_v58, %v1898_v36  ;;  %v1482_v63 = vadd.f32 1.0, %v3853_v47 }
 0x2a8   : > { %v1996_v11 = vmul.f32 %v1964_v1, %v1837_v60  ;;  %v1544_v7 = vmul.f32 %v1480_v3, %v1032_v44  ;;  %v1899_v1 = vmul.f32 0.5, %v5429_v26  ;;  %v1758_v3 = vadd.f32 %v5279_v34, %v4992_v61 }
 0x2a9   : > { %v1839_v38 = vpop.f32.mrf.mxu3  ;;  %v2181_v39 = vpack.c.bf16 %v2154_v21, %v2153_v2  ;;  %v1546_v16 = vmul.f32 %v1482_v63, %v1034_v40 }
 0x2aa   : > { %v1840_v6 = vadd.f32 %v1839_v38, %v1751_v12  ;;  %v2028_v25 = vadd.f32 %v1996_v11, %v1837_v60 }
 0x2ab   : > { %2289 = vmatmul.bf16.gmra.mxu0 %v2181_v39  ;;  %v1578_v10 = vpack.c.bf16 %v1546_v16, %v1544_v7 }
 0x2ac   : > { %v1933_v28 = vmul.f32 0.044715, %v1840_v6  ;;  %v2060_v27 = vmul.f32 0.7978846, %v2028_v25  ;;  %v3855_v23 = vpop.eup %3854  ;;  %v1901_v16 = vmul.f32 0.5, %v1840_v6 }
 0x2ad   : > { %v2123_v36 = vadd.f32 1.0, %v3855_v23 }
 0x2ae   : > { %v1965_v22 = vmul.f32 %v1933_v28, %v1840_v6  ;;  %3856 = vtanh.f32 %v2060_v27 }
 0x2af   : > { %v2155_v12 = vmul.f32 %v2123_v36, %v1899_v1 }
 0x2b0   : > { %v1997_v55 = vmul.f32 %v1965_v22, %v1840_v6 }
 0x2b1   : > { %v1841_v19 = vpop.f32.mrf.mxu3 }
 0x2b2   : > { %v1842_v54 = vadd.f32 %v1841_v19, %v1753_v5  ;;  %v2029_v57 = vadd.f32 %v1997_v55, %v1840_v6 }
 0x2b4   : > { %v3857_v30 = vpop.eup %3856  ;;  %v1934_v58 = vmul.f32 0.044715, %v1842_v54  ;;  %v2061_v29 = vmul.f32 0.7978846, %v2029_v57  ;;  %v1902_v55 = vmul.f32 0.5, %v1842_v54 }
 0x2b5   : > { %v2124_v2 = vadd.f32 1.0, %v3857_v30 }
 0x2b6   : > { %v1966_v21 = vmul.f32 %v1934_v58, %v1842_v54  ;;  %1883 = vmatmul.bf16.gmra.mxu3 %v1578_v10  ;;  %3858 = vtanh.f32 %v2061_v29  ;;  %v1761_v10 = vadd.f32 %v5279_v34, %v5019_v59 }
 0x2b7   : > { %v2156_v11 = vmul.f32 %v2124_v2, %v1900_v46 }
 0x2b8   : > { %v1998_v47 = vmul.f32 %v1966_v21, %v1842_v54 }
 0x2b9   : > { %v1844_v38 = vpop.f32.mrf.mxu3  ;;  %v2182_v39 = vpack.c.bf16 %v2156_v11, %v2155_v12 }
 0x2ba   : > { %v1845_v25 = vadd.f32 %v1844_v38, %v1756_v50  ;;  %v2030_v44 = vadd.f32 %v1998_v47, %v1842_v54  ;;  %v1763_v54 = vadd.f32 %v5279_v34, %v5049_v42 }
 0x2bb   : > { %2294 = vmatmul.bf16.gmra.mxu0 %v2182_v39 }
 0x2bc   : > { %v1935_v40 = vmul.f32 0.044715, %v1845_v25  ;;  %v2062_v28 = vmul.f32 0.7978846, %v2030_v44  ;;  %v3859_v60 = vpop.eup %3858 }
 0x2bd   : > { %v2125_v48 = vadd.f32 1.0, %v3859_v60 }
 0x2be   : > { %v1967_v26 = vmul.f32 %v1935_v40, %v1845_v25  ;;  %3860 = vtanh.f32 %v2062_v28  ;;  %v1903_v28 = vmul.f32 0.5, %v1845_v25 }
 0x2bf   : > { %v2157_v30 = vmul.f32 %v2125_v48, %v1901_v16  ;;  %v1766_v48 = vadd.f32 %v5279_v34, %v5077_v41 }
 0x2c0   : > { %v1999_v63 = vmul.f32 %v1967_v26, %v1845_v25 }
 0x2c1   : > { %v1846_v27 = vpop.f32.mrf.mxu3 }
 0x2c2   : > { %v1847_v22 = vadd.f32 %v1846_v27, %v1758_v3  ;;  %v2031_v23 = vadd.f32 %v1999_v63, %v1845_v25 }
 0x2c4   : > { %v3861_v5 = vpop.eup %3860  ;;  %v1936_v7 = vmul.f32 0.044715, %v1847_v22  ;;  %v2063_v36 = vmul.f32 0.7978846, %v2031_v23  ;;  %v1904_v26 = vmul.f32 0.5, %v1847_v22 }
 0x2c5   : > { %v2126_v19 = vadd.f32 1.0, %v3861_v5 }
 0x2c6   : > { %v1968_v57 = vmul.f32 %v1936_v7, %v1847_v22  ;;  %3862 = vtanh.f32 %v2063_v36 }
 0x2c7   : > { %v2158_v58 = vmul.f32 %v2126_v19, %v1902_v55 }
 0x2c8   : > { %v2000_v1 = vmul.f32 %v1968_v57, %v1847_v22 }
 0x2c9   : > { %v1849_v46 = vpop.f32.mrf.mxu3  ;;  %v2183_v61 = vpack.c.bf16 %v2158_v58, %v2157_v30 }
 0x2ca   : > { %v1850_v2 = vadd.f32 %v1849_v46, %v1761_v10  ;;  %v2032_v21 = vadd.f32 %v2000_v1, %v1847_v22  ;;  %v1768_v22 = vadd.f32 %v5279_v34, %v5100_v15  ;;  %v1771_v15 = vadd.f32 %v5279_v34, %v5127_v62 }
 0x2cb   : > { %2299 = vmatmul.bf16.gmra.mxu0 %v2183_v61 }
 0x2cc   : > { %v1937_v29 = vmul.f32 0.044715, %v1850_v2  ;;  %v2064_v12 = vmul.f32 0.7978846, %v2032_v21  ;;  %v3863_v6 = vpop.eup %3862  ;;  %v5464_v21 = vld [vmem:[%s5942_s7] ss:$0 sm:$0xff] }
 0x2cd   : > { %v2127_v59 = vadd.f32 1.0, %v3863_v6 }
 0x2ce   : > { %v1969_v11 = vmul.f32 %v1937_v29, %v1850_v2  ;;  %3864 = vtanh.f32 %v2064_v12  ;;  %v1905_v29 = vmul.f32 0.5, %v1850_v2 }
 0x2cf   : > { %v2159_v27 = vmul.f32 %v2127_v59, %v1903_v28 }
 0x2d0   : > { %v2001_v50 = vmul.f32 %v1969_v11, %v1850_v2 }
 0x2d1   : > { %v1851_v47 = vpop.f32.mrf.mxu3 }
 0x2d2   : > { %v1852_v38 = vadd.f32 %v1851_v47, %v1763_v54  ;;  %v2033_v39 = vadd.f32 %v2001_v50, %v1850_v2 }
 0x2d4   : > { %v3865_v44 = vpop.eup %3864  ;;  %v1938_v40 = vmul.f32 0.044715, %v1852_v38  ;;  %v2065_v63 = vmul.f32 0.7978846, %v2033_v39  ;;  %v1906_v12 = vmul.f32 0.5, %v1852_v38 }
 0x2d5   : > { %v2128_v60 = vadd.f32 1.0, %v3865_v44 }
 0x2d6   : > { %v1970_v3 = vmul.f32 %v1938_v40, %v1852_v38  ;;  %3866 = vtanh.f32 %v2065_v63 }
 0x2d7   : > { %v2160_v23 = vmul.f32 %v2128_v60, %v1904_v26 }
 0x2d8   : > { %v2002_v5 = vmul.f32 %v1970_v3, %v1852_v38 }
 0x2d9   : > { %v1854_v7 = vpop.f32.mrf.mxu3  ;;  %v2184_v42 = vpack.c.bf16 %v2160_v23, %v2159_v27  ;;  %v1773_v27 = vadd.f32 %v5279_v34, %v5151_v56 }
 0x2da   : > { %v1855_v16 = vadd.f32 %v1854_v7, %v1766_v48  ;;  %v2034_v55 = vadd.f32 %v2002_v5, %v1852_v38 }
 0x2db   : > { %2304 = vmatmul.bf16.gmra.mxu0 %v2184_v42 }
 0x2dc   : > { %v1939_v19 = vmul.f32 0.044715, %v1855_v16  ;;  %v2066_v57 = vmul.f32 0.7978846, %v2034_v55  ;;  %v3867_v25 = vpop.eup %3866 }
 0x2dd   : > { %v2129_v41 = vadd.f32 1.0, %v3867_v25  ;;  %v1907_v25 = vmul.f32 0.5, %v1855_v16 }
 0x2de   : > { %v1971_v36 = vmul.f32 %v1939_v19, %v1855_v16  ;;  %3868 = vtanh.f32 %v2066_v57 }
 0x2df   : > { %v2161_v50 = vmul.f32 %v2129_v41, %v1905_v29 }
 0x2e0   : > { %v2003_v30 = vmul.f32 %v1971_v36, %v1855_v16 }
 0x2e1   : > { %v1856_v58 = vpop.f32.mrf.mxu3 }
 0x2e2   : > { %v1857_v10 = vadd.f32 %v1856_v58, %v1768_v22  ;;  %v2035_v1 = vadd.f32 %v2003_v30, %v1855_v16 }
 0x2e4   : > { %v3869_v46 = vpop.eup %3868  ;;  %v1940_v61 = vmul.f32 0.044715, %v1857_v10  ;;  %v2067_v54 = vmul.f32 0.7978846, %v2035_v1  ;;  %v1908_v30 = vmul.f32 0.5, %v1857_v10 }
 0x2e5   : > { %v2130_v11 = vadd.f32 1.0, %v3869_v46 }
 0x2e6   : > { %v1972_v6 = vmul.f32 %v1940_v61, %v1857_v10  ;;  %3870 = vtanh.f32 %v2067_v54 }
 0x2e7   : > { %v2162_v47 = vmul.f32 %v2130_v11, %v1906_v12  ;;  %v1776_v11 = vadd.f32 %v5279_v34, %v5179_v33 }
 0x2e8   : > { %v2270_v39 = vpop.f32.mrf.mxu0  ;;  %v2004_v59 = vmul.f32 %v1972_v6, %v1857_v10 }
 0x2e9   : > { %v2271_v44 = vadd.f32 %v5464_v21, %v2270_v39  ;;  %v1859_v40 = vpop.f32.mrf.mxu3  ;;  %v2185_v28 = vpack.c.bf16 %v2162_v47, %v2161_v50  ;;  %v5500_v39 = vpop.f32.mrf.mxu1 }
 0x2ea   : > { %v5469_v26 = vadd.f32 %v1859_v40, %v1771_v15  ;;  %v2036_v60 = vadd.f32 %v2004_v59, %v1857_v10 }
 0x2eb   : > { %2309 = vmatmul.bf16.gmra.mxu0 %v2185_v28  ;;  %v2520_v3 = vadd.f32 %v4884_v24, %v2271_v44  ;;  %v5504_v28 = vpop.f32.mrf.mxu2 }
 0x2ec   : > { %v1941_v2 = vmul.f32 0.044715, %v5469_v26  ;;  %v2068_v38 = vmul.f32 0.7978846, %v2036_v60  ;;  %v3871_v62 = vpop.eup %3870 }
 0x2ed   : > { %v2609_v5 = vadd.f32 %v5289_v52, %v2520_v3  ;;  %v2131_v57 = vadd.f32 1.0, %v3871_v62 }
 0x2ee   : > { %v1973_v63 = vmul.f32 %v1941_v2, %v5469_v26  ;;  %3872 = vtanh.f32 %v2068_v38  ;;  %v1778_v38 = vadd.f32 %v5279_v34, %v5202_v4 }
 0x2ef   : > { %v2688_v1 = vpack.c.bf16 %v2609_v5, %v2609_v5  ;;  %v2163_v61 = vmul.f32 %v2131_v57, %v1907_v25 }
 0x2f0   : > { %v2272_v23 = vpop.f32.mrf.mxu0  ;;  %v2005_v48 = vmul.f32 %v1973_v63, %v5469_v26 }
 0x2f1   : > { %v2273_v7 = vadd.f32 %v5464_v21, %v2272_v23  ;;  %v1861_v42 = vpop.f32.mrf.mxu3  ;;  %v5492_v54 = vunpack.c.l.b16 %v2688_v1 }
 0x2f2   : > { %v1862_v55 = vadd.f32 %v1861_v42, %v1773_v27  ;;  %v2037_v24 = vadd.f32 %v2005_v48, %v5469_v26 }
 0x2f3   : > { %v2522_v19 = vadd.f32 %v4913_v31, %v2273_v7 }
 0x2f4   : > { %v3873_v36 = vpop.eup %3872  ;;  %v1942_v56 = vmul.f32 0.044715, %v1862_v55  ;;  %v2069_v52 = vmul.f32 0.7978846, %v2037_v24  ;;  %v1910_v57 = vmul.f32 0.5, %v1862_v55 }
 0x2f5   : > { %v2611_v22 = vadd.f32 %v5304_v13, %v2522_v19  ;;  %v2132_v58 = vadd.f32 1.0, %v3873_v36  ;;  %v1909_v19 = vmul.f32 0.5, %v5469_v26 }
 0x2f6   : > { %v1974_v41 = vmul.f32 %v1942_v56, %v1862_v55  ;;  %3874 = vtanh.f32 %v2069_v52  ;;  %v5520_v52 = vpop.f32.mrf.mxu2 }
 0x2f7   : > { %v3532_v46 = vpack.c.bf16 %v2611_v22, %v2609_v5  ;;  %v2164_v29 = vmul.f32 %v2132_v58, %v1908_v30  ;;  %v2689_v12 = vpack.c.bf16 %v2611_v22, %v2611_v22 }
 0x2f8   : > { %v2275_v6 = vpop.f32.mrf.mxu0  ;;  %v2006_v31 = vmul.f32 %v1974_v41, %v1862_v55 }
 0x2f9   : > { %3533 = vst [vmem:[%s5488_s24] sm:$0xff] %v3532_v46   ;;  %v2276_v13 = vadd.f32 %v5464_v21, %v2275_v6  ;;  %v1864_v16 = vpop.f32.mrf.mxu3  ;;  %v2186_v10 = vpack.c.bf16 %v2164_v29, %v2163_v61  ;;  %v5494_v50 = vunpack.c.l.b16 %v2689_v12 }
 0x2fa   : > { %v5496_v47 = vadd.f32 %v1864_v16, %v1776_v11  ;;  %v2038_v15 = vadd.f32 %v2006_v31, %v1862_v55 }
 0x2fb   : > { %2314 = vmatmul.bf16.gmra.mxu0 %v2186_v10  ;;  %v2869_v33 = vpack.c.b16 %v5494_v50, %v5492_v54  ;;  %v2525_v40 = vadd.f32 %v4939_v17, %v2276_v13 }
 0x2fc   : > { %v1943_v59 = vmul.f32 0.044715, %v5496_v47  ;;  %v2070_v44 = vmul.f32 0.7978846, %v2038_v15  ;;  %v3875_v2 = vpop.eup %3874 }
 0x2fd   : > { %v2614_v62 = vadd.f32 %v5311_v53, %v2525_v40  ;;  %v2133_v7 = vadd.f32 1.0, %v3875_v2  ;;  %v5516_v53 = vpop.f32.mrf.mxu1 }
 0x2fe   : > { %v1975_v60 = vmul.f32 %v1943_v59, %v5496_v47  ;;  %3876 = vtanh.f32 %v2070_v44  ;;  %v1783_v44 = vadd.f32 %v5279_v34, %v5263_v8  ;;  %v1911_v8 = vmul.f32 0.5, %v5496_v47 }
 0x2ff   : > { %v2690_v56 = vpack.c.bf16 %v2614_v62, %v2614_v62  ;;  %v2165_v58 = vmul.f32 %v2133_v7, %v1909_v19 }
 0x300   : > { %v2277_v3 = vpop.f32.mrf.mxu0  ;;  %v2007_v63 = vmul.f32 %v1975_v60, %v5496_v47 }
 0x301   : > { %v2278_v27 = vadd.f32 %v5464_v21, %v2277_v3  ;;  %v1866_v23 = vpop.f32.mrf.mxu3  ;;  %v5524_v29 = vunpack.c.l.b16 %v2690_v56 }
 0x302   : > { %v1867_v48 = vadd.f32 %v1866_v23, %v1778_v38  ;;  %v2039_v17 = vadd.f32 %v2007_v63, %v5496_v47  ;;  %v5542_v63 = vpop.f32.mrf.mxu2 }
 0x303   : > { %v2527_v5 = vadd.f32 %v4969_v18, %v2278_v27  ;;  %v1781_v18 = vadd.f32 %v5279_v34, %v5232_v43 }
 0x304   : > { %v3877_v42 = vpop.eup %3876  ;;  %v1944_v24 = vmul.f32 0.044715, %v1867_v48  ;;  %v2071_v22 = vmul.f32 0.7978846, %v2039_v17 }
 0x305   : > { %v2616_v4 = vadd.f32 %v5315_v0, %v2527_v5  ;;  %v2134_v36 = vadd.f32 1.0, %v3877_v42  ;;  %v5535_v59 = vpop.f32.mrf.mxu1  ;;  %v1912_v42 = vmul.f32 0.5, %v1867_v48 }
 0x306   : > { %v1976_v25 = vmul.f32 %v1944_v24, %v1867_v48  ;;  %3878 = vtanh.f32 %v2071_v22 }
 0x307   : > { %v3537_v30 = vpack.c.bf16 %v2616_v4, %v2614_v62  ;;  %v2166_v1 = vmul.f32 %v2134_v36, %v1910_v57  ;;  %v2691_v41 = vpack.c.bf16 %v2616_v4, %v2616_v4 }
 0x308   : > { %v2280_v26 = vpop.f32.mrf.mxu0  ;;  %v2008_v46 = vmul.f32 %v1976_v25, %v1867_v48 }
 0x309   : > { %3609 = vst [vmem:[%s5488_s24 + $0x8] sm:$0xff] %v3537_v30   ;;  %v2281_v0 = vadd.f32 %v5464_v21, %v2280_v26  ;;  %v1869_v55 = vpop.f32.mrf.mxu3  ;;  %v2187_v61 = vpack.c.bf16 %v2166_v1, %v2165_v58  ;;  %v5526_v12 = vunpack.c.l.b16 %v2691_v41 }
 0x30a   : > { %v5528_v11 = vadd.f32 %v1869_v55, %v1781_v18  ;;  %v2040_v6 = vadd.f32 %v2008_v46, %v1867_v48 }
 0x30b   : > { %2319 = vmatmul.bf16.gmra.mxu0 %v2187_v61  ;;  %v2870_v43 = vpack.c.b16 %v5526_v12, %v5524_v29  ;;  %v2530_v16 = vadd.f32 %v4988_v37, %v2281_v0 }
 0x30c   : > { %v1945_v31 = vmul.f32 0.044715, %v5528_v11  ;;  %v2072_v13 = vmul.f32 0.7978846, %v2040_v6  ;;  %v3879_v15 = vpop.eup %3878 }
 0x30d   : > { %v2619_v2 = vadd.f32 %v5340_v51, %v2530_v16  ;;  %v2135_v23 = vadd.f32 1.0, %v3879_v15  ;;  %v5556_v41 = vpop.f32.mrf.mxu1 }
 0x30e   : > { %v1977_v10 = vmul.f32 %v1945_v31, %v5528_v11  ;;  %3880 = vtanh.f32 %v2072_v13  ;;  %v5570_v31 = vld [vmem:[%s5984_s5] ss:$0 sm:$0xff] }
 0x30f   : > { %v2692_v24 = vpack.c.bf16 %v2619_v2, %v2619_v2  ;;  %v2167_v36 = vmul.f32 %v2135_v23, %v1911_v8  ;;  %v1788_v13 = vadd.f32 %v5570_v31, %v5181_v49  ;;  %v1913_v49 = vmul.f32 0.5, %v5528_v11 }
 0x310   : > { %v2282_v40 = vpop.f32.mrf.mxu0  ;;  %v2009_v60 = vmul.f32 %v1977_v10, %v5528_v11 }
 0x311   : > { %v2283_v38 = vadd.f32 %v5464_v21, %v2282_v40  ;;  %v1871_v3 = vpop.f32.mrf.mxu3 }
 0x312   : > { %v1872_v37 = vadd.f32 %v1871_v3, %v1783_v44  ;;  %v2041_v62 = vadd.f32 %v2009_v60, %v5528_v11 }
 0x313   : > { %v2532_v27 = vadd.f32 %v5017_v32, %v2283_v38  ;;  %v1786_v32 = vadd.f32 %v5279_v34, %v5160_v45  ;;  %v5562_v34 = vpop.f32.mrf.mxu2 }
 0x314   : > { %v3881_v17 = vpop.eup %3880  ;;  %v1946_v5 = vmul.f32 0.044715, %v1872_v37  ;;  %v2073_v4 = vmul.f32 0.7978846, %v2041_v62 }
 0x315   : > { %v2621_v7 = vadd.f32 %v5361_v14, %v2532_v27  ;;  %v2136_v51 = vadd.f32 1.0, %v3881_v17  ;;  %v5552_v14 = vunpack.c.l.b16 %v2692_v24  ;;  %v5579_v27 = vpop.f32.mrf.mxu1 }
 0x316   : > { %v1978_v19 = vmul.f32 %v1946_v5, %v1872_v37  ;;  %3882 = vtanh.f32 %v2073_v4  ;;  %v1914_v5 = vmul.f32 0.5, %v1872_v37 }
 0x317   : > { %v3542_v57 = vpack.c.bf16 %v2621_v7, %v2619_v2  ;;  %v2168_v56 = vmul.f32 %v2136_v51, %v1912_v42  ;;  %v2693_v25 = vpack.c.bf16 %v2621_v7, %v2621_v7  ;;  %v6000_v2 = vld [vmem:[#allocation17_spill] sm:$0xff] }
 0x318   : > { %v2285_v22 = vpop.f32.mrf.mxu0  ;;  %v2010_v30 = vmul.f32 %v1978_v19, %v1872_v37 }
 0x319   : > { %3610 = vst [vmem:[%s5488_s24 + $0x10] sm:$0xff] %v3542_v57   ;;  %v2286_v58 = vadd.f32 %v5464_v21, %v2285_v22  ;;  %v1874_v47 = vpop.f32.mrf.mxu3  ;;  %v2188_v1 = vpack.c.bf16 %v2168_v56, %v2167_v36  ;;  %v5554_v48 = vunpack.c.l.b16 %v2693_v25  ;;  %v6001_v36 = vld [vmem:[#allocation18_spill] sm:$0xff] }
 0x31a   : > { %v5558_v18 = vadd.f32 %v1874_v47, %v1786_v32  ;;  %v2042_v26 = vadd.f32 %v2010_v30, %v1872_v37  ;;  %v1791_v56 = vadd.f32 %v5570_v31, %v6001_v36 }
 0x31b   : > { %2324 = vmatmul.bf16.gmra.mxu0 %v2188_v1  ;;  %v2871_v45 = vpack.c.b16 %v5554_v48, %v5552_v14  ;;  %v2535_v55 = vadd.f32 %v5043_v35, %v2286_v58  ;;  %v5583_v7 = vpop.f32.mrf.mxu2 }
 0x31c   : > { %v1947_v46 = vmul.f32 0.044715, %v5558_v18  ;;  %v2074_v0 = vmul.f32 0.7978846, %v2042_v26  ;;  %v3883_v6 = vpop.eup %3882 }
 0x31d   : > { %v2624_v15 = vadd.f32 %v5381_v20, %v2535_v55  ;;  %v2137_v3 = vadd.f32 1.0, %v3883_v6  ;;  %v6002_v6 = vld [vmem:[#allocation19_spill] sm:$0xff] }
 0x31e   : > { %v1979_v61 = vmul.f32 %v1947_v46, %v5558_v18  ;;  %3884 = vtanh.f32 %v2074_v0  ;;  %v5598_v0 = vpop.f32.mrf.mxu1 }
 0x31f   : > { %v2694_v8 = vpack.c.bf16 %v2624_v15, %v2624_v15  ;;  %v2169_v19 = vmul.f32 %v2137_v3, %v1913_v49 }
 0x320   : > { %v2287_v16 = vpop.f32.mrf.mxu0  ;;  %v2011_v10 = vmul.f32 %v1979_v61, %v5558_v18 }
 0x321   : > { %v2288_v44 = vadd.f32 %v5464_v21, %v2287_v16  ;;  %v1876_v35 = vpop.f32.mrf.mxu3 }
 0x322   : > { %v1877_v40 = vadd.f32 %v1876_v35, %v1788_v13  ;;  %v2043_v60 = vadd.f32 %v2011_v10, %v5558_v18  ;;  %v1793_v13 = vadd.f32 %v5570_v31, %v6002_v6 }
 0x323   : > { %v2537_v38 = vadd.f32 %v6000_v2, %v2288_v44  ;;  %v5603_v16 = vpop.f32.mrf.mxu2 }
 0x324   : > { %v3885_v62 = vpop.eup %3884  ;;  %v1948_v23 = vmul.f32 0.044715, %v1877_v40  ;;  %v2075_v51 = vmul.f32 0.7978846, %v2043_v60 }
 0x325   : > { %v2626_v17 = vadd.f32 %v5412_v9, %v2537_v38  ;;  %v2138_v20 = vadd.f32 1.0, %v3885_v62  ;;  %v5588_v9 = vunpack.c.l.b16 %v2694_v8 }
 0x326   : > { %v1980_v42 = vmul.f32 %v1948_v23, %v1877_v40  ;;  %3886 = vtanh.f32 %v2075_v51 }
 0x327   : > { %v3547_v24 = vpack.c.bf16 %v2626_v17, %v2624_v15  ;;  %v2170_v4 = vmul.f32 %v2138_v20, %v1914_v5  ;;  %v2695_v57 = vpack.c.bf16 %v2626_v17, %v2626_v17  ;;  %v1915_v17 = vmul.f32 0.5, %v5558_v18 }
 0x328   : > { %v2290_v25 = vpop.f32.mrf.mxu0  ;;  %v2012_v32 = vmul.f32 %v1980_v42, %v1877_v40 }
 0x329   : > { %3611 = vst [vmem:[%s5488_s24 + $0x18] sm:$0xff] %v3547_v24   ;;  %v1879_v11 = vpop.f32.mrf.mxu3  ;;  %v2189_v22 = vpack.c.bf16 %v2170_v4, %v2169_v19  ;;  %v5590_v37 = vunpack.c.l.b16 %v2695_v57  ;;  %v2291_v46 = vadd.f32 %v5464_v21, %v2290_v25  ;;  %v5619_v4 = vpop.f32.mrf.mxu1  ;;  %v6003_v57 = vld [vmem:[#allocation20_spill] sm:$0xff] }
 0x32a   : > { %v5592_v30 = vadd.f32 %v1879_v11, %v1791_v56  ;;  %v2044_v58 = vadd.f32 %v2012_v32, %v1877_v40  ;;  %v1796_v18 = vadd.f32 %v5570_v31, %v6003_v57 }
 0x32b   : > { %2329 = vmatmul.bf16.gmra.mxu0 %v2189_v22  ;;  %v2872_v47 = vpack.c.b16 %v5590_v37, %v5588_v9  ;;  %v2540_v44 = vadd.f32 %v5500_v39, %v2291_v46  ;;  %v1916_v39 = vmul.f32 0.5, %v1877_v40  ;;  %v5624_v25 = vpop.f32.mrf.mxu2  ;;  %v6004_v46 = vld [vmem:[#allocation21_spill] sm:$0xff]  ;;  %v2765_v37 = vld [vmem:[%s464_s16] sm:$0x3] }
 0x32c   : > { %v1949_v1 = vmul.f32 0.044715, %v5592_v30  ;;  %v2076_v26 = vmul.f32 0.7978846, %v2044_v58  ;;  %v3887_v61 = vpop.eup %3886  ;;  %v5691_v14 = vperm.slane %v2765_v37, 0  ;;  %v5693_v48 = vperm.slane %v2765_v37, 1 }
 0x32d   : > { %v2139_v62 = vadd.f32 1.0, %v3887_v61  ;;  %v5612_v5 = vadd.f32 %v5504_v28, %v2540_v44 }
 0x32e   : > { %v1981_v55 = vmul.f32 %v1949_v1, %v5592_v30  ;;  %3888 = vtanh.f32 %v2076_v26 }
 0x330   : > { %v2292_v10 = vpop.f32.mrf.mxu0  ;;  %v2013_v15 = vmul.f32 %v1981_v55, %v5592_v30  ;;  %v1798_v55 = vadd.f32 %v5570_v31, %v6004_v46 }
 0x331   : > { %v2293_v35 = vadd.f32 %v5464_v21, %v2292_v10  ;;  %v1881_v60 = vpop.f32.mrf.mxu3  ;;  %v2556_v44 = vpop.f32.mrf.mxu1 }
 0x332   : > { %v1882_v2 = vadd.f32 %v1881_v60, %v1793_v13  ;;  %v2045_v38 = vadd.f32 %v2013_v15, %v5592_v30 }
 0x333   : > { %v2542_v3 = vadd.f32 %v5516_v53, %v2293_v35  ;;  %v2171_v53 = vmul.f32 %v2139_v62, %v1915_v17  ;;  %v1917_v17 = vmul.f32 0.5, %v5592_v30 }
 0x334   : > { %v3889_v23 = vpop.eup %3888  ;;  %v1950_v49 = vmul.f32 0.044715, %v1882_v2  ;;  %v2077_v51 = vmul.f32 0.7978846, %v2045_v38 }
 0x335   : > { %v5615_v20 = vadd.f32 %v5520_v52, %v2542_v3  ;;  %v2140_v8 = vadd.f32 1.0, %v3889_v23  ;;  %v2645_v23 = vpop.f32.mrf.mxu2 }
 0x336   : > { %v1982_v42 = vmul.f32 %v1950_v49, %v1882_v2  ;;  %3890 = vtanh.f32 %v2077_v51 }
 0x337   : > { %v3552_v24 = vpack.c.bf16 %v5615_v20, %v5612_v5  ;;  %v2172_v19 = vmul.f32 %v2140_v8, %v1916_v39  ;;  %v1918_v39 = vmul.f32 0.5, %v1882_v2 }
 0x338   : > { %v2295_v36 = vpop.f32.mrf.mxu0  ;;  %v2014_v28 = vmul.f32 %v1982_v42, %v1882_v2 }
 0x339   : > { %3612 = vst [vmem:[%s5488_s24 + $0x20] sm:$0xff] %v3552_v24   ;;  %v1884_v56 = vpop.f32.mrf.mxu3  ;;  %v2190_v52 = vpack.c.bf16 %v2172_v19, %v2171_v53  ;;  %v2296_v58 = vadd.f32 %v5464_v21, %v2295_v36 }
 0x33a   : > { %v1885_v40 = vadd.f32 %v1884_v56, %v1796_v18  ;;  %v2046_v32 = vadd.f32 %v2014_v28, %v1882_v2 }
 0x33b   : > { %2334 = vmatmul.bf16.gmra.mxu0 %v2190_v52  ;;  %v2545_v13 = vadd.f32 %v5535_v59, %v2296_v58 }
 0x33c   : > { %v1951_v11 = vmul.f32 0.044715, %v1885_v40  ;;  %v2078_v22 = vmul.f32 0.7978846, %v2046_v32  ;;  %v3891_v26 = vpop.eup %3890 }
 0x33d   : > { %v2141_v3 = vadd.f32 1.0, %v3891_v26  ;;  %v5634_v31 = vadd.f32 %v5542_v63, %v2545_v13  ;;  %v2559_v63 = vpop.f32.mrf.mxu1  ;;  %v2648_v2 = vpop.f32.mrf.mxu2 }
 0x33e   : > { %v1983_v1 = vmul.f32 %v1951_v11, %v1885_v40  ;;  %3892 = vtanh.f32 %v2078_v22 }
 0x33f   : > { %v2173_v24 = vmul.f32 %v2141_v3, %v1917_v17 }
 0x340   : > { %v2297_v61 = vpop.f32.mrf.mxu0  ;;  %v2015_v6 = vmul.f32 %v1983_v1, %v1885_v40  ;;  %v1919_v1 = vmul.f32 0.5, %v1885_v40 }
 0x341   : > { %v2298_v10 = vadd.f32 %v5464_v21, %v2297_v61  ;;  %v1886_v15 = vpop.f32.mrf.mxu3 }
 0x342   : > { %v1887_v35 = vadd.f32 %v1886_v15, %v1798_v55  ;;  %v2047_v60 = vadd.f32 %v2015_v6, %v1885_v40 }
 0x343   : > { %v2547_v38 = vadd.f32 %v5556_v41, %v2298_v10 }
 0x344   : > { %v3893_v62 = vpop.eup %3892  ;;  %v1952_v49 = vmul.f32 0.044715, %v1887_v35  ;;  %v2079_v51 = vmul.f32 0.7978846, %v2047_v60  ;;  %v1920_v55 = vmul.f32 0.5, %v1887_v35 }
 0x345   : > { %v5637_v59 = vadd.f32 %v5562_v34, %v2547_v38  ;;  %v2142_v8 = vadd.f32 1.0, %v3893_v62  ;;  %v2561_v6 = vpop.f32.mrf.mxu1  ;;  %v2650_v60 = vpop.f32.mrf.mxu2 }
 0x346   : > { %v1984_v42 = vmul.f32 %v1952_v49, %v1887_v35  ;;  %3894 = vtanh.f32 %v2079_v51 }
 0x347   : > { %v3557_v41 = vpack.c.bf16 %v5637_v59, %v5634_v31  ;;  %v2174_v53 = vmul.f32 %v2142_v8, %v1918_v39 }
 0x348   : > { %v2300_v19 = vpop.f32.mrf.mxu0  ;;  %v2016_v57 = vmul.f32 %v1984_v42, %v1887_v35 }
 0x349   : > { %3613 = vst [vmem:[%s5488_s24 + $0x28] sm:$0xff] %v3557_v41   ;;  %v2191_v18 = vpack.c.bf16 %v2174_v53, %v2173_v24  ;;  %v2301_v34 = vadd.f32 %v5464_v21, %v2300_v19 }
 0x34a   : > { %v2048_v30 = vadd.f32 %v2016_v57, %v1887_v35 }
 0x34b   : > { %2339 = vmatmul.bf16.gmra.mxu0 %v2191_v18  ;;  %v2550_v52 = vadd.f32 %v5579_v27, %v2301_v34  ;;  %v2698_v34 = vpack.c.bf16 %v5634_v31, %v5634_v31 }
 0x34c   : > { %v2080_v36 = vmul.f32 0.7978846, %v2048_v30  ;;  %v3895_v28 = vpop.eup %3894 }
 0x34d   : > { %v2143_v22 = vadd.f32 1.0, %v3895_v28  ;;  %v2639_v26 = vadd.f32 %v5583_v7, %v2550_v52  ;;  %v2564_v40 = vpop.f32.mrf.mxu1  ;;  %v2653_v62 = vpop.f32.mrf.mxu2  ;;  %v2697_v52 = vpack.c.bf16 %v5615_v20, %v5615_v20 }
 0x34e   : > { %3896 = vtanh.f32 %v2080_v36 }
 0x34f   : > { %v2175_v10 = vmul.f32 %v2143_v22, %v1919_v1 }
 0x350   : > { %v2302_v56 = vpop.f32.mrf.mxu0 }
 0x351   : > { %v2303_v32 = vadd.f32 %v5464_v21, %v2302_v56 }
 0x353   : > { %v2552_v11 = vadd.f32 %v5598_v0, %v2303_v32 }
 0x354   : > { %v3897_v58 = vpop.eup %3896 }
 0x355   : > { %v2641_v46 = vadd.f32 %v5603_v16, %v2552_v11  ;;  %v2144_v61 = vadd.f32 1.0, %v3897_v58  ;;  %v2566_v57 = vpop.f32.mrf.mxu1  ;;  %v2655_v36 = vpop.f32.mrf.mxu2  ;;  %v2847_v58 = vunpack.c.l.b16 %v2698_v34 }
 0x357   : > { %v3562_v13 = vpack.c.bf16 %v2641_v46, %v2639_v26  ;;  %v2176_v15 = vmul.f32 %v2144_v61, %v1920_v55  ;;  %v2701_v51 = vpack.c.bf16 %v2641_v46, %v2641_v46 }
 0x358   : > { %v2305_v27 = vpop.f32.mrf.mxu0 }
 0x359   : > { %3614 = vst [vmem:[%s5488_s24 + $0x30] sm:$0xff] %v3562_v13   ;;  %v2306_v38 = vadd.f32 %v5464_v21, %v2305_v27  ;;  %v2192_v3 = vpack.c.bf16 %v2176_v15, %v2175_v10  ;;  %v2850_v30 = vunpack.c.l.b16 %v2701_v51  ;;  %v4020_v51 = vmov 0.0  }
 0x35a   : > { %2763 = vst.msk [vmem:[%s5817_s12 + $0x10] sm:$0xff] %vm2760_vm12, %v4020_v51 }
 0x35b   : > { %2344 = vmatmul.bf16.gmra.mxu0 %v2192_v3  ;;  %v2555_v0 = vadd.f32 %v5619_v4, %v2306_v38  ;;  %v2700_v4 = vpack.c.bf16 %v2639_v26, %v2639_v26  ;;  %v2846_v26 = vunpack.c.l.b16 %v2697_v52  ;;  %2761 = vst.msk [vmem:[%s5817_s12] sm:$0xff] %vm2760_vm12, %v4020_v51 }
 0x35c   : > { %2762 = vst.msk [vmem:[%s5817_s12 + $0x8] sm:$0xff] %vm2760_vm12, %v4020_v51 }
 0x35d   : > { %v2644_v16 = vadd.f32 %v5624_v25, %v2555_v0  ;;  %v2699_v25 = vpack.c.bf16 %v5637_v59, %v5637_v59  ;;  %v2696_v59 = vpack.c.bf16 %v5612_v5, %v5612_v5  ;;  %v2569_v46 = vpop.f32.mrf.mxu1  ;;  %v2658_v20 = vpop.f32.mrf.mxu2  ;;  %2764 = vst.msk [vmem:[%s5817_s12 + $0x18] sm:$0xff] %vm2760_vm12, %v4020_v51 }
 0x35f   : > { %v2702_v17 = vpack.c.bf16 %v2644_v16, %v2644_v16  ;;  %v2848_v56 = vunpack.c.l.b16 %v2699_v25  ;;  %v2845_v55 = vunpack.c.l.b16 %v2696_v59 }
 0x360   : > { %v2307_v7 = vpop.f32.mrf.mxu0 }
 0x361   : > { %v2308_v35 = vadd.f32 %v5464_v21, %v2307_v7  ;;  %v2851_v24 = vunpack.c.l.b16 %v2702_v17  ;;  %v2874_v1 = vpack.c.b16 %v2848_v56, %v2847_v58 }
 0x363   : > { %v2557_v49 = vadd.f32 %v2556_v44, %v2308_v35 }
 0x365   : > { %v2646_v39 = vadd.f32 %v2645_v23, %v2557_v49  ;;  %v2849_v23 = vunpack.c.l.b16 %v2700_v4  ;;  %v2571_v3 = vpop.f32.mrf.mxu1  ;;  %v2660_v0 = vpop.f32.mrf.mxu2 }
 0x367   : > { %v2703_v8 = vpack.c.bf16 %v2646_v39, %v2646_v39  ;;  %v3567_v42 = vpack.c.bf16 %v2646_v39, %v2644_v16  ;;  %v2875_v28 = vpack.c.b16 %v2850_v30, %v2849_v23 }
 0x368   : > { %v2310_v41 = vpop.f32.mrf.mxu0 }
 0x369   : > { %3615 = vst [vmem:[%s5488_s24 + $0x38] sm:$0xff] %v3567_v42   ;;  %v2852_v53 = vunpack.c.l.b16 %v2703_v8  ;;  %v2311_v19 = vadd.f32 %v5464_v21, %v2310_v41 }
 0x36b   : > { %v2876_v18 = vpack.c.b16 %v2852_v53, %v2851_v24  ;;  %v2560_v44 = vadd.f32 %v2559_v63, %v2311_v19 }
 0x36d   : > { %2901 = vmatpush.bf16.msra.mxu3 %v2876_v18  ;;  %v2649_v11 = vadd.f32 %v2648_v2, %v2560_v44  ;;  %v2873_v2 = vpack.c.b16 %v2846_v26, %v2845_v55  ;;  %v2574_v8 = vpop.f32.mrf.mxu1  ;;  %v2663_v53 = vpop.f32.mrf.mxu2 }
 0x36f   : > { %v2704_v61 = vpack.c.bf16 %v2649_v11, %v2649_v11 }
 0x370   : > { %v2312_v32 = vpop.f32.mrf.mxu0 }
 0x371   : > { %v2313_v22 = vadd.f32 %v5464_v21, %v2312_v32  ;;  %2902 = vmatpush.bf16.msra.mxu3 %v2875_v28  ;;  %v5666_v38 = vunpack.c.l.b16 %v2704_v61 }
 0x373   : > { %v2562_v63 = vadd.f32 %v2561_v6, %v2313_v22 }
 0x375   : > { %v2651_v31 = vadd.f32 %v2650_v60, %v2562_v63  ;;  %2903 = vmatpush.bf16.msra.mxu3 %v2874_v1  ;;  %v2576_v34 = vpop.f32.mrf.mxu1  ;;  %v2665_v52 = vpop.f32.mrf.mxu2 }
 0x377   : > { %v3572_v13 = vpack.c.bf16 %v2651_v31, %v2649_v11  ;;  %v2705_v10 = vpack.c.bf16 %v2651_v31, %v2651_v31 }
 0x378   : > { %v2315_v15 = vpop.f32.mrf.mxu0 }
 0x379   : > { %3616 = vst [vmem:[%s5488_s24 + $0x40] sm:$0xff] %v3572_v13   ;;  %v2316_v27 = vadd.f32 %v5464_v21, %v2315_v15  ;;  %2904 = vmatpush.bf16.msra.mxu3 %v2873_v2  ;;  %v5668_v5 = vunpack.c.l.b16 %v2705_v10 }
 0x37b   : > { %v2877_v6 = vpack.c.b16 %v5668_v5, %v5666_v38  ;;  %v2565_v60 = vadd.f32 %v2564_v40, %v2316_v27  ;;  %v2766_v40 = vlaneseq  ;;  %v2948_v38 = vld [vmem:[%s5817_s12 + $0x8] sm:$0xff] }
 0x37d   : > { %2905 = vmatpush.bf16.msra.mxu3 %v2872_v47  ;;  %v2654_v7 = vadd.f32 %v2653_v62, %v2565_v60  ;;  %v5683_v17 = vshrl.u32 %v2766_v40, 7  ;;  %v2579_v13 = vpop.f32.mrf.mxu1  ;;  %v2668_v10 = vpop.f32.mrf.mxu2 }
 0x37f   : > { %v2706_v9 = vpack.c.bf16 %v2654_v7, %v2654_v7  ;;  %v5689_v62 = vadd.s32 16, %v5683_v17  ;;  %v5719_v18 = vadd.s32 24, %v5683_v17  ;;  %vm2773_vm6 = vcmp.eq.s32.totalorder %v5683_v17, %v5691_v14 }
 0x380   : > { %v2317_v16 = vpop.f32.mrf.mxu0  ;;  %vm2774_vm7 = vcmp.eq.s32.totalorder %v5683_v17, %v5693_v48  ;;  %v3461_v30 = vsel %vm2773_vm6, 1.0, %v4020_v51  ;;  %v5747_v22 = vadd.s32 8, %v5683_v17 }
 0x381   : > { %v2318_v35 = vadd.f32 %v5464_v21, %v2317_v16  ;;  %2906 = vmatpush.bf16.msra.mxu3 %v2871_v45  ;;  %vm2777_vm2 = vcmp.eq.s32.totalorder %v5689_v62, %v5691_v14  ;;  %vm2778_vm3 = vcmp.eq.s32.totalorder %v5689_v62, %v5693_v48  ;;  %vm2779_vm4 = vcmp.eq.s32.totalorder %v5719_v18, %v5691_v14 }
 0x382   : > { %v3465_v29 = vsel %vm2777_vm2, 1.0, %v4020_v51  ;;  %v3466_v24 = vsel %vm2778_vm3, 1.0, %v4020_v51  ;;  %vm2780_vm5 = vcmp.eq.s32.totalorder %v5719_v18, %v5693_v48  ;;  %v3467_v50 = vsel %vm2779_vm4, 1.0, %v4020_v51  ;;  %vm3471_vm11 = vmpackc.low %vm2779_vm4, %vm2777_vm2 }
 0x383   : > { %v2567_v49 = vadd.f32 %v2566_v57, %v2318_v35  ;;  %v2957_v19 = vadd.f32 %v3466_v24, %v3465_v29  ;;  %v3462_v23 = vsel %vm2774_vm7, 1.0, %v4020_v51  ;;  %vm2775_vm8 = vcmp.eq.s32.totalorder %v5747_v22, %v5691_v14  ;;  %vm3475_vm14 = vmpackc.low %vm2780_vm5, %vm2778_vm3 }
 0x384   : > { %v2951_v28 = vadd.f32 %v3462_v23, %v3461_v30  ;;  %vm2776_vm9 = vcmp.eq.s32.totalorder %v5747_v22, %v5693_v48  ;;  %v3463_v1 = vsel %vm2775_vm8, 1.0, %v4020_v51  ;;  %vm3469_vm10 = vmpackc.low %vm2775_vm8, %vm2773_vm6 }
 0x385   : > { %v2656_v47 = vadd.f32 %v2655_v36, %v2567_v49  ;;  %2907 = vmatpush.bf16.msra.mxu3 %v2870_v43  ;;  %v5708_v43 = vunpack.c.l.b16 %v2706_v9  ;;  %2958 = vadd.xlane.f32.xlu1 %v2957_v19  ;;  %v3464_v26 = vsel %vm2776_vm9, 1.0, %v4020_v51  ;;  %v2581_v16 = vpop.f32.mrf.mxu1  ;;  %v2670_v49 = vpop.f32.mrf.mxu2  ;;  %vm3473_vm13 = vmpackc.low %vm2776_vm9, %vm2774_vm7 }
 0x386   : > { %2952 = vadd.xlane.f32.xlu0 %v2951_v28  ;;  %v2954_v61 = vadd.f32 %v3464_v26, %v3463_v1 }
 0x387   : > { %v3577_v45 = vpack.c.bf16 %v2656_v47, %v2654_v7  ;;  %v2707_v39 = vpack.c.bf16 %v2656_v47, %v2656_v47 }
 0x388   : > { %v2320_v42 = vpop.f32.mrf.mxu0 }
 0x389   : > { %3617 = vst [vmem:[%s5488_s24 + $0x48] sm:$0xff] %v3577_v45   ;;  %v2321_v12 = vadd.f32 %v5464_v21, %v2320_v42  ;;  %2908 = vmatpush.bf16.msra.mxu3 %v2869_v33  ;;  %v5710_v41 = vunpack.c.l.b16 %v2707_v39  ;;  %v3468_v33 = vsel %vm2780_vm5, 1.0, %v4020_v51  ;;  %v2950_v51 = vld [vmem:[%s5817_s12 + $0x18] sm:$0xff] }
 0x38a   : > { %v2960_v44 = vadd.f32 %v3468_v33, %v3467_v50 }
 0x38b   : > { %v2878_v4 = vpack.c.b16 %v5710_v41, %v5708_v43  ;;  %v2570_v57 = vadd.f32 %v2569_v46, %v2321_v12 }
 0x38d   : > { %v2659_v25 = vadd.f32 %v2658_v20, %v2570_v57  ;;  %2961 = vadd.xlane.f32.xlu1 %v2960_v44  ;;  %v2673_v24 = vpop.f32.mrf.mxu2 }
 0x38e   : > { %2955 = vadd.xlane.f32.xlu0 %v2954_v61 }
 0x38f   : > { %v2708_v11 = vpack.c.bf16 %v2659_v25, %v2659_v25 }
 0x390   : > { %v2322_v54 = vpop.f32.mrf.mxu0 }
 0x391   : > { %v2323_v36 = vadd.f32 %v5464_v21, %v2322_v54  ;;  %v5763_v31 = vunpack.c.l.b16 %v2708_v11 }
 0x393   : > { %v2572_v56 = vadd.f32 %v2571_v3, %v2323_v36 }
 0x395   : > { %v2661_v32 = vadd.f32 %v2660_v0, %v2572_v56  ;;  %v2675_v30 = vpop.f32.mrf.mxu2 }
 0x397   : > { %v3582_v58 = vpack.c.bf16 %v2661_v32, %v2659_v25  ;;  %v2709_v59 = vpack.c.bf16 %v2661_v32, %v2661_v32  ;;  %v4021_v32 = vmov 1.0|1.0  }
 0x398   : > { %v2325_v63 = vpop.f32.mrf.mxu0  ;;  %3470 = vmatmul.msk.bf16.vlgmr.msra.gmra.mxu3 %vm3469_vm10, %v4021_v32 }
 0x399   : > { %3618 = vst [vmem:[%s5488_s24 + $0x50] sm:$0xff] %v3582_v58   ;;  %v2326_v46 = vadd.f32 %v5464_v21, %v2325_v63  ;;  %v5765_v55 = vunpack.c.l.b16 %v2709_v59 }
 0x39b   : > { %v2879_v20 = vpack.c.b16 %v5765_v55, %v5763_v31  ;;  %v2575_v2 = vadd.f32 %v2574_v8, %v2326_v46  ;;  %v2584_v8 = vpop.f32.mrf.mxu1 }
 0x39d   : > { %v2664_v27 = vadd.f32 %v2663_v53, %v2575_v2  ;;  %v2678_v11 = vpop.f32.mrf.mxu2 }
 0x39f   : > { %v2710_v7 = vpack.c.bf16 %v2664_v27, %v2664_v27 }
 0x3a0   : > { %v2327_v15 = vpop.f32.mrf.mxu0 }
 0x3a1   : > { %v2328_v60 = vadd.f32 %v5464_v21, %v2327_v15  ;;  %v5771_v37 = vunpack.c.l.b16 %v2710_v7 }
 0x3a3   : > { %v2577_v3 = vadd.f32 %v2576_v34, %v2328_v60  ;;  %v2586_v33 = vpop.f32.mrf.mxu1 }
 0x3a5   : > { %v2666_v0 = vadd.f32 %v2665_v52, %v2577_v3  ;;  %v2680_v26 = vpop.f32.mrf.mxu2 }
 0x3a7   : > { %v3587_v35 = vpack.c.bf16 %v2666_v0, %v2664_v27  ;;  %v2711_v40 = vpack.c.bf16 %v2666_v0, %v2666_v0 }
 0x3a8   : > { %v2330_v9 = vpop.f32.mrf.mxu0  ;;  %3472 = vmatmul.msk.bf16.gmra.mxu3 %vm3471_vm11, %v4021_v32 }
 0x3a9   : > { %3619 = vst [vmem:[%s5488_s24 + $0x58] sm:$0xff] %v3587_v35   ;;  %v5773_v47 = vunpack.c.l.b16 %v2711_v40  ;;  %v2331_v39 = vadd.f32 %v5464_v21, %v2330_v9 }
 0x3ab   : > { %v2880_v45 = vpack.c.b16 %v5773_v47, %v5771_v37  ;;  %v2580_v29 = vadd.f32 %v2579_v13, %v2331_v39  ;;  %v2589_v28 = vpop.f32.mrf.mxu1  ;;  %v2947_v37 = vld [vmem:[%s5817_s12] sm:$0xff] }
 0x3ad   : > { %v5779_v19 = vadd.f32 %v2668_v10, %v2580_v29  ;;  %v2683_v7 = vpop.f32.mrf.mxu2 }
 0x3b0   : > { %v2332_v42 = vpop.f32.mrf.mxu0 }
 0x3b1   : > { %v2333_v12 = vadd.f32 %v5464_v21, %v2332_v42 }
 0x3b3   : > { %v2582_v53 = vadd.f32 %v2581_v16, %v2333_v12  ;;  %v2591_v1 = vpop.f32.mrf.mxu1 }
 0x3b5   : > { %v5781_v57 = vadd.f32 %v2670_v49, %v2582_v53  ;;  %v2685_v39 = vpop.f32.mrf.mxu2 }
 0x3b7   : > { %v3592_v54 = vpack.c.bf16 %v5781_v57, %v5779_v19 }
 0x3b8   : > { %v2335_v50 = vpop.f32.mrf.mxu0 }
 0x3b9   : > { %3620 = vst [vmem:[%s5488_s24 + $0x60] sm:$0xff] %v3592_v54   ;;  %v2336_v25 = vadd.f32 %v5464_v21, %v2335_v50 }
 0x3bb   : > { %v2585_v44 = vadd.f32 %v2584_v8, %v2336_v25  ;;  %v2594_v60 = vpop.f32.mrf.mxu1 }
 0x3bd   : > { %v2674_v56 = vadd.f32 %v2673_v24, %v2585_v44 }
 0x3bf   : > { %v2714_v44 = vpack.c.bf16 %v2674_v56, %v2674_v56 }
 0x3c0   : > { %v2337_v36 = vpop.f32.mrf.mxu0 }
 0x3c1   : > { %v2338_v23 = vadd.f32 %v5464_v21, %v2337_v36 }
 0x3c3   : > { %v2587_v34 = vadd.f32 %v2586_v33, %v2338_v23  ;;  %v2596_v9 = vpop.f32.mrf.mxu1 }
 0x3c5   : > { %v2676_v52 = vadd.f32 %v2675_v30, %v2587_v34  ;;  %v2713_v34 = vpack.c.bf16 %v5781_v57, %v5781_v57 }
 0x3c7   : > { %v3597_v58 = vpack.c.bf16 %v2676_v52, %v2674_v56  ;;  %v2715_v25 = vpack.c.bf16 %v2676_v52, %v2676_v52 }
 0x3c8   : > { %v2340_v59 = vpop.f32.mrf.mxu0 }
 0x3c9   : > { %3621 = vst [vmem:[%s5488_s24 + $0x68] sm:$0xff] %v3597_v58   ;;  %v2341_v63 = vadd.f32 %v5464_v21, %v2340_v59  ;;  %v2864_v23 = vunpack.c.l.b16 %v2715_v25  ;;  %v2862_v59 = vunpack.c.l.b16 %v2713_v34 }
 0x3cb   : > { %v2590_v61 = vadd.f32 %v2589_v28, %v2341_v63  ;;  %v2863_v28 = vunpack.c.l.b16 %v2714_v44 }
 0x3cd   : > { %v2679_v10 = vadd.f32 %v2678_v11, %v2590_v61  ;;  %v2712_v11 = vpack.c.bf16 %v5779_v19, %v5779_v19  ;;  %v2882_v58 = vpack.c.b16 %v2864_v23, %v2863_v28  ;;  %v2949_v19 = vld [vmem:[%s5817_s12 + $0x10] sm:$0xff] }
 0x3cf   : > { %v2716_v50 = vpack.c.bf16 %v2679_v10, %v2679_v10  ;;  %v2861_v57 = vunpack.c.l.b16 %v2712_v11 }
 0x3d0   : > { %v2342_v46 = vpop.f32.mrf.mxu0 }
 0x3d1   : > { %v2343_v13 = vadd.f32 %v5464_v21, %v2342_v46  ;;  %v2865_v36 = vunpack.c.l.b16 %v2716_v50  ;;  %v2881_v56 = vpack.c.b16 %v2862_v59, %v2861_v57 }
 0x3d3   : > { %v2592_v2 = vadd.f32 %v2591_v1, %v2343_v13  ;;  %v4022_v1 = vmov 0  }
 0x3d4   : > { %3703 = vset.pattern.permute.xlu1 %v4022_v1  ;;  %3702 = vset.pattern.permute.xlu0 %v4022_v1 }
 0x3d5   : > { %v2681_v15 = vadd.f32 %v2680_v26, %v2592_v2  ;;  %3701 = vset.pattern.permute.xlu2 %v4022_v1 }
 0x3d7   : > { %v3602_v27 = vpack.c.bf16 %v2681_v15, %v2679_v10  ;;  %v2717_v24 = vpack.c.bf16 %v2681_v15, %v2681_v15 }
 0x3d8   : > { %v2345_v3 = vpop.f32.mrf.mxu0 }
 0x3d9   : > { %3622 = vst [vmem:[%s5488_s24 + $0x70] sm:$0xff] %v3602_v27   ;;  %v2346_v0 = vadd.f32 %v5464_v21, %v2345_v3  ;;  %v2866_v30 = vunpack.c.l.b16 %v2717_v24 }
 0x3db   : > { %v2595_v16 = vadd.f32 %v2594_v60, %v2346_v0 }
 0x3dd   : > { %v2684_v40 = vadd.f32 %v2683_v7, %v2595_v16 }
 0x3df   : > { %v2718_v8 = vpack.c.bf16 %v2684_v40, %v2684_v40 }
 0x3e0   : > { %v2347_v35 = vpop.f32.mrf.mxu0 }
 0x3e1   : > { %v2348_v49 = vadd.f32 %v5464_v21, %v2347_v35  ;;  %v2867_v53 = vunpack.c.l.b16 %v2718_v8  ;;  %v2883_v21 = vpack.c.b16 %v2866_v30, %v2865_v36 }
 0x3e3   : > { %v2597_v14 = vadd.f32 %v2596_v9, %v2348_v49 }
 0x3e5   : > { %v2686_v42 = vadd.f32 %v2685_v39, %v2597_v14 }
 0x3e7   : > { %v2719_v29 = vpack.c.bf16 %v2686_v42, %v2686_v42  ;;  %v3607_v12 = vpack.c.bf16 %v2686_v42, %v2684_v40 }
 0x3e9   : > { %3623 = vst [vmem:[%s5488_s24 + $0x78] sm:$0xff] %v3607_v12   ;;  %v2868_v54 = vunpack.c.l.b16 %v2719_v29 }
 0x3eb   : > { %v2884_v33 = vpack.c.b16 %v2868_v54, %v2867_v53 }
 0x3ed   : > { %2920 = vmatpush.bf16.msrb.mxu3 %v2884_v33 }
 0x3f1   : > { %2921 = vmatpush.bf16.msrb.mxu3 %v2883_v21 }
 0x3f5   : > { %2922 = vmatpush.bf16.msrb.mxu3 %v2882_v58 }
 0x3f8   : > { %v2959_v52 = vpop.xlane.xlu1 %2958 }
 0x3f9   : > { %2923 = vmatpush.bf16.msrb.mxu3 %v2881_v56  ;;  %v2965_v63 = vadd.f32 %v2959_v52, %v2949_v19  ;;  %v2953_v31 = vpop.xlane.xlu0 %2952 }
 0x3fb   : > { %2970 = vst.msk [vmem:[%s5817_s12 + $0x10] sm:$0xff] %vm2760_vm12, %v2965_v63 }
 0x3fd   : > { %2924 = vmatpush.bf16.msrb.mxu3 %v2880_v45 }
 0x400   : > { %v2962_v47 = vpop.xlane.xlu1 %2961 }
 0x401   : > { %2925 = vmatpush.bf16.msrb.mxu3 %v2879_v20  ;;  %v2966_v55 = vadd.f32 %v2962_v47, %v2950_v51  ;;  %v2963_v20 = vadd.f32 %v2953_v31, %v2947_v37  ;;  %v2956_v5 = vpop.xlane.xlu0 %2955 }
 0x402   : > { %v2977_v43 = vld [vmem:[%s5817_s12 + $0x10] sm:$0xff] }
 0x403   : > { %v2981_v41 = vmax.f32 %v2977_v43, 1.0  ;;  %2971 = vst.msk [vmem:[%s5817_s12 + $0x18] sm:$0xff] %vm2760_vm12, %v2966_v55 }
 0x404   : > { %2968 = vst.msk [vmem:[%s5817_s12] sm:$0xff] %vm2760_vm12, %v2963_v20 }
 0x405   : > { %2926 = vmatpush.bf16.msrb.mxu3 %v2878_v4  ;;  %3898 = vrcp.f32 %v2981_v41 }
 0x409   : > { %2927 = vmatpush.bf16.msrb.mxu3 %v2877_v6  ;;  %v2964_v6 = vadd.f32 %v2956_v5, %v2948_v38 }
 0x40a   : > { %v2978_v17 = vld [vmem:[%s5817_s12 + $0x18] sm:$0xff] }
 0x40b   : > { %v3899_v4 = vpop.eup %3898  ;;  %v2982_v45 = vmax.f32 %v2978_v17, 1.0  ;;  %2969 = vst.msk [vmem:[%s5817_s12 + $0x8] sm:$0xff] %vm2760_vm12, %v2964_v6  ;;  %v2975_v22 = vld [vmem:[%s5817_s12] sm:$0xff] }
 0x40c   : > { %3474 = vmatmul.msk.bf16.vlgmr.msrb.gmra.mxu3 %vm3473_vm13, %v4021_v32  ;;  %2989 = vst.msk [vmem:[%s5817_s12 + $0x10] sm:$0xff] %vm2760_vm12, %v3899_v4  ;;  %3007 = vperm.xlu0 %3702, %v3899_v4   ;;  %v2979_v26 = vmax.f32 %v2975_v22, 1.0 }
 0x40d   : > { %3900 = vrcp.f32 %v2982_v45 }
 0x40e   : > { %3902 = vrcp.f32 %v2979_v26 }
 0x412   : > { %v2976_v46 = vld [vmem:[%s5817_s12 + $0x8] sm:$0xff] }
 0x413   : > { %v3901_v61 = vpop.eup %3900  ;;  %v2980_v13 = vmax.f32 %v2976_v46, 1.0 }
 0x414   : > { %v3903_v2 = vpop.eup %3902  ;;  %2990 = vst.msk [vmem:[%s5817_s12 + $0x18] sm:$0xff] %vm2760_vm12, %v3901_v61  ;;  %3012 = vperm.xlu1 %3703, %v3901_v61  }
 0x415   : > { %3904 = vrcp.f32 %v2980_v13  ;;  %2997 = vperm.xlu2 %3701, %v3903_v2   ;;  %2987 = vst.msk [vmem:[%s5817_s12] sm:$0xff] %vm2760_vm12, %v3903_v2 }
 0x41b   : > { %v3905_v62 = vpop.eup %3904 }
 0x41c   : > { %3476 = vmatmul.msk.bf16.gmra.mxu3 %vm3475_vm14, %v4021_v32  ;;  %2988 = vst.msk [vmem:[%s5817_s12 + $0x8] sm:$0xff] %vm2760_vm12, %v3905_v62 }
 0x41d   : > { %3002 = vperm.xlu2 %3701, %v3905_v62  }
 0x41e   : > { %3935 = shalt.err (!%p3932_p5)
}
 0x41f   : > { %s4023_s24 = smov 64   ;;  %s4024_s14 = smov 4   ;;  %v2910_v48 = vpop.f32.mrf.mxu3 }
 0x420   : > { %3634 = dma.vmem_to_hbm [thread:$0]  (%p4127_p4), %s3049_s26, 2048, %s3051_s28, %s3024_s0, %s4023_s24, %s4023_s24, %s4024_s14  }
 0x421   : > { %s3229_s3 = sshll.u32 %s5477_s15, 5  ;;  %s3528_s0 = sshll.u32 %s4010_s20, 5 }
 0x422   : > { %s439_s1 = scalar_lea.vmem [#allocation4], %s3229_s3  ;;  %s3064_s5 = scalar_lea.hbm %s5945_s10, %s3528_s0 }
 0x423   : > { %s3065_s6 = sshll.u32 %s439_s1, 4  ;;  %s3067_s13 = sshll.u32 %s3064_s5, 4  ;;  %s3066_s6 = int_to_ptr.vmem [resolvable:$true] %s3065_s6  ;;  %s3068_s13 = int_to_ptr.hbm [resolvable:$true] %s3067_s13 }
 0x424   : > { %s3029_s16 = scalar_lea.sflag [#allocation5], %s5477_s15  ;;  %s3950_s23 = sshra.s32 %s3068_s13, 4  ;;  %s3951_s23 = int_to_ptr.hbm [resolvable:$true] %s3950_s23 }
 0x425   : > { %s3952_s20 = scalar_lea.hbm %s3951_s23, 32  ;;  %s3956_s12 = scalar_lea.hbm %s5945_s10, 64 }
 0x426   : > { %p3953_p6 = scmp.ne.s32.totalorder %s3951_s23, %s3952_s20  ;;  %p3957_p10 = scmp.lt.s32.totalorder %s3951_s23, %s5945_s10 }
 0x427   : > { %v2912_v18 = vpop.f32.mrf.mxu3  ;;  %p3958_p11 = scmp.lt.s32.totalorder %s3956_s12, %s3952_s20 }
 0x428   : > { %p3954_p7 = pnand %p3953_p6, %p4127_p4 }
 0x429   : > { %p3959_p12 = por %p3958_p11, %p3957_p10 }
 0x42a   : > { %p3955_p9 = pneg %p3954_p7 }
 0x42c   : > { %p3960_p13 = pnand %p3959_p12, %p3955_p9 }
 0x42f   : > { %v2915_v32 = vpop.f32.mrf.mxu3 }
 0x437   : > { %v2917_v10 = vpop.f32.mrf.mxu3 }
 0x46f   : > { %v2998_v27 = vpop.permute.xlu2 %2997 }
 0x477   : > { %v3003_v16 = vpop.permute.xlu2 %3002 }
 0x47e   : > { %v3008_v9 = vpop.permute.xlu0 %3007 }
 0x486   : > { %v3013_v42 = vpop.permute.xlu1 %3012 }
 0x48f   : > { %v2929_v15 = vpop.f32.mrf.mxu3 }
 0x490   : > { %v2930_v60 = vadd.f32 %v2929_v15, %v2910_v48 }
 0x492   : > { %v3015_v3 = vmul.f32 %v2998_v27, %v2930_v60 }
 0x494   : > { %3019 = vst [vmem:[%s439_s1] sm:$0xff] %v3015_v3 }
 0x497   : > { %v2931_v0 = vpop.f32.mrf.mxu3 }
 0x498   : > { %v2932_v7 = vadd.f32 %v2931_v0, %v2912_v18 }
 0x49a   : > { %v3016_v35 = vmul.f32 %v3003_v16, %v2932_v7 }
 0x49c   : > { %3020 = vst [vmem:[%s439_s1 + $0x8] sm:$0xff] %v3016_v35 }
 0x49f   : > { %v2934_v40 = vpop.f32.mrf.mxu3 }
 0x4a0   : > { %v2935_v49 = vadd.f32 %v2934_v40, %v2915_v32 }
 0x4a2   : > { %v3017_v14 = vmul.f32 %v3008_v9, %v2935_v49 }
 0x4a4   : > { %3021 = vst [vmem:[%s439_s1 + $0x10] sm:$0xff] %v3017_v14 }
 0x4a7   : > { %v2936_v39 = vpop.f32.mrf.mxu3 }
 0x4a8   : > { %v2937_v8 = vadd.f32 %v2936_v39, %v2917_v10 }
 0x4aa   : > { %v3018_v29 = vmul.f32 %v3013_v42, %v2937_v8 }
 0x4ac   : > { %3022 = vst [vmem:[%s439_s1 + $0x18] sm:$0xff] %v3018_v29 }
 0x4ad   : > { %3963 = shalt.err (!%p3960_p13)
}
 0x4ae   : > { %s4025_s15 = smov 128   ;;  %s4026_s3 = smov 8  }
 0x4af   : > { %3635 = dma.vmem_to_hbm [thread:$0]  (%p4127_p4), %s3066_s6, 512, %s3068_s13, %s3029_s16, %s4025_s15, %s4025_s15, %s4026_s3  }
 0x4b0 PF: > { %p3645_p0 = scmp.ge.s32.totalorder %s4018_s22, 2  ;;  %s3085_s1 = sand.u32 1, %s3998_s17  }
 0x4b1   : > { %s3086_s0 = scalar_lea.sflag [#allocation3], %s3085_s1 }
 0x4b2   : > { %p3639_p1 = pnand %p3645_p0, %p4134_p8 }
 0x4b4   : > { %p3640_p2 = pneg %p3639_p1 }
 0x4b6   : > { %3989 = dma.done.wait (%p3640_p2), %s3086_s0, 2048  }
 0x4b7   : > { %3991 = vsyncadd (%p3640_p2), %s3086_s0, 4294965248  ;;  %s3096_s2 = scalar_lea.sflag [#allocation5], %s3085_s1 }
 0x4b8   : > { %3993 = dma.done.wait (%p3640_p2), %s3096_s2, 512  }
 0x4b9   : > { %3995 = vsyncadd (%p3640_p2), %s3096_s2, 4294966784  ;;  %s28_s22 = sadd.s32 1, %s4018_s22   ;;  %s6006_s17 = smov %s4002_s18 }
 0x4ba   : > { %p25_p3 = scmp.ge.s32.totalorder %s28_s22, 4   ;;  %s6007_s18 = smov %s4006_s19 }
 0x4bb   : > { %s6008_s19 = smov %s4140_s30  ;;  %s6009_s20 = smov %s4014_s21 }
 0x4bc   : > { %s6010_s21 = smov %s6012_s25  ;;  %27 = sbr.rel (!%p25_p3) target bundleno = 14 (0xe), region = 131 }
 0x4c1   :  { %3110 = vsyncpa [#allocation3], 1 }
 0x4c2   :  { %3112 = vsyncpa [#allocation3 + $0x1], 1 }
 0x4c3   :  { %3113 = vsyncpa [#allocation5], 1 }
 0x4c4   :  { %3115 = vsyncpa [#allocation5 + $0x1], 1 }

</bundles_post_ra>
